<compile_context>
chip_gen: v7x
topology: tpu7x:2x2x1
jax: 0.10.0
libtpu: 0.0.40
codegen_flags: <defaults>
</compile_context>

<pallas_src>
import functools

import jax
import jax.numpy as jnp
from jax import lax
from jax.experimental import pallas as pl
from jax.experimental.pallas import tpu as pltpu

BN_EPS = 1e-5
K1_PAD = 32          # layer-1 im2col K (9*3 = 27) padded up for clean tiling
NC_PAD = 128         # logits lane width (num_classes padded; sliced outside the kernel)
BATCH_TILE_CAP = 64  # per-grid-step batch tile, sized for v7x's 64 MiB VMEM


# ----------------------------------------------------------------------------
# In-kernel building blocks (traced inside the single fused kernel)
# ----------------------------------------------------------------------------
def _zero_halo(pad_ref):
    """Zero only the 1-pixel border of a (B, H+2, W+2, C) pad scratch.

    The interior is fully overwritten every grid step, so no full-buffer clear
    is needed (and we do not rely on cross-step scratch state, which keeps this
    correct when the parallel grid axis is sharded across v7x TensorCores).
    """
    B, Hp, Wp, C = pad_ref.shape
    dt = pad_ref.dtype
    pad_ref[:, 0:1, :, :] = jnp.zeros((B, 1, Wp, C), dt)
    pad_ref[:, Hp - 1:Hp, :, :] = jnp.zeros((B, 1, Wp, C), dt)
    pad_ref[:, :, 0:1, :] = jnp.zeros((B, Hp, 1, C), dt)
    pad_ref[:, :, Wp - 1:Wp, :] = jnp.zeros((B, Hp, 1, C), dt)


def _im2col(pad_ref):
    """(B, H+2, W+2, C) padded map -> lane-dense (B*H*W, 9*C) bf16 patch matrix.

    The 9 shifted taps are concatenated along K in-register (one wide value fed
    straight to jnp.dot) instead of 9 narrow masked stripe stores into a scratch.
    """
    B, Hp, Wp, C = pad_ref.shape
    H, W = Hp - 2, Wp - 2
    taps = []
    for ky in range(3):
        for kx in range(3):
            taps.append(pad_ref[:, ky:ky + H, kx:kx + W, :].reshape(B * H * W, C))
    return jnp.concatenate(taps, axis=-1).astype(jnp.bfloat16)


def _maxpool2x2_rows(y, w):
    """MaxPool2d(2, 2) directly on the (B*H*W, C) row-major layout, C kept in lanes.

    W-direction: max of adjacent row pairs (w = 2k / 2k+1).
    H-direction: max of two contiguous half-blocks of w//2 rows (rows h / h+1).
    Returns (B*(H//2)*(W//2), C) in (b, h2, w2) row order.
    """
    c = y.shape[-1]
    t = y.reshape(-1, 2, c)
    yw = jnp.maximum(t[:, 0, :], t[:, 1, :])                  # (B*H*W/2, C)
    t2 = yw.reshape(-1, w, c)                                 # [row h | row h+1] blocks
    return jnp.maximum(t2[:, :w // 2, :], t2[:, w // 2:, :]).reshape(-1, c)


def _cnn_fused_kernel(p1_ref,
                      w1_ref, s1_ref, t1_ref,
                      w2_ref, s2_ref, t2_ref,
                      w3_ref, s3_ref, t3_ref,
                      fw1_ref, fb1_ref, fw2_ref, fb2_ref, fw3_ref, fb3_ref,
                      o_ref,
                      pad2_ref, pad3_ref):
    B, HW, K1p = p1_ref.shape
    _, H2p, W2p, C1 = pad2_ref.shape
    H2, W2 = H2p - 2, W2p - 2
    _, H3p, W3p, C2 = pad3_ref.shape
    H3, W3 = H3p - 2, W3p - 2

    _zero_halo(pad2_ref)
    _zero_halo(pad3_ref)

    # ---- conv1 + folded-BN + ReLU + pool: patches precomputed by the wrapper --------
    acc = jnp.dot(p1_ref[...].reshape(B * HW, K1p), w1_ref[...],
                  preferred_element_type=jnp.float32)                  # (B*H*W, C1)
    y = jnp.maximum(acc * s1_ref[...] + t1_ref[...], 0.0)
    pooled = _maxpool2x2_rows(y, 2 * W2)                               # (B*H2*W2, C1)
    pad2_ref[:, 1:H2 + 1, 1:W2 + 1, :] = pooled.reshape(B, H2, W2, C1)

    # ---- conv2 + folded-BN + ReLU + pool ---------------------------------------------
    acc = jnp.dot(_im2col(pad2_ref), w2_ref[...],
                  preferred_element_type=jnp.float32)                  # (B*H2*W2, C2)
    y = jnp.maximum(acc * s2_ref[...] + t2_ref[...], 0.0)
    pooled = _maxpool2x2_rows(y, W2)                                   # (B*H3*W3, C2)
    pad3_ref[:, 1:H3 + 1, 1:W3 + 1, :] = pooled.reshape(B, H3, W3, C2)

    # ---- conv3 + folded-BN + ReLU + pool ---------------------------------------------
    acc = jnp.dot(_im2col(pad3_ref), w3_ref[...],
                  preferred_element_type=jnp.float32)                  # (B*H3*W3, C3)
    y = jnp.maximum(acc * s3_ref[...] + t3_ref[...], 0.0)
    pooled = _maxpool2x2_rows(y, W3)                                   # (B*H3*W3/4, C3)

    # ---- AdaptiveAvgPool2d((1, 1)) ----------------------------------------------------
    c3 = pooled.shape[-1]
    hw4 = (H3 // 2) * (W3 // 2)
    g = jnp.sum(pooled.reshape(B, hw4, c3), axis=1) * (1.0 / hw4)      # (B, C3)

    # ---- MLP head: Linear/ReLU/Linear/ReLU/Linear (bf16 operands, f32 accumulation) --
    h = jnp.maximum(jnp.dot(g.astype(jnp.bfloat16), fw1_ref[...],
                            preferred_element_type=jnp.float32) + fb1_ref[...], 0.0)
    h = jnp.maximum(jnp.dot(h.astype(jnp.bfloat16), fw2_ref[...],
                            preferred_element_type=jnp.float32) + fb2_ref[...], 0.0)
    logits = jnp.dot(h.astype(jnp.bfloat16), fw3_ref[...],
                     preferred_element_type=jnp.float32) + fb3_ref[...]

    o_ref[0] = logits.astype(o_ref.dtype)                              # (B, NC_PAD)


# ----------------------------------------------------------------------------
# Wrapper: single fused pallas_call for the whole network
# ----------------------------------------------------------------------------
def _const_spec(a):
    """Full-array block whose index never changes -> single-buffered if supported."""
    zeros = (0,) * a.ndim
    index_map = lambda g, _z=zeros: _z
    try:
        return pl.BlockSpec(a.shape, index_map, pipeline_mode=pl.Buffered(1))
    except (TypeError, AttributeError):   # older BlockSpec without pipeline_mode
        return pl.BlockSpec(a.shape, index_map)


def _pick_batch_tile(n, cap):
    b = min(cap, n)
    while n % b:
        b -= 1
    return b


def cnn_pallas(patches1, conv_w, conv_s, conv_t, ff_w, ff_b, img_hw,
               batch_tile=None):
    """Fused forward. patches1: (N, H*W, K1_PAD) bf16 layer-1 im2col patches."""
    N, HW, K1p = patches1.shape
    H, W = img_hw
    C1, C2 = conv_w[0].shape[1], conv_w[1].shape[1]
    nc_pad = ff_w[2].shape[1]
    H2, W2 = H // 2, W // 2
    H3, W3 = H2 // 2, W2 // 2

    B = _pick_batch_tile(N, BATCH_TILE_CAP if batch_tile is None else batch_tile)
    G = N // B   # real batch sizes (N >= 2*B) keep >=2 parallel steps for v7x's 2 TCs

    args = [patches1,
            conv_w[0], conv_s[0], conv_t[0],
            conv_w[1], conv_s[1], conv_t[1],
            conv_w[2], conv_s[2], conv_t[2],
            ff_w[0], ff_b[0], ff_w[1], ff_b[1], ff_w[2], ff_b[2]]

    in_specs = ([pl.BlockSpec((B, HW, K1p), lambda g: (g, 0, 0))] +
                [_const_spec(a) for a in args[1:]])

    out = pl.pallas_call(
        _cnn_fused_kernel,
        out_shape=jax.ShapeDtypeStruct((G, B, nc_pad), jnp.float32),
        grid=(G,),
        in_specs=in_specs,
        out_specs=pl.BlockSpec((1, B, nc_pad), lambda g: (g, 0, 0)),
        scratch_shapes=[
            pltpu.VMEM((B, H2 + 2, W2 + 2, C1), jnp.float32),   # conv2 input + zero halo
            pltpu.VMEM((B, H3 + 2, W3 + 2, C2), jnp.float32),   # conv3 input + zero halo
        ],
        compiler_params=pltpu.CompilerParams(
            dimension_semantics=("parallel",)),
    )(*args)
    return out.reshape(N, nc_pad)


# ----------------------------------------------------------------------------
# Parameters (deterministic, synthetic), one-time kernel prep, and forward
# ----------------------------------------------------------------------------
def init_params(key, num_classes=2, num_filters=32, in_channels=3):
    params = {"conv": [], "ff": []}
    chans = [in_channels, num_filters, num_filters * 2, num_filters * 4]
    for i in range(3):
        cin, cout = chans[i], chans[i + 1]
        key, kw, kb, kg, kbeta = jax.random.split(key, 5)
        params["conv"].append(dict(
            w=0.1 * jax.random.normal(kw, (3, 3, cin, cout), jnp.float32),   # HWIO
            b=0.1 * jax.random.normal(kb, (cout,), jnp.float32),
            gamma=1.0 + 0.1 * jax.random.normal(kg, (cout,), jnp.float32),
            beta=0.1 * jax.random.normal(kbeta, (cout,), jnp.float32)))
    dims = [num_filters * 4, 64, 32, num_classes]
    for i in range(3):
        din, dout = dims[i], dims[i + 1]
        key, kw, kb = jax.random.split(key, 3)
        params["ff"].append(dict(
            w=0.1 * jax.random.normal(kw, (din, dout), jnp.float32),
            b=0.1 * jax.random.normal(kb, (dout,), jnp.float32)))
    return params


def prepare_kernel_params(params):
    """One-time weight prep: im2col layout, bf16 cast, padding, eval-mode BN fold."""
    conv_w, conv_s, conv_t = [], [], []
    for i, layer in enumerate(params["conv"]):
        w = layer["w"]                                    # (3, 3, Cin, Cout) f32
        cin, cout = w.shape[2], w.shape[3]
        wk = w.reshape(9 * cin, cout)
        if i == 0 and 9 * cin < K1_PAD:                   # match wrapper patch K-padding
            wk = jnp.pad(wk, ((0, K1_PAD - 9 * cin), (0, 0)))
        conv_w.append(wk.astype(jnp.bfloat16))
        # eval-mode BN (running_mean=0, running_var=1) folded with the conv bias
        scale = layer["gamma"] / jnp.sqrt(1.0 + BN_EPS)
        shift = layer["beta"] + scale * layer["b"]
        conv_s.append(scale.reshape(1, cout))
        conv_t.append(shift.reshape(1, cout))
    ff_w, ff_b = [], []
    for i, layer in enumerate(params["ff"]):
        w, b = layer["w"], layer["b"]
        if i == 2 and w.shape[1] < NC_PAD:                # lane-dense logits slab
            w = jnp.pad(w, ((0, 0), (0, NC_PAD - w.shape[1])))
            b = jnp.pad(b, (0, NC_PAD - b.shape[0]))
        ff_w.append(w.astype(jnp.bfloat16))
        ff_b.append(b.reshape(1, -1))
    return dict(conv_w=conv_w, conv_s=conv_s, conv_t=conv_t, ff_w=ff_w, ff_b=ff_b)


def _layer1_patches(x_nhwc):
    """Zero-pad + 3x3 im2col for the lane-hostile Cin=3 first layer, done by XLA."""
    N, H, W, C = x_nhwc.shape
    xp = jnp.pad(x_nhwc, ((0, 0), (1, 1), (1, 1), (0, 0)))
    taps = [xp[:, ky:ky + H, kx:kx + W, :] for ky in range(3) for kx in range(3)]
    p = jnp.concatenate(taps, axis=-1).reshape(N, H * W, 9 * C)
    if 9 * C < K1_PAD:
        p = jnp.pad(p, ((0, 0), (0, 0), (0, K1_PAD - 9 * C)))
    return p.astype(jnp.bfloat16)


@functools.partial(jax.jit, static_argnames=("num_classes",))
def cnn_forward(x_nchw, prep, *, num_classes):
    # NCHW (PyTorch) -> NHWC once; layer-1 im2col is cheap HBM-side prep; the rest is
    # one fused Pallas kernel. Padded logit lanes are sliced off here.
    x = jnp.transpose(x_nchw, (0, 2, 3, 1)).astype(jnp.float32)
    patches1 = _layer1_patches(x)
    logits_pad = cnn_pallas(patches1, prep["conv_w"], prep["conv_s"], prep["conv_t"],
                            prep["ff_w"], prep["ff_b"], (x.shape[1], x.shape[2]))
    return logits_pad[:, :num_classes]


# Pure-JAX reference (no Pallas) with matching bf16-operand / f32-accumulate math.
def cnn_reference(x_nchw, params):
    x = jnp.transpose(x_nchw, (0, 2, 3, 1)).astype(jnp.float32)
    for layer in params["conv"]:
        y = lax.conv_general_dilated(
            x.astype(jnp.bfloat16), layer["w"].astype(jnp.bfloat16),
            window_strides=(1, 1), padding="SAME",
            dimension_numbers=("NHWC", "HWIO", "NHWC"),
            preferred_element_type=jnp.float32)
        y = y + layer["b"]
        y = layer["gamma"] * y / jnp.sqrt(1.0 + BN_EPS) + layer["beta"]
        y = jnp.maximum(y, 0.0)
        x = lax.reduce_window(y, -jnp.inf, lax.max,
                              (1, 2, 2, 1), (1, 2, 2, 1), "VALID")
    g = jnp.mean(x, axis=(1, 2))
    f = params["ff"]
    h = jnp.maximum(
        jnp.dot(g.astype(jnp.bfloat16), f[0]["w"].astype(jnp.bfloat16),
                preferred_element_type=jnp.float32) + f[0]["b"], 0.0)
    h = jnp.maximum(
        jnp.dot(h.astype(jnp.bfloat16), f[1]["w"].astype(jnp.bfloat16),
                preferred_element_type=jnp.float32) + f[1]["b"], 0.0)
    return jnp.dot(h.astype(jnp.bfloat16), f[2]["w"].astype(jnp.bfloat16),
                   preferred_element_type=jnp.float32) + f[2]["b"]


if __name__ == "__main__":
    key = jax.random.PRNGKey(0)
    key, kx = jax.random.split(key)
    # Small shapes: batch=2, in_channels=3, spatial=16x16 (NCHW like PyTorch).
    x = jax.random.normal(kx, (2, 3, 16, 16), jnp.float32)
    params = init_params(key, num_classes=2, num_filters=32, in_channels=3)
    prep = prepare_kernel_params(params)

    out = jax.block_until_ready(cnn_forward(x, prep, num_classes=2))
    ref = jax.block_until_ready(cnn_reference(x, params))

    assert out.shape == (2, 2), out.shape
    assert jnp.allclose(out, ref, atol=2e-3, rtol=2e-3), (out, ref)
    print("KERNEL_OK")
</pallas_src>

<mosaic_0001>
module attributes {stable_mosaic.version = 11 : i64} {
  func.func @_cnn_fused_kernel(%arg0: i32, %arg1: memref<2x256x32xbf16, #tpu.memory_space<vmem>>, %arg2: memref<32x32xbf16, #tpu.memory_space<vmem>>, %arg3: memref<1x32xf32, #tpu.memory_space<vmem>>, %arg4: memref<1x32xf32, #tpu.memory_space<vmem>>, %arg5: memref<288x64xbf16, #tpu.memory_space<vmem>>, %arg6: memref<1x64xf32, #tpu.memory_space<vmem>>, %arg7: memref<1x64xf32, #tpu.memory_space<vmem>>, %arg8: memref<576x128xbf16, #tpu.memory_space<vmem>>, %arg9: memref<1x128xf32, #tpu.memory_space<vmem>>, %arg10: memref<1x128xf32, #tpu.memory_space<vmem>>, %arg11: memref<128x64xbf16, #tpu.memory_space<vmem>>, %arg12: memref<1x64xf32, #tpu.memory_space<vmem>>, %arg13: memref<64x32xbf16, #tpu.memory_space<vmem>>, %arg14: memref<1x32xf32, #tpu.memory_space<vmem>>, %arg15: memref<32x128xbf16, #tpu.memory_space<vmem>>, %arg16: memref<1x128xf32, #tpu.memory_space<vmem>>, %arg17: memref<1x2x128xf32, #tpu.memory_space<vmem>>, %arg18: memref<2x10x10x32xf32, #tpu.memory_space<vmem>>, %arg19: memref<2x6x6x64xf32, #tpu.memory_space<vmem>>) attributes {dimension_semantics = [#tpu.dimension_semantics<parallel>], iteration_bounds = array<i64: 1>, scalar_prefetch = 0 : i64, scratch_operands = 2 : i64, tpu.core_type = #tpu.core_type<tc>, window_params = [{transform_indices = @transform_0, window_bounds = array<i64: 2, 256, 32>}, {pipeline_mode = #tpu.pipeline_mode<synchronous>, transform_indices = @transform_1, window_bounds = array<i64: 32, 32>}, {pipeline_mode = #tpu.pipeline_mode<synchronous>, transform_indices = @transform_2, window_bounds = array<i64: 1, 32>}, {pipeline_mode = #tpu.pipeline_mode<synchronous>, transform_indices = @transform_3, window_bounds = array<i64: 1, 32>}, {pipeline_mode = #tpu.pipeline_mode<synchronous>, transform_indices = @transform_4, window_bounds = array<i64: 288, 64>}, {pipeline_mode = #tpu.pipeline_mode<synchronous>, transform_indices = @transform_5, window_bounds = array<i64: 1, 64>}, {pipeline_mode = #tpu.pipeline_mode<synchronous>, transform_indices = @transform_6, window_bounds = array<i64: 1, 64>}, {pipeline_mode = #tpu.pipeline_mode<synchronous>, transform_indices = @transform_7, window_bounds = array<i64: 576, 128>}, {pipeline_mode = #tpu.pipeline_mode<synchronous>, transform_indices = @transform_8, window_bounds = array<i64: 1, 128>}, {pipeline_mode = #tpu.pipeline_mode<synchronous>, transform_indices = @transform_9, window_bounds = array<i64: 1, 128>}, {pipeline_mode = #tpu.pipeline_mode<synchronous>, transform_indices = @transform_10, window_bounds = array<i64: 128, 64>}, {pipeline_mode = #tpu.pipeline_mode<synchronous>, transform_indices = @transform_11, window_bounds = array<i64: 1, 64>}, {pipeline_mode = #tpu.pipeline_mode<synchronous>, transform_indices = @transform_12, window_bounds = array<i64: 64, 32>}, {pipeline_mode = #tpu.pipeline_mode<synchronous>, transform_indices = @transform_13, window_bounds = array<i64: 1, 32>}, {pipeline_mode = #tpu.pipeline_mode<synchronous>, transform_indices = @transform_14, window_bounds = array<i64: 32, 128>}, {pipeline_mode = #tpu.pipeline_mode<synchronous>, transform_indices = @transform_15, window_bounds = array<i64: 1, 128>}, {transform_indices = @transform_16, window_bounds = array<i64: 1, 2, 128>}]} {
    %cst = arith.constant 0.000000e+00 : f32
    %0 = vector.broadcast %cst : f32 to vector<2x1x10x32xf32>
    %c0 = arith.constant 0 : index
    %c0_0 = arith.constant 0 : index
    %c0_1 = arith.constant 0 : index
    %c0_2 = arith.constant 0 : index
    %1 = vector.load %arg18[%c0, %c0_0, %c0_1, %c0_2] : memref<2x10x10x32xf32, #tpu.memory_space<vmem>>, vector<2x1x10x32xf32>
    tpu.vector_store %arg18[%c0, %c0_0, %c0_1, %c0_2], %0 {strides = array<i32>} : memref<2x10x10x32xf32, #tpu.memory_space<vmem>>, vector<2x1x10x32xf32>,
    %cst_3 = arith.constant 0.000000e+00 : f32
    %2 = vector.broadcast %cst_3 : f32 to vector<2x1x10x32xf32>
    %c0_4 = arith.constant 0 : index
    %c9 = arith.constant 9 : index
    %c0_5 = arith.constant 0 : index
    %c0_6 = arith.constant 0 : index
    %3 = vector.load %arg18[%c0_4, %c9, %c0_5, %c0_6] : memref<2x10x10x32xf32, #tpu.memory_space<vmem>>, vector<2x1x10x32xf32>
    tpu.vector_store %arg18[%c0_4, %c9, %c0_5, %c0_6], %2 {strides = array<i32>} : memref<2x10x10x32xf32, #tpu.memory_space<vmem>>, vector<2x1x10x32xf32>,
    %cst_7 = arith.constant 0.000000e+00 : f32
    %4 = vector.broadcast %cst_7 : f32 to vector<2x10x1x32xf32>
    %c0_8 = arith.constant 0 : index
    %c0_9 = arith.constant 0 : index
    %c0_10 = arith.constant 0 : index
    %c0_11 = arith.constant 0 : index
    %5 = vector.load %arg18[%c0_8, %c0_9, %c0_10, %c0_11] : memref<2x10x10x32xf32, #tpu.memory_space<vmem>>, vector<2x10x1x32xf32>
    tpu.vector_store %arg18[%c0_8, %c0_9, %c0_10, %c0_11], %4 {strides = array<i32>} : memref<2x10x10x32xf32, #tpu.memory_space<vmem>>, vector<2x10x1x32xf32>,
    %cst_12 = arith.constant 0.000000e+00 : f32
    %6 = vector.broadcast %cst_12 : f32 to vector<2x10x1x32xf32>
    %c0_13 = arith.constant 0 : index
    %c0_14 = arith.constant 0 : index
    %c9_15 = arith.constant 9 : index
    %c0_16 = arith.constant 0 : index
    %7 = vector.load %arg18[%c0_13, %c0_14, %c9_15, %c0_16] : memref<2x10x10x32xf32, #tpu.memory_space<vmem>>, vector<2x10x1x32xf32>
    tpu.vector_store %arg18[%c0_13, %c0_14, %c9_15, %c0_16], %6 {strides = array<i32>} : memref<2x10x10x32xf32, #tpu.memory_space<vmem>>, vector<2x10x1x32xf32>,
    %cst_17 = arith.constant 0.000000e+00 : f32
    %8 = vector.broadcast %cst_17 : f32 to vector<2x1x6x64xf32>
    %c0_18 = arith.constant 0 : index
    %c0_19 = arith.constant 0 : index
    %c0_20 = arith.constant 0 : index
    %c0_21 = arith.constant 0 : index
    %9 = vector.load %arg19[%c0_18, %c0_19, %c0_20, %c0_21] : memref<2x6x6x64xf32, #tpu.memory_space<vmem>>, vector<2x1x6x64xf32>
    tpu.vector_store %arg19[%c0_18, %c0_19, %c0_20, %c0_21], %8 {strides = array<i32>} : memref<2x6x6x64xf32, #tpu.memory_space<vmem>>, vector<2x1x6x64xf32>,
    %cst_22 = arith.constant 0.000000e+00 : f32
    %10 = vector.broadcast %cst_22 : f32 to vector<2x1x6x64xf32>
    %c0_23 = arith.constant 0 : index
    %c5 = arith.constant 5 : index
    %c0_24 = arith.constant 0 : index
    %c0_25 = arith.constant 0 : index
    %11 = vector.load %arg19[%c0_23, %c5, %c0_24, %c0_25] : memref<2x6x6x64xf32, #tpu.memory_space<vmem>>, vector<2x1x6x64xf32>
    tpu.vector_store %arg19[%c0_23, %c5, %c0_24, %c0_25], %10 {strides = array<i32>} : memref<2x6x6x64xf32, #tpu.memory_space<vmem>>, vector<2x1x6x64xf32>,
    %cst_26 = arith.constant 0.000000e+00 : f32
    %12 = vector.broadcast %cst_26 : f32 to vector<2x6x1x64xf32>
    %c0_27 = arith.constant 0 : index
    %c0_28 = arith.constant 0 : index
    %c0_29 = arith.constant 0 : index
    %c0_30 = arith.constant 0 : index
    %13 = vector.load %arg19[%c0_27, %c0_28, %c0_29, %c0_30] : memref<2x6x6x64xf32, #tpu.memory_space<vmem>>, vector<2x6x1x64xf32>
    tpu.vector_store %arg19[%c0_27, %c0_28, %c0_29, %c0_30], %12 {strides = array<i32>} : memref<2x6x6x64xf32, #tpu.memory_space<vmem>>, vector<2x6x1x64xf32>,
    %cst_31 = arith.constant 0.000000e+00 : f32
    %14 = vector.broadcast %cst_31 : f32 to vector<2x6x1x64xf32>
    %c0_32 = arith.constant 0 : index
    %c0_33 = arith.constant 0 : index
    %c5_34 = arith.constant 5 : index
    %c0_35 = arith.constant 0 : index
    %15 = vector.load %arg19[%c0_32, %c0_33, %c5_34, %c0_35] : memref<2x6x6x64xf32, #tpu.memory_space<vmem>>, vector<2x6x1x64xf32>
    tpu.vector_store %arg19[%c0_32, %c0_33, %c5_34, %c0_35], %14 {strides = array<i32>} : memref<2x6x6x64xf32, #tpu.memory_space<vmem>>, vector<2x6x1x64xf32>,
    %c0_36 = arith.constant 0 : index
    %c0_37 = arith.constant 0 : index
    %c0_38 = arith.constant 0 : index
    %16 = vector.load %arg1[%c0_36, %c0_37, %c0_38] : memref<2x256x32xbf16, #tpu.memory_space<vmem>>, vector<2x256x32xbf16>
    %17 = vector.shape_cast %16 : vector<2x256x32xbf16> to vector<512x32xbf16>
    %c0_39 = arith.constant 0 : index
    %c0_40 = arith.constant 0 : index
    %18 = vector.load %arg2[%c0_39, %c0_40] : memref<32x32xbf16, #tpu.memory_space<vmem>>, vector<32x32xbf16>
    %cst_41 = arith.constant dense<0.000000e+00> : vector<512x32xf32>
    %19 = tpu.matmul %17, %18, %cst_41 {dimension_numbers = #tpu.dot_dimension_numbers<[1], [0], [0], [1], [0, 0, 1, 1], [], []>} : vector<512x32xbf16>, vector<32x32xbf16>, vector<512x32xf32> -> vector<512x32xf32>
    %c0_42 = arith.constant 0 : index
    %c0_43 = arith.constant 0 : index
    %20 = vector.load %arg3[%c0_42, %c0_43] : memref<1x32xf32, #tpu.memory_space<vmem>>, vector<1x32xf32>
    %21 = vector.broadcast %20 : vector<1x32xf32> to vector<512x32xf32>
    %22 = arith.mulf %19, %21 : vector<512x32xf32>
    %c0_44 = arith.constant 0 : index
    %c0_45 = arith.constant 0 : index
    %23 = vector.load %arg4[%c0_44, %c0_45] : memref<1x32xf32, #tpu.memory_space<vmem>>, vector<1x32xf32>
    %24 = vector.broadcast %23 : vector<1x32xf32> to vector<512x32xf32>
    %25 = arith.addf %22, %24 : vector<512x32xf32>
    %cst_46 = arith.constant 0.000000e+00 : f32
    %26 = vector.broadcast %cst_46 : f32 to vector<512x32xf32>
    %27 = arith.maximumf %25, %26 : vector<512x32xf32>
    %28 = vector.shape_cast %27 : vector<512x32xf32> to vector<256x2x32xf32>
    %29 = vector.extract_strided_slice %28 {offsets = [0, 0, 0], sizes = [256, 1, 32], strides = [1, 1, 1]} : vector<256x2x32xf32> to vector<256x1x32xf32>
    %30 = vector.shape_cast %29 : vector<256x1x32xf32> to vector<256x32xf32>
    %31 = vector.extract_strided_slice %28 {offsets = [0, 1, 0], sizes = [256, 1, 32], strides = [1, 1, 1]} : vector<256x2x32xf32> to vector<256x1x32xf32>
    %32 = vector.shape_cast %31 : vector<256x1x32xf32> to vector<256x32xf32>
    %33 = arith.maximumf %30, %32 : vector<256x32xf32>
    %34 = vector.shape_cast %33 : vector<256x32xf32> to vector<16x16x32xf32>
    %35 = vector.extract_strided_slice %34 {offsets = [0, 0, 0], sizes = [16, 8, 32], strides = [1, 1, 1]} : vector<16x16x32xf32> to vector<16x8x32xf32>
    %36 = vector.extract_strided_slice %34 {offsets = [0, 8, 0], sizes = [16, 8, 32], strides = [1, 1, 1]} : vector<16x16x32xf32> to vector<16x8x32xf32>
    %37 = arith.maximumf %35, %36 : vector<16x8x32xf32>
    %38 = vector.shape_cast %37 : vector<16x8x32xf32> to vector<128x32xf32>
    %39 = vector.shape_cast %38 : vector<128x32xf32> to vector<2x8x8x32xf32>
    %c0_47 = arith.constant 0 : index
    %c1 = arith.constant 1 : index
    %c1_48 = arith.constant 1 : index
    %c0_49 = arith.constant 0 : index
    %40 = vector.load %arg18[%c0_47, %c1, %c1_48, %c0_49] : memref<2x10x10x32xf32, #tpu.memory_space<vmem>>, vector<2x8x8x32xf32>
    tpu.vector_store %arg18[%c0_47, %c1, %c1_48, %c0_49], %39 {strides = array<i32>} : memref<2x10x10x32xf32, #tpu.memory_space<vmem>>, vector<2x8x8x32xf32>,
    %c0_50 = arith.constant 0 : index
    %c0_51 = arith.constant 0 : index
    %c0_52 = arith.constant 0 : index
    %c0_53 = arith.constant 0 : index
    %41 = vector.load %arg18[%c0_50, %c0_51, %c0_52, %c0_53] : memref<2x10x10x32xf32, #tpu.memory_space<vmem>>, vector<2x8x8x32xf32>
    %42 = vector.shape_cast %41 : vector<2x8x8x32xf32> to vector<128x32xf32>
    %c0_54 = arith.constant 0 : index
    %c0_55 = arith.constant 0 : index
    %c1_56 = arith.constant 1 : index
    %c0_57 = arith.constant 0 : index
    %43 = vector.load %arg18[%c0_54, %c0_55, %c1_56, %c0_57] : memref<2x10x10x32xf32, #tpu.memory_space<vmem>>, vector<2x8x8x32xf32>
    %44 = vector.shape_cast %43 : vector<2x8x8x32xf32> to vector<128x32xf32>
    %c0_58 = arith.constant 0 : index
    %c0_59 = arith.constant 0 : index
    %c2 = arith.constant 2 : index
    %c0_60 = arith.constant 0 : index
    %45 = vector.load %arg18[%c0_58, %c0_59, %c2, %c0_60] : memref<2x10x10x32xf32, #tpu.memory_space<vmem>>, vector<2x8x8x32xf32>
    %46 = vector.shape_cast %45 : vector<2x8x8x32xf32> to vector<128x32xf32>
    %c0_61 = arith.constant 0 : index
    %c1_62 = arith.constant 1 : index
    %c0_63 = arith.constant 0 : index
    %c0_64 = arith.constant 0 : index
    %47 = vector.load %arg18[%c0_61, %c1_62, %c0_63, %c0_64] : memref<2x10x10x32xf32, #tpu.memory_space<vmem>>, vector<2x8x8x32xf32>
    %48 = vector.shape_cast %47 : vector<2x8x8x32xf32> to vector<128x32xf32>
    %c0_65 = arith.constant 0 : index
    %c1_66 = arith.constant 1 : index
    %c1_67 = arith.constant 1 : index
    %c0_68 = arith.constant 0 : index
    %49 = vector.load %arg18[%c0_65, %c1_66, %c1_67, %c0_68] : memref<2x10x10x32xf32, #tpu.memory_space<vmem>>, vector<2x8x8x32xf32>
    %50 = vector.shape_cast %49 : vector<2x8x8x32xf32> to vector<128x32xf32>
    %c0_69 = arith.constant 0 : index
    %c1_70 = arith.constant 1 : index
    %c2_71 = arith.constant 2 : index
    %c0_72 = arith.constant 0 : index
    %51 = vector.load %arg18[%c0_69, %c1_70, %c2_71, %c0_72] : memref<2x10x10x32xf32, #tpu.memory_space<vmem>>, vector<2x8x8x32xf32>
    %52 = vector.shape_cast %51 : vector<2x8x8x32xf32> to vector<128x32xf32>
    %c0_73 = arith.constant 0 : index
    %c2_74 = arith.constant 2 : index
    %c0_75 = arith.constant 0 : index
    %c0_76 = arith.constant 0 : index
    %53 = vector.load %arg18[%c0_73, %c2_74, %c0_75, %c0_76] : memref<2x10x10x32xf32, #tpu.memory_space<vmem>>, vector<2x8x8x32xf32>
    %54 = vector.shape_cast %53 : vector<2x8x8x32xf32> to vector<128x32xf32>
    %c0_77 = arith.constant 0 : index
    %c2_78 = arith.constant 2 : index
    %c1_79 = arith.constant 1 : index
    %c0_80 = arith.constant 0 : index
    %55 = vector.load %arg18[%c0_77, %c2_78, %c1_79, %c0_80] : memref<2x10x10x32xf32, #tpu.memory_space<vmem>>, vector<2x8x8x32xf32>
    %56 = vector.shape_cast %55 : vector<2x8x8x32xf32> to vector<128x32xf32>
    %c0_81 = arith.constant 0 : index
    %c2_82 = arith.constant 2 : index
    %c2_83 = arith.constant 2 : index
    %c0_84 = arith.constant 0 : index
    %57 = vector.load %arg18[%c0_81, %c2_82, %c2_83, %c0_84] : memref<2x10x10x32xf32, #tpu.memory_space<vmem>>, vector<2x8x8x32xf32>
    %58 = vector.shape_cast %57 : vector<2x8x8x32xf32> to vector<128x32xf32>
    %59 = tpu.concatenate %42, %44, %46, %48, %50, %52, %54, %56, %58 in 1 : vector<128x32xf32>, vector<128x32xf32>, vector<128x32xf32>, vector<128x32xf32>, vector<128x32xf32>, vector<128x32xf32>, vector<128x32xf32>, vector<128x32xf32>, vector<128x32xf32> -> vector<128x288xf32>
    %60 = arith.truncf %59 : vector<128x288xf32> to vector<128x288xbf16>
    %c0_85 = arith.constant 0 : index
    %c0_86 = arith.constant 0 : index
    %61 = vector.load %arg5[%c0_85, %c0_86] : memref<288x64xbf16, #tpu.memory_space<vmem>>, vector<288x64xbf16>
    %cst_87 = arith.constant dense<0.000000e+00> : vector<128x64xf32>
    %62 = tpu.matmul %60, %61, %cst_87 {dimension_numbers = #tpu.dot_dimension_numbers<[1], [0], [0], [1], [0, 0, 1, 1], [], []>} : vector<128x288xbf16>, vector<288x64xbf16>, vector<128x64xf32> -> vector<128x64xf32>
    %c0_88 = arith.constant 0 : index
    %c0_89 = arith.constant 0 : index
    %63 = vector.load %arg6[%c0_88, %c0_89] : memref<1x64xf32, #tpu.memory_space<vmem>>, vector<1x64xf32>
    %64 = vector.broadcast %63 : vector<1x64xf32> to vector<128x64xf32>
    %65 = arith.mulf %62, %64 : vector<128x64xf32>
    %c0_90 = arith.constant 0 : index
    %c0_91 = arith.constant 0 : index
    %66 = vector.load %arg7[%c0_90, %c0_91] : memref<1x64xf32, #tpu.memory_space<vmem>>, vector<1x64xf32>
    %67 = vector.broadcast %66 : vector<1x64xf32> to vector<128x64xf32>
    %68 = arith.addf %65, %67 : vector<128x64xf32>
    %cst_92 = arith.constant 0.000000e+00 : f32
    %69 = vector.broadcast %cst_92 : f32 to vector<128x64xf32>
    %70 = arith.maximumf %68, %69 : vector<128x64xf32>
    %71 = vector.shape_cast %70 : vector<128x64xf32> to vector<64x2x64xf32>
    %72 = vector.extract_strided_slice %71 {offsets = [0, 0, 0], sizes = [64, 1, 64], strides = [1, 1, 1]} : vector<64x2x64xf32> to vector<64x1x64xf32>
    %73 = vector.shape_cast %72 : vector<64x1x64xf32> to vector<64x64xf32>
    %74 = vector.extract_strided_slice %71 {offsets = [0, 1, 0], sizes = [64, 1, 64], strides = [1, 1, 1]} : vector<64x2x64xf32> to vector<64x1x64xf32>
    %75 = vector.shape_cast %74 : vector<64x1x64xf32> to vector<64x64xf32>
    %76 = arith.maximumf %73, %75 : vector<64x64xf32>
    %77 = vector.shape_cast %76 : vector<64x64xf32> to vector<8x8x64xf32>
    %78 = vector.extract_strided_slice %77 {offsets = [0, 0, 0], sizes = [8, 4, 64], strides = [1, 1, 1]} : vector<8x8x64xf32> to vector<8x4x64xf32>
    %79 = vector.extract_strided_slice %77 {offsets = [0, 4, 0], sizes = [8, 4, 64], strides = [1, 1, 1]} : vector<8x8x64xf32> to vector<8x4x64xf32>
    %80 = arith.maximumf %78, %79 : vector<8x4x64xf32>
    %81 = vector.shape_cast %80 : vector<8x4x64xf32> to vector<32x64xf32>
    %82 = vector.shape_cast %81 : vector<32x64xf32> to vector<2x4x4x64xf32>
    %c0_93 = arith.constant 0 : index
    %c1_94 = arith.constant 1 : index
    %c1_95 = arith.constant 1 : index
    %c0_96 = arith.constant 0 : index
    %83 = vector.load %arg19[%c0_93, %c1_94, %c1_95, %c0_96] : memref<2x6x6x64xf32, #tpu.memory_space<vmem>>, vector<2x4x4x64xf32>
    tpu.vector_store %arg19[%c0_93, %c1_94, %c1_95, %c0_96], %82 {strides = array<i32>} : memref<2x6x6x64xf32, #tpu.memory_space<vmem>>, vector<2x4x4x64xf32>,
    %c0_97 = arith.constant 0 : index
    %c0_98 = arith.constant 0 : index
    %c0_99 = arith.constant 0 : index
    %c0_100 = arith.constant 0 : index
    %84 = vector.load %arg19[%c0_97, %c0_98, %c0_99, %c0_100] : memref<2x6x6x64xf32, #tpu.memory_space<vmem>>, vector<2x4x4x64xf32>
    %85 = vector.shape_cast %84 : vector<2x4x4x64xf32> to vector<32x64xf32>
    %c0_101 = arith.constant 0 : index
    %c0_102 = arith.constant 0 : index
    %c1_103 = arith.constant 1 : index
    %c0_104 = arith.constant 0 : index
    %86 = vector.load %arg19[%c0_101, %c0_102, %c1_103, %c0_104] : memref<2x6x6x64xf32, #tpu.memory_space<vmem>>, vector<2x4x4x64xf32>
    %87 = vector.shape_cast %86 : vector<2x4x4x64xf32> to vector<32x64xf32>
    %c0_105 = arith.constant 0 : index
    %c0_106 = arith.constant 0 : index
    %c2_107 = arith.constant 2 : index
    %c0_108 = arith.constant 0 : index
    %88 = vector.load %arg19[%c0_105, %c0_106, %c2_107, %c0_108] : memref<2x6x6x64xf32, #tpu.memory_space<vmem>>, vector<2x4x4x64xf32>
    %89 = vector.shape_cast %88 : vector<2x4x4x64xf32> to vector<32x64xf32>
    %c0_109 = arith.constant 0 : index
    %c1_110 = arith.constant 1 : index
    %c0_111 = arith.constant 0 : index
    %c0_112 = arith.constant 0 : index
    %90 = vector.load %arg19[%c0_109, %c1_110, %c0_111, %c0_112] : memref<2x6x6x64xf32, #tpu.memory_space<vmem>>, vector<2x4x4x64xf32>
    %91 = vector.shape_cast %90 : vector<2x4x4x64xf32> to vector<32x64xf32>
    %c0_113 = arith.constant 0 : index
    %c1_114 = arith.constant 1 : index
    %c1_115 = arith.constant 1 : index
    %c0_116 = arith.constant 0 : index
    %92 = vector.load %arg19[%c0_113, %c1_114, %c1_115, %c0_116] : memref<2x6x6x64xf32, #tpu.memory_space<vmem>>, vector<2x4x4x64xf32>
    %93 = vector.shape_cast %92 : vector<2x4x4x64xf32> to vector<32x64xf32>
    %c0_117 = arith.constant 0 : index
    %c1_118 = arith.constant 1 : index
    %c2_119 = arith.constant 2 : index
    %c0_120 = arith.constant 0 : index
    %94 = vector.load %arg19[%c0_117, %c1_118, %c2_119, %c0_120] : memref<2x6x6x64xf32, #tpu.memory_space<vmem>>, vector<2x4x4x64xf32>
    %95 = vector.shape_cast %94 : vector<2x4x4x64xf32> to vector<32x64xf32>
    %c0_121 = arith.constant 0 : index
    %c2_122 = arith.constant 2 : index
    %c0_123 = arith.constant 0 : index
    %c0_124 = arith.constant 0 : index
    %96 = vector.load %arg19[%c0_121, %c2_122, %c0_123, %c0_124] : memref<2x6x6x64xf32, #tpu.memory_space<vmem>>, vector<2x4x4x64xf32>
    %97 = vector.shape_cast %96 : vector<2x4x4x64xf32> to vector<32x64xf32>
    %c0_125 = arith.constant 0 : index
    %c2_126 = arith.constant 2 : index
    %c1_127 = arith.constant 1 : index
    %c0_128 = arith.constant 0 : index
    %98 = vector.load %arg19[%c0_125, %c2_126, %c1_127, %c0_128] : memref<2x6x6x64xf32, #tpu.memory_space<vmem>>, vector<2x4x4x64xf32>
    %99 = vector.shape_cast %98 : vector<2x4x4x64xf32> to vector<32x64xf32>
    %c0_129 = arith.constant 0 : index
    %c2_130 = arith.constant 2 : index
    %c2_131 = arith.constant 2 : index
    %c0_132 = arith.constant 0 : index
    %100 = vector.load %arg19[%c0_129, %c2_130, %c2_131, %c0_132] : memref<2x6x6x64xf32, #tpu.memory_space<vmem>>, vector<2x4x4x64xf32>
    %101 = vector.shape_cast %100 : vector<2x4x4x64xf32> to vector<32x64xf32>
    %102 = tpu.concatenate %85, %87, %89, %91, %93, %95, %97, %99, %101 in 1 : vector<32x64xf32>, vector<32x64xf32>, vector<32x64xf32>, vector<32x64xf32>, vector<32x64xf32>, vector<32x64xf32>, vector<32x64xf32>, vector<32x64xf32>, vector<32x64xf32> -> vector<32x576xf32>
    %103 = arith.truncf %102 : vector<32x576xf32> to vector<32x576xbf16>
    %c0_133 = arith.constant 0 : index
    %c0_134 = arith.constant 0 : index
    %104 = vector.load %arg8[%c0_133, %c0_134] : memref<576x128xbf16, #tpu.memory_space<vmem>>, vector<576x128xbf16>
    %cst_135 = arith.constant dense<0.000000e+00> : vector<32x128xf32>
    %105 = tpu.matmul %103, %104, %cst_135 {dimension_numbers = #tpu.dot_dimension_numbers<[1], [0], [0], [1], [0, 0, 1, 1], [], []>} : vector<32x576xbf16>, vector<576x128xbf16>, vector<32x128xf32> -> vector<32x128xf32>
    %c0_136 = arith.constant 0 : index
    %c0_137 = arith.constant 0 : index
    %106 = vector.load %arg9[%c0_136, %c0_137] : memref<1x128xf32, #tpu.memory_space<vmem>>, vector<1x128xf32>
    %107 = vector.broadcast %106 : vector<1x128xf32> to vector<32x128xf32>
    %108 = arith.mulf %105, %107 : vector<32x128xf32>
    %c0_138 = arith.constant 0 : index
    %c0_139 = arith.constant 0 : index
    %109 = vector.load %arg10[%c0_138, %c0_139] : memref<1x128xf32, #tpu.memory_space<vmem>>, vector<1x128xf32>
    %110 = vector.broadcast %109 : vector<1x128xf32> to vector<32x128xf32>
    %111 = arith.addf %108, %110 : vector<32x128xf32>
    %cst_140 = arith.constant 0.000000e+00 : f32
    %112 = vector.broadcast %cst_140 : f32 to vector<32x128xf32>
    %113 = arith.maximumf %111, %112 : vector<32x128xf32>
    %114 = vector.shape_cast %113 : vector<32x128xf32> to vector<16x2x128xf32>
    %115 = vector.extract_strided_slice %114 {offsets = [0, 0, 0], sizes = [16, 1, 128], strides = [1, 1, 1]} : vector<16x2x128xf32> to vector<16x1x128xf32>
    %116 = vector.shape_cast %115 : vector<16x1x128xf32> to vector<16x128xf32>
    %117 = vector.extract_strided_slice %114 {offsets = [0, 1, 0], sizes = [16, 1, 128], strides = [1, 1, 1]} : vector<16x2x128xf32> to vector<16x1x128xf32>
    %118 = vector.shape_cast %117 : vector<16x1x128xf32> to vector<16x128xf32>
    %119 = arith.maximumf %116, %118 : vector<16x128xf32>
    %120 = vector.shape_cast %119 : vector<16x128xf32> to vector<4x4x128xf32>
    %121 = vector.extract_strided_slice %120 {offsets = [0, 0, 0], sizes = [4, 2, 128], strides = [1, 1, 1]} : vector<4x4x128xf32> to vector<4x2x128xf32>
    %122 = vector.extract_strided_slice %120 {offsets = [0, 2, 0], sizes = [4, 2, 128], strides = [1, 1, 1]} : vector<4x4x128xf32> to vector<4x2x128xf32>
    %123 = arith.maximumf %121, %122 : vector<4x2x128xf32>
    %124 = vector.shape_cast %123 : vector<4x2x128xf32> to vector<8x128xf32>
    %125 = vector.shape_cast %124 : vector<8x128xf32> to vector<2x4x128xf32>
    %cst_141 = arith.constant dense<0.000000e+00> : vector<2x128xf32>
    %126 = vector.multi_reduction <add>, %125, %cst_141 [1] : vector<2x4x128xf32> to vector<2x128xf32>
    %cst_142 = arith.constant 2.500000e-01 : f32
    %127 = vector.broadcast %cst_142 : f32 to vector<2x128xf32>
    %128 = arith.mulf %126, %127 : vector<2x128xf32>
    %129 = arith.truncf %128 : vector<2x128xf32> to vector<2x128xbf16>
    %c0_143 = arith.constant 0 : index
    %c0_144 = arith.constant 0 : index
    %130 = vector.load %arg11[%c0_143, %c0_144] : memref<128x64xbf16, #tpu.memory_space<vmem>>, vector<128x64xbf16>
    %cst_145 = arith.constant dense<0.000000e+00> : vector<2x64xf32>
    %131 = tpu.matmul %129, %130, %cst_145 {dimension_numbers = #tpu.dot_dimension_numbers<[1], [0], [0], [1], [0, 0, 1, 1], [], []>} : vector<2x128xbf16>, vector<128x64xbf16>, vector<2x64xf32> -> vector<2x64xf32>
    %c0_146 = arith.constant 0 : index
    %c0_147 = arith.constant 0 : index
    %132 = vector.load %arg12[%c0_146, %c0_147] : memref<1x64xf32, #tpu.memory_space<vmem>>, vector<1x64xf32>
    %133 = vector.broadcast %132 : vector<1x64xf32> to vector<2x64xf32>
    %134 = arith.addf %131, %133 : vector<2x64xf32>
    %cst_148 = arith.constant 0.000000e+00 : f32
    %135 = vector.broadcast %cst_148 : f32 to vector<2x64xf32>
    %136 = arith.maximumf %134, %135 : vector<2x64xf32>
    %137 = arith.truncf %136 : vector<2x64xf32> to vector<2x64xbf16>
    %c0_149 = arith.constant 0 : index
    %c0_150 = arith.constant 0 : index
    %138 = vector.load %arg13[%c0_149, %c0_150] : memref<64x32xbf16, #tpu.memory_space<vmem>>, vector<64x32xbf16>
    %cst_151 = arith.constant dense<0.000000e+00> : vector<2x32xf32>
    %139 = tpu.matmul %137, %138, %cst_151 {dimension_numbers = #tpu.dot_dimension_numbers<[1], [0], [0], [1], [0, 0, 1, 1], [], []>} : vector<2x64xbf16>, vector<64x32xbf16>, vector<2x32xf32> -> vector<2x32xf32>
    %c0_152 = arith.constant 0 : index
    %c0_153 = arith.constant 0 : index
    %140 = vector.load %arg14[%c0_152, %c0_153] : memref<1x32xf32, #tpu.memory_space<vmem>>, vector<1x32xf32>
    %141 = vector.broadcast %140 : vector<1x32xf32> to vector<2x32xf32>
    %142 = arith.addf %139, %141 : vector<2x32xf32>
    %cst_154 = arith.constant 0.000000e+00 : f32
    %143 = vector.broadcast %cst_154 : f32 to vector<2x32xf32>
    %144 = arith.maximumf %142, %143 : vector<2x32xf32>
    %145 = arith.truncf %144 : vector<2x32xf32> to vector<2x32xbf16>
    %c0_155 = arith.constant 0 : index
    %c0_156 = arith.constant 0 : index
    %146 = vector.load %arg15[%c0_155, %c0_156] : memref<32x128xbf16, #tpu.memory_space<vmem>>, vector<32x128xbf16>
    %cst_157 = arith.constant dense<0.000000e+00> : vector<2x128xf32>
    %147 = tpu.matmul %145, %146, %cst_157 {dimension_numbers = #tpu.dot_dimension_numbers<[1], [0], [0], [1], [0, 0, 1, 1], [], []>} : vector<2x32xbf16>, vector<32x128xbf16>, vector<2x128xf32> -> vector<2x128xf32>
    %c0_158 = arith.constant 0 : index
    %c0_159 = arith.constant 0 : index
    %148 = vector.load %arg16[%c0_158, %c0_159] : memref<1x128xf32, #tpu.memory_space<vmem>>, vector<1x128xf32>
    %149 = vector.broadcast %148 : vector<1x128xf32> to vector<2x128xf32>
    %150 = arith.addf %147, %149 : vector<2x128xf32>
    %c0_160 = arith.constant 0 : index
    %c0_161 = arith.constant 0 : index
    %c0_162 = arith.constant 0 : index
    %151 = vector.load %arg17[%c0_160, %c0_161, %c0_162] : memref<1x2x128xf32, #tpu.memory_space<vmem>>, vector<1x2x128xf32>
    %152 = vector.shape_cast %151 : vector<1x2x128xf32> to vector<2x128xf32>
    %153 = vector.shape_cast %150 : vector<2x128xf32> to vector<1x2x128xf32>
    tpu.vector_store %arg17[%c0_160, %c0_161, %c0_162], %153 {strides = array<i32>} : memref<1x2x128xf32, #tpu.memory_space<vmem>>, vector<1x2x128xf32>,
    return
  }
  func.func @transform_0(%arg0: i32) -> (i32, i32, i32) {
    %c0_i32 = arith.constant 0 : i32
    %c0_i32_0 = arith.constant 0 : i32
    %c0_i32_1 = arith.constant 0 : i32
    return %arg0, %c0_i32, %c0_i32_0 : i32, i32, i32
  }
  func.func @transform_1(%arg0: i32) -> (i32, i32) {
    %c0_i32 = arith.constant 0 : i32
    %c0_i32_0 = arith.constant 0 : i32
    %c0_i32_1 = arith.constant 0 : i32
    return %c0_i32, %c0_i32_0 : i32, i32
  }
  func.func @transform_2(%arg0: i32) -> (i32, i32) {
    %c0_i32 = arith.constant 0 : i32
    %c0_i32_0 = arith.constant 0 : i32
    %c0_i32_1 = arith.constant 0 : i32
    return %c0_i32, %c0_i32_0 : i32, i32
  }
  func.func @transform_3(%arg0: i32) -> (i32, i32) {
    %c0_i32 = arith.constant 0 : i32
    %c0_i32_0 = arith.constant 0 : i32
    %c0_i32_1 = arith.constant 0 : i32
    return %c0_i32, %c0_i32_0 : i32, i32
  }
  func.func @transform_4(%arg0: i32) -> (i32, i32) {
    %c0_i32 = arith.constant 0 : i32
    %c0_i32_0 = arith.constant 0 : i32
    %c0_i32_1 = arith.constant 0 : i32
    return %c0_i32, %c0_i32_0 : i32, i32
  }
  func.func @transform_5(%arg0: i32) -> (i32, i32) {
    %c0_i32 = arith.constant 0 : i32
    %c0_i32_0 = arith.constant 0 : i32
    %c0_i32_1 = arith.constant 0 : i32
    return %c0_i32, %c0_i32_0 : i32, i32
  }
  func.func @transform_6(%arg0: i32) -> (i32, i32) {
    %c0_i32 = arith.constant 0 : i32
    %c0_i32_0 = arith.constant 0 : i32
    %c0_i32_1 = arith.constant 0 : i32
    return %c0_i32, %c0_i32_0 : i32, i32
  }
  func.func @transform_7(%arg0: i32) -> (i32, i32) {
    %c0_i32 = arith.constant 0 : i32
    %c0_i32_0 = arith.constant 0 : i32
    %c0_i32_1 = arith.constant 0 : i32
    return %c0_i32, %c0_i32_0 : i32, i32
  }
  func.func @transform_8(%arg0: i32) -> (i32, i32) {
    %c0_i32 = arith.constant 0 : i32
    %c0_i32_0 = arith.constant 0 : i32
    %c0_i32_1 = arith.constant 0 : i32
    return %c0_i32, %c0_i32_0 : i32, i32
  }
  func.func @transform_9(%arg0: i32) -> (i32, i32) {
    %c0_i32 = arith.constant 0 : i32
    %c0_i32_0 = arith.constant 0 : i32
    %c0_i32_1 = arith.constant 0 : i32
    return %c0_i32, %c0_i32_0 : i32, i32
  }
  func.func @transform_10(%arg0: i32) -> (i32, i32) {
    %c0_i32 = arith.constant 0 : i32
    %c0_i32_0 = arith.constant 0 : i32
    %c0_i32_1 = arith.constant 0 : i32
    return %c0_i32, %c0_i32_0 : i32, i32
  }
  func.func @transform_11(%arg0: i32) -> (i32, i32) {
    %c0_i32 = arith.constant 0 : i32
    %c0_i32_0 = arith.constant 0 : i32
    %c0_i32_1 = arith.constant 0 : i32
    return %c0_i32, %c0_i32_0 : i32, i32
  }
  func.func @transform_12(%arg0: i32) -> (i32, i32) {
    %c0_i32 = arith.constant 0 : i32
    %c0_i32_0 = arith.constant 0 : i32
    %c0_i32_1 = arith.constant 0 : i32
    return %c0_i32, %c0_i32_0 : i32, i32
  }
  func.func @transform_13(%arg0: i32) -> (i32, i32) {
    %c0_i32 = arith.constant 0 : i32
    %c0_i32_0 = arith.constant 0 : i32
    %c0_i32_1 = arith.constant 0 : i32
    return %c0_i32, %c0_i32_0 : i32, i32
  }
  func.func @transform_14(%arg0: i32) -> (i32, i32) {
    %c0_i32 = arith.constant 0 : i32
    %c0_i32_0 = arith.constant 0 : i32
    %c0_i32_1 = arith.constant 0 : i32
    return %c0_i32, %c0_i32_0 : i32, i32
  }
  func.func @transform_15(%arg0: i32) -> (i32, i32) {
    %c0_i32 = arith.constant 0 : i32
    %c0_i32_0 = arith.constant 0 : i32
    %c0_i32_1 = arith.constant 0 : i32
    return %c0_i32, %c0_i32_0 : i32, i32
  }
  func.func @transform_16(%arg0: i32) -> (i32, i32, i32) {
    %c0_i32 = arith.constant 0 : i32
    %c0_i32_0 = arith.constant 0 : i32
    %c0_i32_1 = arith.constant 0 : i32
    return %arg0, %c0_i32, %c0_i32_0 : i32, i32, i32
  }
}

</mosaic_0001>

<bundles_post_ra>
// kernel: cnn_forward.1
= control target key start
LH: loop header
LB: loop body
LE: loop exit
PB: predicated region body
PF: predicated region fallthrough
CT: control target
= control target key end

     0   :  { %s10833_s0 = inlined_call_operand.vmem [shape: bf16[2,256,32], index: 0, kind: input, shape index: {}]   ;;  %s10834_s1 = inlined_call_operand.vmem [shape: bf16[32,32], index: 1, kind: input, shape index: {}]   ;;  %s10835_s2 = inlined_call_operand.vmem [shape: f32[1,32], index: 2, kind: input, shape index: {}]   ;;  %s10836_s3 = inlined_call_operand.vmem [shape: f32[1,32], index: 3, kind: input, shape index: {}]   ;;  %s10837_s4 = inlined_call_operand.vmem [shape: bf16[288,64], index: 4, kind: input, shape index: {}]   ;;  %s10838_s5 = inlined_call_operand.vmem [shape: f32[1,64], index: 5, kind: input, shape index: {}]   ;;  %s10839_s6 = inlined_call_operand.vmem [shape: f32[1,64], index: 6, kind: input, shape index: {}]   ;;  %s10840_s7 = inlined_call_operand.vmem [shape: bf16[576,128], index: 7, kind: input, shape index: {}]   ;;  %s10841_s8 = inlined_call_operand.vmem [shape: f32[1,128], index: 8, kind: input, shape index: {}]   ;;  %s10842_s9 = inlined_call_operand.vmem [shape: f32[1,128], index: 9, kind: input, shape index: {}]   ;;  %s10843_s10 = inlined_call_operand.vmem [shape: bf16[128,64], index: 10, kind: input, shape index: {}]   ;;  %s10844_s11 = inlined_call_operand.vmem [shape: f32[1,64], index: 11, kind: input, shape index: {}]   ;;  %s10845_s12 = inlined_call_operand.vmem [shape: bf16[64,32], index: 12, kind: input, shape index: {}]   ;;  %s10846_s13 = inlined_call_operand.vmem [shape: f32[1,32], index: 13, kind: input, shape index: {}]   ;;  %s10847_s14 = inlined_call_operand.vmem [shape: bf16[32,128], index: 14, kind: input, shape index: {}]   ;;  %s10848_s15 = inlined_call_operand.vmem [shape: f32[1,128], index: 15, kind: input, shape index: {}]   ;;  %s10849_s16 = inlined_call_operand.hbm [shape: f32[1,2,128], index: 16, kind: output, shape index: {}]  }
   0x1   :  { %10851 = sst [smem:[#allocation7_spill]] %s10833_s0 }
   0x2   :  { %v8598_v0 = vld [vmem:[%s10834_s1] sm:$0xff]   ;;  %v8599_v1 = vld [vmem:[%s10834_s1 + $0x8] sm:$0xff]   ;;  %vm55_vm0 = vcmask 261120   ;;  %s10852_s27 = sld [smem:[#allocation7_spill]] }
   0x3   :  { %8171 = vmatprep.subr.bf16.mxu0 %v8598_v0 }
   0x4   :  { %8172 = vmatpush3.bf16.msra.mxu0 %v8598_v0 }
   0x5   :  { %8173 = vmatprep.subr.bf16.mxu0 %v8599_v1 }
   0x8   :  { %v8600_v2 = vld [vmem:[%s10852_s27] sm:$0xff]   ;;  %v8601_v3 = vld [vmem:[%s10852_s27 + $0x8] sm:$0xff]   ;;  %8174 = vmatpush3.bf16.msra.mxu0 %v8599_v1  ;;  %v8602_v4 = vld [vmem:[%s10852_s27 + $0x10] sm:$0xff]  }
   0x9   :  { %8175 = vmatprep.mubr.msk.bf16.mxu0 %vm55_vm0, %v8600_v2  ;;  %v8603_v5 = vld [vmem:[%s10852_s27 + $0x18] sm:$0xff]   ;;  %v8604_v6 = vld [vmem:[%s10852_s27 + $0x20] sm:$0xff]   ;;  %v8605_v7 = vld [vmem:[%s10852_s27 + $0x28] sm:$0xff]  }
   0xa   :  { %v8606_v8 = vld [vmem:[%s10852_s27 + $0x30] sm:$0xff]   ;;  %v8607_v9 = vld [vmem:[%s10852_s27 + $0x38] sm:$0xff]   ;;  %v8608_v10 = vld [vmem:[%s10852_s27 + $0x40] sm:$0xff]  }
   0xb   :  { %8176 = vmatmul.mubr.msk.bf16.vlgmr.msra.gmra.mrb[0].mxu0 %vm55_vm0, %v8601_v3  ;;  %v8609_v11 = vld [vmem:[%s10852_s27 + $0x48] sm:$0xff]   ;;  %v8610_v12 = vld [vmem:[%s10852_s27 + $0x50] sm:$0xff]   ;;  %v8611_v13 = vld [vmem:[%s10852_s27 + $0x58] sm:$0xff]  }
   0xc   :  { %8179 = vmatprep.mubr.msk.bf16.mxu0 %vm55_vm0, %v8602_v4  ;;  %v8612_v14 = vld [vmem:[%s10852_s27 + $0x60] sm:$0xff]   ;;  %v8613_v15 = vld [vmem:[%s10852_s27 + $0x68] sm:$0xff]   ;;  %v8614_v16 = vld [vmem:[%s10852_s27 + $0x70] sm:$0xff]  }
   0xd   :  { %v8615_v17 = vld [vmem:[%s10852_s27 + $0x78] sm:$0xff]   ;;  %v8616_v18 = vld [vmem:[%s10852_s27 + $0x80] sm:$0xff]   ;;  %v8617_v19 = vld [vmem:[%s10852_s27 + $0x88] sm:$0xff]  }
   0xe   :  { %v8618_v20 = vld [vmem:[%s10852_s27 + $0x90] sm:$0xff]   ;;  %v8619_v21 = vld [vmem:[%s10852_s27 + $0x98] sm:$0xff]   ;;  %v8620_v22 = vld [vmem:[%s10852_s27 + $0xa0] sm:$0xff]  }
  0x13   :  { %8180 = vmatmul.mubr.msk.bf16.gmra.mrb[4].mxu0 %vm55_vm0, %v8603_v5 }
  0x14   :  { %8183 = vmatprep.mubr.msk.bf16.mxu0 %vm55_vm0, %v8604_v6 }
  0x1b   :  { %8184 = vmatmul.mubr.msk.bf16.gmra.mrb[8].mxu0 %vm55_vm0, %v8605_v7 }
  0x1c   :  { %8187 = vmatprep.mubr.msk.bf16.mxu0 %vm55_vm0, %v8606_v8 }
  0x23   :  { %8188 = vmatmul.mubr.msk.bf16.gmra.mrb[12].mxu0 %vm55_vm0, %v8607_v9 }
  0x24   :  { %8191 = vmatprep.mubr.msk.bf16.mxu0 %vm55_vm0, %v8608_v10 }
  0x2b   :  { %8192 = vmatmul.mubr.msk.bf16.gmra.mrb[16].mxu0 %vm55_vm0, %v8609_v11 }
  0x2c   :  { %8195 = vmatprep.mubr.msk.bf16.mxu0 %vm55_vm0, %v8610_v12 }
  0x33   :  { %8196 = vmatmul.mubr.msk.bf16.gmra.mrb[20].mxu0 %vm55_vm0, %v8611_v13 }
  0x34   :  { %8199 = vmatprep.mubr.msk.bf16.mxu0 %vm55_vm0, %v8612_v14 }
  0x3b   :  { %8200 = vmatmul.mubr.msk.bf16.gmra.mrb[24].mxu0 %vm55_vm0, %v8613_v15 }
  0x3c   :  { %8203 = vmatprep.mubr.msk.bf16.mxu0 %vm55_vm0, %v8614_v16 }
  0x43   :  { %8204 = vmatmul.mubr.msk.bf16.gmra.mrb[28].mxu0 %vm55_vm0, %v8615_v17 }
  0x44   :  { %8207 = vmatprep.mubr.msk.bf16.mxu0 %vm55_vm0, %v8616_v18 }
  0x4b   :  { %8208 = vmatmul.mubr.msk.bf16.gmra.mrb[32].mxu0 %vm55_vm0, %v8617_v19 }
  0x4c   :  { %8211 = vmatprep.mubr.msk.bf16.mxu0 %vm55_vm0, %v8618_v20 }
  0x4d   :  { %21 = vsyncpa [#allocation5], 0  ;;  %v8621_v23 = vld [vmem:[%s10852_s27 + $0xa8] sm:$0xff]   ;;  %v8622_v24 = vld [vmem:[%s10852_s27 + $0xb0] sm:$0xff]   ;;  %vm57_vm1 = vcmask 254976   ;;  %v8764_v34 = vmov 0.0   ;;  %v1037_v37 = vlaneseq }
  0x4e   :  { %v8623_v25 = vld [vmem:[%s10852_s27 + $0xb8] sm:$0xff]   ;;  %v8624_v26 = vld [vmem:[%s10852_s27 + $0xc0] sm:$0xff]   ;;  %v8625_v27 = vld [vmem:[%s10852_s27 + $0xc8] sm:$0xff]   ;;  %56 = vst.msk [vmem:[#allocation2] sm:$0xff] %vm55_vm0, %v8764_v34  ;;  %vm66_vm2 = vcmask 253952   ;;  %vm4169_vm3 = vcmask 1041409  }
  0x4f   :  { %v8626_v28 = vld [vmem:[%s10852_s27 + $0xd0] sm:$0xff]   ;;  %v8627_v29 = vld [vmem:[%s10852_s27 + $0xd8] sm:$0xff]   ;;  %v8628_v30 = vld [vmem:[%s10852_s27 + $0xe0] sm:$0xff]   ;;  %58 = vst.msk [vmem:[#allocation2 + $0x8] sm:$0x3] %vm57_vm1, %v8764_v34  ;;  %v1038_v40 = vshrl.u32 %v1037_v37, 7 }
  0x50   :  { %v8629_v31 = vld [vmem:[%s10852_s27 + $0xe8] sm:$0xff]   ;;  %v8630_v32 = vld [vmem:[%s10852_s27 + $0xf0] sm:$0xff]   ;;  %v8631_v33 = vld [vmem:[%s10852_s27 + $0xf8] sm:$0xff]   ;;  %59 = vst.msk [vmem:[#allocation2 + $0xa0] sm:$0xff] %vm55_vm0, %v8764_v34  ;;  %v8765_v35 = vmov 1983009808  }
  0x51   :  { %60 = vst.msk [vmem:[#allocation2 + $0xa8] sm:$0x3] %vm57_vm1, %v8764_v34  ;;  %63 = vst.msk [vmem:[#allocation2 + $0x98] sm:$0x3] %vm57_vm1, %v8764_v34  ;;  %v1035_v36 = vunpack.c.l.s4 %v8765_v35  ;;  %v9085_v38 = vld [vmem:[%s10835_s2] ss:$0 sm:$0xff] }
  0x52   :  { %62 = vst.msk [vmem:[#allocation2 + $0x90] sm:$0xff] %vm55_vm0, %v8764_v34  ;;  %64 = vst.msk [vmem:[#allocation2 + $0x130] sm:$0xff] %vm55_vm0, %v8764_v34  ;;  %v9090_v42 = vld [vmem:[%s10836_s3] ss:$0 sm:$0xff]  ;;  %v9104_v62 = vsub.s32 0, %v1038_v40  ;;  %vm4171_vm4 = vcmask 1042434  }
  0x53   :  { %8212 = vmatmul.mubr.msk.bf16.gmra.mrb[36].mxu0 %vm55_vm0, %v8619_v21  ;;  %65 = vst.msk [vmem:[#allocation2 + $0x138] sm:$0x3] %vm57_vm1, %v8764_v34  ;;  %v1036_v39 = vunpack.c.0.s8 %v1035_v36  ;;  %vm4173_vm5 = vcmask 1043459   ;;  %vm4175_vm6 = vcmask 1044484   ;;  %vm4177_vm7 = vcmask 1045509   ;;  %s8766_s17 = smov 64  }
  0x54   :  { %8215 = vmatprep.mubr.msk.bf16.mxu0 %vm55_vm0, %v8620_v22  ;;  %87 = vst.msk [vmem:[#allocation2 + $0x9] sm:$0x1] %vm66_vm2, %v8764_v34  ;;  %88 = vst.msk [vmem:[#allocation2 + $0x19] sm:$0x1] %vm66_vm2, %v8764_v34  ;;  %vm4179_vm8 = vcmask 1046534   ;;  %vm4181_vm9 = vcmask 1047559  }
  0x55   :  { %67 = vst.msk [vmem:[#allocation2] sm:$0x1] %vm66_vm2, %v8764_v34  ;;  %68 = vst.msk [vmem:[#allocation2 + $0x10] sm:$0x1] %vm66_vm2, %v8764_v34  ;;  %v9095_v48 = vsub.s32 %v1036_v39, %v1038_v40  ;;  %s8767_s18 = smov 32   ;;  %s8768_s19 = smov 96  }
  0x56   :  { %69 = vst.msk [vmem:[#allocation2 + $0x20] sm:$0x1] %vm66_vm2, %v8764_v34  ;;  %70 = vst.msk [vmem:[#allocation2 + $0x30] sm:$0x1] %vm66_vm2, %v8764_v34  ;;  %vm4866_vm10 = vcmask 523264   ;;  %vm4883_vm11 = vcmask 785408  }
  0x57   :  { %71 = vst.msk [vmem:[#allocation2 + $0x40] sm:$0x1] %vm66_vm2, %v8764_v34  ;;  %72 = vst.msk [vmem:[#allocation2 + $0x50] sm:$0x1] %vm66_vm2, %v8764_v34  ;;  %vm113_vm12 = vcmask 516096   ;;  %vm107_vm13 = vcmask 521216  }
  0x58   :  { %73 = vst.msk [vmem:[#allocation2 + $0x60] sm:$0x1] %vm66_vm2, %v8764_v34  ;;  %74 = vst.msk [vmem:[#allocation2 + $0x70] sm:$0x1] %vm66_vm2, %v8764_v34  ;;  %vm6229_vm14 = vcmask 519168   ;;  %vm8769_vm15 = vmmov 0  }
  0x59   :  { %75 = vst.msk [vmem:[#allocation2 + $0x80] sm:$0x1] %vm66_vm2, %v8764_v34  ;;  %78 = vst.msk [vmem:[#allocation2 + $0xb0] sm:$0x1] %vm66_vm2, %v8764_v34  ;;  %vm7188_vm1 = vcmask 1043456   ;;  %s8770_s24 = smov [#allocation4]  }
  0x5a   :  { %79 = vst.msk [vmem:[#allocation2 + $0xc0] sm:$0x1] %vm66_vm2, %v8764_v34  ;;  %80 = vst.msk [vmem:[#allocation2 + $0xd0] sm:$0x1] %vm66_vm2, %v8764_v34 }
  0x5b   :  { %8216 = vmatmul.mubr.msk.bf16.gmra.mrb[40].mxu0 %vm55_vm0, %v8621_v23  ;;  %81 = vst.msk [vmem:[#allocation2 + $0xe0] sm:$0x1] %vm66_vm2, %v8764_v34  ;;  %82 = vst.msk [vmem:[#allocation2 + $0xf0] sm:$0x1] %vm66_vm2, %v8764_v34 }
  0x5c   :  { %8219 = vmatprep.mubr.msk.bf16.mxu0 %vm55_vm0, %v8622_v24  ;;  %83 = vst.msk [vmem:[#allocation2 + $0x100] sm:$0x1] %vm66_vm2, %v8764_v34  ;;  %84 = vst.msk [vmem:[#allocation2 + $0x110] sm:$0x1] %vm66_vm2, %v8764_v34 }
  0x5d   :  { %85 = vst.msk [vmem:[#allocation2 + $0x120] sm:$0x1] %vm66_vm2, %v8764_v34  ;;  %89 = vst.msk [vmem:[#allocation2 + $0x29] sm:$0x1] %vm66_vm2, %v8764_v34 }
  0x5e   :  { %90 = vst.msk [vmem:[#allocation2 + $0x39] sm:$0x1] %vm66_vm2, %v8764_v34  ;;  %91 = vst.msk [vmem:[#allocation2 + $0x49] sm:$0x1] %vm66_vm2, %v8764_v34 }
  0x5f   :  { %92 = vst.msk [vmem:[#allocation2 + $0x59] sm:$0x1] %vm66_vm2, %v8764_v34  ;;  %93 = vst.msk [vmem:[#allocation2 + $0x69] sm:$0x1] %vm66_vm2, %v8764_v34 }
  0x60   :  { %94 = vst.msk [vmem:[#allocation2 + $0x79] sm:$0x1] %vm66_vm2, %v8764_v34  ;;  %95 = vst.msk [vmem:[#allocation2 + $0x89] sm:$0x1] %vm66_vm2, %v8764_v34 }
  0x61   :  { %98 = vst.msk [vmem:[#allocation2 + $0xb9] sm:$0x1] %vm66_vm2, %v8764_v34  ;;  %99 = vst.msk [vmem:[#allocation2 + $0xc9] sm:$0x1] %vm66_vm2, %v8764_v34 }
  0x62   :  { %100 = vst.msk [vmem:[#allocation2 + $0xd9] sm:$0x1] %vm66_vm2, %v8764_v34  ;;  %101 = vst.msk [vmem:[#allocation2 + $0xe9] sm:$0x1] %vm66_vm2, %v8764_v34 }
  0x63   :  { %8220 = vmatmul.mubr.msk.bf16.gmra.mrb[44].mxu0 %vm55_vm0, %v8623_v25  ;;  %102 = vst.msk [vmem:[#allocation2 + $0xf9] sm:$0x1] %vm66_vm2, %v8764_v34  ;;  %103 = vst.msk [vmem:[#allocation2 + $0x109] sm:$0x1] %vm66_vm2, %v8764_v34 }
  0x64   :  { %8223 = vmatprep.mubr.msk.bf16.mxu0 %vm55_vm0, %v8624_v26  ;;  %104 = vst.msk [vmem:[#allocation2 + $0x119] sm:$0x1] %vm66_vm2, %v8764_v34  ;;  %105 = vst.msk [vmem:[#allocation2 + $0x129] sm:$0x1] %vm66_vm2, %v8764_v34 }
  0x65   :  { %76 = vst.msk [vmem:[#allocation2 + $0x90] sm:$0x1] %vm66_vm2, %v8764_v34  ;;  %77 = vst.msk [vmem:[#allocation2 + $0xa0] sm:$0x1] %vm66_vm2, %v8764_v34 }
  0x66   :  { %86 = vst.msk [vmem:[#allocation2 + $0x130] sm:$0x1] %vm66_vm2, %v8764_v34  ;;  %96 = vst.msk [vmem:[#allocation2 + $0x99] sm:$0x1] %vm66_vm2, %v8764_v34 }
  0x67   :  { %97 = vst.msk [vmem:[#allocation2 + $0xa9] sm:$0x1] %vm66_vm2, %v8764_v34  ;;  %106 = vst.msk [vmem:[#allocation2 + $0x139] sm:$0x1] %vm66_vm2, %v8764_v34 }
  0x68   :  { %115 = vst.msk [vmem:[#allocation3 + $0x8] sm:$0x1] %vm113_vm12, %v8764_v34  ;;  %116 = vst.msk [vmem:[#allocation3 + $0x10] sm:$0x1] %vm113_vm12, %v8764_v34 }
  0x69   :  { %117 = vst.msk [vmem:[#allocation3 + $0x18] sm:$0x1] %vm113_vm12, %v8764_v34  ;;  %118 = vst.msk [vmem:[#allocation3 + $0x20] sm:$0x1] %vm113_vm12, %v8764_v34 }
  0x6a   :  { %121 = vst.msk [vmem:[#allocation3 + $0x38] sm:$0x1] %vm113_vm12, %v8764_v34  ;;  %122 = vst.msk [vmem:[#allocation3 + $0x40] sm:$0x1] %vm113_vm12, %v8764_v34 }
  0x6b   :  { %8224 = vmatmul.mubr.msk.bf16.gmra.mrb[48].mxu0 %vm55_vm0, %v8625_v27  ;;  %123 = vst.msk [vmem:[#allocation3 + $0x48] sm:$0x1] %vm113_vm12, %v8764_v34  ;;  %124 = vst.msk [vmem:[#allocation3 + $0x50] sm:$0x1] %vm113_vm12, %v8764_v34 }
  0x6c   :  { %8227 = vmatprep.mubr.msk.bf16.mxu0 %vm55_vm0, %v8626_v28  ;;  %127 = vst.msk [vmem:[#allocation3 + $0xd] sm:$0x1] %vm113_vm12, %v8764_v34  ;;  %128 = vst.msk [vmem:[#allocation3 + $0x15] sm:$0x1] %vm113_vm12, %v8764_v34 }
  0x6d   :  { %129 = vst.msk [vmem:[#allocation3 + $0x1d] sm:$0x1] %vm113_vm12, %v8764_v34  ;;  %130 = vst.msk [vmem:[#allocation3 + $0x25] sm:$0x1] %vm113_vm12, %v8764_v34 }
  0x6e   :  { %133 = vst.msk [vmem:[#allocation3 + $0x3d] sm:$0x1] %vm113_vm12, %v8764_v34  ;;  %134 = vst.msk [vmem:[#allocation3 + $0x45] sm:$0x1] %vm113_vm12, %v8764_v34 }
  0x6f   :  { %135 = vst.msk [vmem:[#allocation3 + $0x4d] sm:$0x1] %vm113_vm12, %v8764_v34  ;;  %136 = vst.msk [vmem:[#allocation3 + $0x55] sm:$0x1] %vm113_vm12, %v8764_v34 }
  0x70   :  { %108 = vst.msk [vmem:[#allocation3] sm:$0x3f] %vm107_vm13, %v8764_v34  ;;  %109 = vst.msk [vmem:[#allocation3 + $0x30] sm:$0x3f] %vm107_vm13, %v8764_v34 }
  0x71   :  { %111 = vst.msk [vmem:[#allocation3 + $0x28] sm:$0x3f] %vm107_vm13, %v8764_v34  ;;  %112 = vst.msk [vmem:[#allocation3 + $0x58] sm:$0x3f] %vm107_vm13, %v8764_v34 }
  0x72   :  { %114 = vst.msk [vmem:[#allocation3] sm:$0x1] %vm113_vm12, %v8764_v34  ;;  %126 = vst.msk [vmem:[#allocation3 + $0x5] sm:$0x1] %vm113_vm12, %v8764_v34 }
  0x73   :  { %8228 = vmatmul.mubr.msk.bf16.gmra.mrb[52].mxu0 %vm55_vm0, %v8627_v29  ;;  %119 = vst.msk [vmem:[#allocation3 + $0x28] sm:$0x1] %vm113_vm12, %v8764_v34  ;;  %120 = vst.msk [vmem:[#allocation3 + $0x30] sm:$0x1] %vm113_vm12, %v8764_v34 }
  0x74   :  { %8231 = vmatprep.mubr.msk.bf16.mxu0 %vm55_vm0, %v8628_v30  ;;  %125 = vst.msk [vmem:[#allocation3 + $0x58] sm:$0x1] %vm113_vm12, %v8764_v34  ;;  %131 = vst.msk [vmem:[#allocation3 + $0x2d] sm:$0x1] %vm113_vm12, %v8764_v34 }
  0x75   :  { %132 = vst.msk [vmem:[#allocation3 + $0x35] sm:$0x1] %vm113_vm12, %v8764_v34  ;;  %137 = vst.msk [vmem:[#allocation3 + $0x5d] sm:$0x1] %vm113_vm12, %v8764_v34 }
  0x7b   :  { %8232 = vmatmul.mubr.msk.bf16.gmra.mrb[56].mxu0 %vm55_vm0, %v8629_v31 }
  0x7c   :  { %8235 = vmatprep.mubr.msk.bf16.mxu0 %vm55_vm0, %v8630_v32 }
  0x83   :  { %8236 = vmatmul.mubr.msk.bf16.gmra.mrb[60].mxu0 %vm55_vm0, %v8631_v33 }
  0xde   :  { %v8177_v41 = vpop.f32.mrb[0].mxu0 }
  0xdf   :  { %v772_v43 = vmul.f32 %v8177_v41, %v9085_v38  ;;  %v508_v44 = vpop.f32.mrb[1].mxu0 }
  0xe0   :  { %v770_v45 = vmul.f32 %v9085_v38, %v508_v44  ;;  %v8178_v46 = vpop.f32.mrb[2].mxu0 }
  0xe1   :  { %v843_v47 = vadd.f32 %v9090_v42, %v772_v43  ;;  %v773_v49 = vmul.f32 %v8178_v46, %v9085_v38  ;;  %v511_v50 = vpop.f32.mrb[3].mxu0 }
  0xe2   :  { %v841_v51 = vadd.f32 %v9090_v42, %v770_v45  ;;  %v771_v52 = vmul.f32 %v9085_v38, %v511_v50 }
  0xe3   :  { %v907_v53 = vmax.f32 %v843_v47, 0.0  ;;  %v844_v54 = vadd.f32 %v9090_v42, %v773_v49 }
  0xe4   :  { %v905_v55 = vmax.f32 %v841_v51, 0.0  ;;  %v842_v56 = vadd.f32 %v9090_v42, %v771_v52 }
  0xe5   :  { %v1067_v57 = vcombine.high %v907_v53, %v907_v53  ;;  %v1074_v58 = vrot.slane %v907_v53, %v9095_v48  ;;  %v908_v59 = vmax.f32 %v844_v54, 0.0 }
  0xe6   :  { %v1033_v60 = vcombine.high %v905_v55, %v905_v55  ;;  %v1040_v61 = vrot.slane %v905_v55, %v9095_v48  ;;  %v906_v63 = vmax.f32 %v842_v56, 0.0  ;;  %v8181_v0 = vpop.f32.mrb[4].mxu0 }
  0xe7   :  { %v1081_v1 = vrot.slane %v1067_v57, %v9095_v48  ;;  %v1082_v2 = vcombine.high %v1074_v58, %v1074_v58  ;;  %v7569_v3 = vrot.slane %v1074_v58, 9  ;;  %v1084_v4 = vcombine.high %v908_v59, %v908_v59  ;;  %v524_v5 = vpop.f32.mrb[5].mxu0 }
  0xe8   :  { %v1047_v6 = vrot.slane %v1033_v60, %v9095_v48  ;;  %v1048_v7 = vcombine.high %v1040_v61, %v1040_v61  ;;  %v7561_v8 = vrot.slane %v1040_v61, 9  ;;  %v1091_v9 = vrot.slane %v908_v59, %v9095_v48  ;;  %v8182_v10 = vpop.f32.mrb[6].mxu0 }
  0xe9   :  { %v1083_v11 = vcombine.high %v1081_v1, %v1081_v1  ;;  %v7570_v12 = vrot.slane %v1082_v2, 9  ;;  %v7571_v13 = vrot.slane %v1081_v1, 9  ;;  %v3153_v14 = vmax.f32 %v1074_v58, %v7569_v3  ;;  %v527_v15 = vpop.f32.mrb[7].mxu0 }
  0xea   :  { %v1049_v16 = vcombine.high %v1047_v6, %v1047_v6  ;;  %v7562_v17 = vrot.slane %v1048_v7, 9  ;;  %v7563_v18 = vrot.slane %v1047_v6, 9  ;;  %v3145_v19 = vmax.f32 %v1040_v61, %v7561_v8 }
  0xeb   :  { %v7572_v20 = vrot.slane %v1083_v11, 9  ;;  %v3154_v21 = vmax.f32 %v1082_v2, %v7570_v12  ;;  %v3155_v22 = vmax.f32 %v1081_v1, %v7571_v13  ;;  %v1098_v23 = vrot.slane %v1084_v4, %v9095_v48 }
  0xec   :  { %v7564_v24 = vrot.slane %v1049_v16, 9  ;;  %v3146_v25 = vmax.f32 %v1048_v7, %v7562_v17  ;;  %v3147_v26 = vmax.f32 %v1047_v6, %v7563_v18  ;;  %v3401_v27 = vmax.f32 %v3145_v19, %v3153_v14 }
  0xed   :  { %v3156_v28 = vmax.f32 %v1083_v11, %v7572_v20  ;;  %v1099_v29 = vcombine.high %v1091_v9, %v1091_v9  ;;  %v1100_v30 = vcombine.high %v1098_v23, %v1098_v23  ;;  %v7573_v31 = vrot.slane %v1091_v9, 9 }
  0xee   :  { %v3148_v32 = vmax.f32 %v1049_v16, %v7564_v24  ;;  %v3402_v33 = vmax.f32 %v3146_v25, %v3154_v21  ;;  %v3403_v35 = vmax.f32 %v3147_v26, %v3155_v22  ;;  %v3660_v36 = vrot.slane %v3401_v27, %v9104_v62  ;;  %v9111_v37 = vpop.f32.mrb[8].mxu0 }
  0xef   :  { %v7574_v39 = vrot.slane %v1099_v29, 9  ;;  %v7575_v40 = vrot.slane %v1098_v23, 9  ;;  %v7576_v41 = vrot.slane %v1100_v30, 9  ;;  %v3157_v43 = vmax.f32 %v1091_v9, %v7573_v31  ;;  %v9113_v44 = vpop.f32.mrb[9].mxu0 }
  0xf0   :  { %v3404_v45 = vmax.f32 %v3148_v32, %v3156_v28  ;;  %v3664_v46 = vrot.slane %v3402_v33, %v9104_v62  ;;  %v3668_v47 = vrot.slane %v3403_v35, %v9104_v62  ;;  %v1050_v49 = vcombine.high %v906_v63, %v906_v63  ;;  %v9117_v50 = vpop.f32.mrb[10].mxu0 }
  0xf1   :  { %v3158_v51 = vmax.f32 %v1099_v29, %v7574_v39  ;;  %v3159_v52 = vmax.f32 %v1098_v23, %v7575_v40  ;;  %v3160_v53 = vmax.f32 %v1100_v30, %v7576_v41  ;;  %v1057_v54 = vrot.slane %v906_v63, %v9095_v48  ;;  %v9120_v55 = vpop.f32.mrb[11].mxu0 }
  0xf2   :  { %v3672_v56 = vrot.slane %v3404_v45, %v9104_v62  ;;  %v4170_v57 = vsel %vm4169_vm3, %v3664_v46, %v3660_v36  ;;  %v1064_v58 = vrot.slane %v1050_v49, %v9095_v48  ;;  %v776_v59 = vmul.f32 %v8181_v0, %v9085_v38 }
  0xf3   :  { %v4172_v60 = vsel %vm4171_vm4, %v3668_v47, %v4170_v57  ;;  %v1065_v61 = vcombine.high %v1057_v54, %v1057_v54  ;;  %v7565_v1 = vrot.slane %v1057_v54, 9  ;;  %v774_v2 = vmul.f32 %v9085_v38, %v524_v5 }
  0xf4   :  { %v1066_v3 = vcombine.high %v1064_v58, %v1064_v58  ;;  %v7567_v63 = vrot.slane %v1064_v58, 9  ;;  %v4174_v4 = vsel %vm4173_vm5, %v3672_v56, %v4172_v60  ;;  %v847_v6 = vadd.f32 %v9090_v42, %v776_v59 }
  0xf5   :  { %v7566_v7 = vrot.slane %v1065_v61, 9  ;;  %v3149_v8 = vmax.f32 %v1057_v54, %v7565_v1  ;;  %v845_v9 = vadd.f32 %v9090_v42, %v774_v2  ;;  %v777_v0 = vmul.f32 %v8182_v10, %v9085_v38 }
  0xf6   :  { %v7568_v11 = vrot.slane %v1066_v3, 9  ;;  %v3151_v12 = vmax.f32 %v1064_v58, %v7567_v63  ;;  %v911_v13 = vmax.f32 %v847_v6, 0.0  ;;  %v775_v14 = vmul.f32 %v9085_v38, %v527_v15  ;;  %v9133_v16 = vpop.f32.mrb[12].mxu0 }
  0xf7   :  { %v3150_v5 = vmax.f32 %v1065_v61, %v7566_v7  ;;  %v3405_v17 = vmax.f32 %v3149_v8, %v3157_v43  ;;  %v909_v18 = vmax.f32 %v845_v9, 0.0  ;;  %v848_v19 = vadd.f32 %v9090_v42, %v777_v0  ;;  %v9136_v20 = vpop.f32.mrb[13].mxu0 }
  0xf8   :  { %v3152_v21 = vmax.f32 %v1066_v3, %v7568_v11  ;;  %v3407_v22 = vmax.f32 %v3151_v12, %v3159_v52  ;;  %v1135_v23 = vcombine.high %v911_v13, %v911_v13  ;;  %v1142_v24 = vrot.slane %v911_v13, %v9095_v48  ;;  %v9139_v10 = vpop.f32.mrb[14].mxu0 }
  0xf9   :  { %v3406_v25 = vmax.f32 %v3150_v5, %v3158_v51  ;;  %v3676_v26 = vrot.slane %v3405_v17, %v9104_v62  ;;  %v1101_v15 = vcombine.high %v909_v18, %v909_v18  ;;  %v1108_v27 = vrot.slane %v909_v18, %v9095_v48  ;;  %v9143_v28 = vpop.f32.mrb[15].mxu0 }
  0xfa   :  { %v3408_v29 = vmax.f32 %v3152_v21, %v3160_v53  ;;  %v3684_v30 = vrot.slane %v3407_v22, %v9104_v62  ;;  %v1149_v31 = vrot.slane %v1135_v23, %v9095_v48  ;;  %v1150_v32 = vcombine.high %v1142_v24, %v1142_v24 }
  0xfb   :  { %v3680_v33 = vrot.slane %v3406_v25, %v9104_v62  ;;  %v4176_v35 = vsel %vm4175_vm6, %v3676_v26, %v4174_v4  ;;  %v7585_v36 = vrot.slane %v1142_v24, 9  ;;  %v1115_v39 = vrot.slane %v1101_v15, %v9095_v48 }
  0xfc   :  { %v3688_v40 = vrot.slane %v3408_v29, %v9104_v62  ;;  %v1151_v41 = vcombine.high %v1149_v31, %v1149_v31  ;;  %v7586_v43 = vrot.slane %v1150_v32, 9  ;;  %v7587_v45 = vrot.slane %v1149_v31, 9 }
  0xfd   :  { %v4178_v46 = vsel %vm4177_vm7, %v3680_v33, %v4176_v35  ;;  %v3169_v47 = vmax.f32 %v1142_v24, %v7585_v36  ;;  %v1116_v49 = vcombine.high %v1108_v27, %v1108_v27  ;;  %v1117_v51 = vcombine.high %v1115_v39, %v1115_v39 }
  0xfe   :  { %v4180_v52 = vsel %vm4179_vm8, %v3684_v30, %v4178_v46  ;;  %v7588_v53 = vrot.slane %v1151_v41, 9  ;;  %v3170_v54 = vmax.f32 %v1150_v32, %v7586_v43  ;;  %v3171_v56 = vmax.f32 %v1149_v31, %v7587_v45  ;;  %v9153_v57 = vpop.f32.mrb[16].mxu0 }
  0xff   :  { %v4182_v58 = vsel %vm4181_vm9, %v3688_v40, %v4180_v52  ;;  %v7577_v59 = vrot.slane %v1108_v27, 9  ;;  %v7578_v60 = vrot.slane %v1116_v49, 9  ;;  %v7579_v61 = vrot.slane %v1115_v39, 9  ;;  %v9156_v1 = vpop.f32.mrb[17].mxu0 }
 0x100   :  { %4305 = vst.msk [vmem:[#allocation2 + $0x11] sm:$0xff] %vm55_vm0, %v4182_v58  ;;  %v3172_v2 = vmax.f32 %v1151_v41, %v7588_v53  ;;  %v7580_v3 = vrot.slane %v1117_v51, 9  ;;  %v912_v63 = vmax.f32 %v848_v19, 0.0  ;;  %v846_v4 = vadd.f32 %v9090_v42, %v775_v14  ;;  %v9160_v6 = vpop.f32.mrb[18].mxu0 }
 0x101   :  { %v3161_v7 = vmax.f32 %v1108_v27, %v7577_v59  ;;  %v3162_v8 = vmax.f32 %v1116_v49, %v7578_v60  ;;  %v3163_v9 = vmax.f32 %v1115_v39, %v7579_v61  ;;  %v780_v0 = vmul.f32 %v9111_v37, %v9085_v38  ;;  %v9164_v11 = vpop.f32.mrb[19].mxu0 }
 0x102   :  { %v3164_v12 = vmax.f32 %v1117_v51, %v7580_v3  ;;  %v1152_v13 = vcombine.high %v912_v63, %v912_v63  ;;  %v1159_v5 = vrot.slane %v912_v63, %v9095_v48  ;;  %v910_v17 = vmax.f32 %v846_v4, 0.0 }
 0x103   :  { %v3409_v18 = vmax.f32 %v3161_v7, %v3169_v47  ;;  %v3410_v21 = vmax.f32 %v3162_v8, %v3170_v54  ;;  %v3411_v19 = vmax.f32 %v3163_v9, %v3171_v56  ;;  %v851_v14 = vadd.f32 %v9090_v42, %v780_v0 }
 0x104   :  { %v3412_v22 = vmax.f32 %v3164_v12, %v3172_v2  ;;  %v1166_v23 = vrot.slane %v1152_v13, %v9095_v48  ;;  %v1167_v24 = vcombine.high %v1159_v5, %v1159_v5  ;;  %v7589_v25 = vrot.slane %v1159_v5, 9 }
 0x105   :  { %v3692_v26 = vrot.slane %v3409_v18, %v9104_v62  ;;  %v3696_v37 = vrot.slane %v3410_v21, %v9104_v62  ;;  %v3700_v15 = vrot.slane %v3411_v19, %v9104_v62  ;;  %v1118_v27 = vcombine.high %v910_v17, %v910_v17 }
 0x106   :  { %v3704_v29 = vrot.slane %v3412_v22, %v9104_v62  ;;  %v1168_v30 = vcombine.high %v1166_v23, %v1166_v23  ;;  %v7590_v31 = vrot.slane %v1167_v24, 9  ;;  %v7591_v32 = vrot.slane %v1166_v23, 9  ;;  %v9173_v33 = vpop.f32.mrb[20].mxu0 }
 0x107   :  { %v4183_v35 = vsel %vm4169_vm3, %v3696_v37, %v3692_v26  ;;  %v3173_v36 = vmax.f32 %v1159_v5, %v7589_v25  ;;  %v1125_v39 = vrot.slane %v910_v17, %v9095_v48  ;;  %v1132_v40 = vrot.slane %v1118_v27, %v9095_v48  ;;  %v9178_v41 = vpop.f32.mrb[21].mxu0 }
 0x108   :  { %v4184_v43 = vsel %vm4171_vm4, %v3700_v15, %v4183_v35  ;;  %v7592_v45 = vrot.slane %v1168_v30, 9  ;;  %v3174_v46 = vmax.f32 %v1167_v24, %v7590_v31  ;;  %v3175_v47 = vmax.f32 %v1166_v23, %v7591_v32  ;;  %v9181_v49 = vpop.f32.mrb[22].mxu0 }
 0x109   :  { %v1133_v51 = vcombine.high %v1125_v39, %v1125_v39  ;;  %v1134_v52 = vcombine.high %v1132_v40, %v1132_v40  ;;  %v7581_v53 = vrot.slane %v1125_v39, 9  ;;  %v7583_v54 = vrot.slane %v1132_v40, 9  ;;  %v9183_v56 = vpop.f32.mrb[23].mxu0 }
 0x10a   :  { %v3176_v58 = vmax.f32 %v1168_v30, %v7592_v45  ;;  %v4185_v59 = vsel %vm4173_vm5, %v3704_v29, %v4184_v43  ;;  %v915_v60 = vmax.f32 %v851_v14, 0.0  ;;  %v778_v61 = vmul.f32 %v9085_v38, %v9113_v44 }
 0x10b   :  { %v7582_v2 = vrot.slane %v1133_v51, 9  ;;  %v7584_v3 = vrot.slane %v1134_v52, 9  ;;  %v3165_v63 = vmax.f32 %v1125_v39, %v7581_v53  ;;  %v3167_v4 = vmax.f32 %v1132_v40, %v7583_v54 }
 0x10c   :  { %v1203_v7 = vcombine.high %v915_v60, %v915_v60  ;;  %v1210_v8 = vrot.slane %v915_v60, %v9095_v48  ;;  %v849_v9 = vadd.f32 %v9090_v42, %v778_v61  ;;  %v781_v0 = vmul.f32 %v9117_v50, %v9085_v38 }
 0x10d   :  { %v3166_v12 = vmax.f32 %v1133_v51, %v7582_v2  ;;  %v3168_v13 = vmax.f32 %v1134_v52, %v7584_v3  ;;  %v3413_v5 = vmax.f32 %v3165_v63, %v3173_v36  ;;  %v3415_v17 = vmax.f32 %v3167_v4, %v3175_v47 }
 0x10e   :  { %v1217_v18 = vrot.slane %v1203_v7, %v9095_v48  ;;  %v1218_v21 = vcombine.high %v1210_v8, %v1210_v8  ;;  %v7601_v44 = vrot.slane %v1210_v8, 9  ;;  %v913_v19 = vmax.f32 %v849_v9, 0.0  ;;  %v9193_v14 = vpop.f32.mrb[24].mxu0 }
 0x10f   :  { %v3414_v22 = vmax.f32 %v3166_v12, %v3174_v46  ;;  %v3416_v23 = vmax.f32 %v3168_v13, %v3176_v58  ;;  %v3708_v24 = vrot.slane %v3413_v5, %v9104_v62  ;;  %v3716_v25 = vrot.slane %v3415_v17, %v9104_v62  ;;  %v9197_v26 = vpop.f32.mrb[25].mxu0 }
 0x110   :  { %v1219_v50 = vcombine.high %v1217_v18, %v1217_v18  ;;  %v7602_v37 = vrot.slane %v1218_v21, 9  ;;  %v7603_v15 = vrot.slane %v1217_v18, 9  ;;  %v3185_v27 = vmax.f32 %v1210_v8, %v7601_v44  ;;  %v9199_v29 = vpop.f32.mrb[26].mxu0 }
 0x111   :  { %v3712_v30 = vrot.slane %v3414_v22, %v9104_v62  ;;  %v3720_v31 = vrot.slane %v3416_v23, %v9104_v62  ;;  %v4186_v32 = vsel %vm4175_vm6, %v3708_v24, %v4185_v59  ;;  %v1169_v35 = vcombine.high %v913_v19, %v913_v19  ;;  %v9204_v36 = vpop.f32.mrb[27].mxu0 }
 0x112   :  { %v7604_v39 = vrot.slane %v1219_v50, 9  ;;  %v3186_v40 = vmax.f32 %v1218_v21, %v7602_v37  ;;  %v3187_v43 = vmax.f32 %v1217_v18, %v7603_v15  ;;  %v1176_v45 = vrot.slane %v913_v19, %v9095_v48 }
 0x113   :  { %v4187_v46 = vsel %vm4177_vm7, %v3712_v30, %v4186_v32  ;;  %v1183_v47 = vrot.slane %v1169_v35, %v9095_v48  ;;  %v852_v51 = vadd.f32 %v9090_v42, %v781_v0  ;;  %v779_v52 = vmul.f32 %v9085_v38, %v9120_v55 }
 0x114   :  { %v4188_v53 = vsel %vm4179_vm8, %v3716_v25, %v4187_v46  ;;  %v3188_v54 = vmax.f32 %v1219_v50, %v7604_v39  ;;  %v1184_v58 = vcombine.high %v1176_v45, %v1176_v45  ;;  %v7593_v59 = vrot.slane %v1176_v45, 9 }
 0x115   :  { %v4189_v60 = vsel %vm4181_vm9, %v3720_v31, %v4188_v53  ;;  %v1185_v61 = vcombine.high %v1183_v47, %v1183_v47  ;;  %v7595_v2 = vrot.slane %v1183_v47, 9  ;;  %v916_v3 = vmax.f32 %v852_v51, 0.0 }
 0x116   :  { %4306 = vst.msk [vmem:[#allocation2 + $0x21] sm:$0xff] %vm55_vm0, %v4189_v60  ;;  %v7594_v63 = vrot.slane %v1184_v58, 9  ;;  %v3177_v4 = vmax.f32 %v1176_v45, %v7593_v59  ;;  %v850_v7 = vadd.f32 %v9090_v42, %v779_v52  ;;  %v784_v8 = vmul.f32 %v9133_v16, %v9085_v38  ;;  %v9218_v55 = vpop.f32.mrb[28].mxu0 }
 0x117   :  { %v7596_v9 = vrot.slane %v1185_v61, 9  ;;  %v3179_v0 = vmax.f32 %v1183_v47, %v7595_v2  ;;  %v1220_v12 = vcombine.high %v916_v3, %v916_v3  ;;  %v1227_v13 = vrot.slane %v916_v3, %v9095_v48  ;;  %v9221_v5 = vpop.f32.mrb[29].mxu0 }
 0x118   :  { %v3178_v17 = vmax.f32 %v1184_v58, %v7594_v63  ;;  %v3417_v18 = vmax.f32 %v3177_v4, %v3185_v27  ;;  %v914_v21 = vmax.f32 %v850_v7, 0.0  ;;  %v855_v44 = vadd.f32 %v9090_v42, %v784_v8  ;;  %v9224_v19 = vpop.f32.mrb[30].mxu0 }
 0x119   :  { %v3180_v22 = vmax.f32 %v1185_v61, %v7596_v9  ;;  %v3419_v23 = vmax.f32 %v3179_v0, %v3187_v43  ;;  %v1234_v16 = vrot.slane %v1220_v12, %v9095_v48  ;;  %v1235_v24 = vcombine.high %v1227_v13, %v1227_v13  ;;  %v9227_v25 = vpop.f32.mrb[31].mxu0 }
 0x11a   :  { %v3418_v50 = vmax.f32 %v3178_v17, %v3186_v40  ;;  %v3724_v37 = vrot.slane %v3417_v18, %v9104_v62  ;;  %v7605_v15 = vrot.slane %v1227_v13, 9  ;;  %v1186_v30 = vcombine.high %v914_v21, %v914_v21 }
 0x11b   :  { %v3420_v31 = vmax.f32 %v3180_v22, %v3188_v54  ;;  %v3732_v27 = vrot.slane %v3419_v23, %v9104_v62  ;;  %v1236_v32 = vcombine.high %v1234_v16, %v1234_v16  ;;  %v7606_v35 = vrot.slane %v1235_v24, 9 }
 0x11c   :  { %v3728_v39 = vrot.slane %v3418_v50, %v9104_v62  ;;  %v7607_v45 = vrot.slane %v1234_v16, 9  ;;  %v3189_v46 = vmax.f32 %v1227_v13, %v7605_v15  ;;  %v1193_v43 = vrot.slane %v914_v21, %v9095_v48 }
 0x11d   :  { %v3736_v47 = vrot.slane %v3420_v31, %v9104_v62  ;;  %v7608_v51 = vrot.slane %v1236_v32, 9  ;;  %v3190_v52 = vmax.f32 %v1235_v24, %v7606_v35  ;;  %v1200_v40 = vrot.slane %v1186_v30, %v9095_v48 }
 0x11e   :  { %v4190_v53 = vsel %vm4169_vm3, %v3728_v39, %v3724_v37  ;;  %v3191_v58 = vmax.f32 %v1234_v16, %v7607_v45  ;;  %v1201_v54 = vcombine.high %v1193_v43, %v1193_v43  ;;  %v7597_v59 = vrot.slane %v1193_v43, 9  ;;  %v9236_v60 = vpop.f32.mrb[32].mxu0 }
 0x11f   :  { %v4191_v61 = vsel %vm4171_vm4, %v3732_v27, %v4190_v53  ;;  %v3192_v2 = vmax.f32 %v1236_v32, %v7608_v51  ;;  %v1202_v3 = vcombine.high %v1200_v40, %v1200_v40  ;;  %v7599_v63 = vrot.slane %v1200_v40, 9  ;;  %v9239_v4 = vpop.f32.mrb[33].mxu0 }
 0x120   :  { %v7598_v7 = vrot.slane %v1201_v54, 9  ;;  %v3181_v8 = vmax.f32 %v1193_v43, %v7597_v59  ;;  %v4192_v9 = vsel %vm4173_vm5, %v3736_v47, %v4191_v61  ;;  %v919_v0 = vmax.f32 %v855_v44, 0.0  ;;  %v9242_v12 = vpop.f32.mrb[34].mxu0 }
 0x121   :  { %v7600_v13 = vrot.slane %v1202_v3, 9  ;;  %v3183_v17 = vmax.f32 %v1200_v40, %v7599_v63  ;;  %v782_v18 = vmul.f32 %v9085_v38, %v9136_v20  ;;  %v785_v21 = vmul.f32 %v9139_v10, %v9085_v38  ;;  %v9248_v22 = vpop.f32.mrb[35].mxu0 }
 0x122   :  { %v3182_v23 = vmax.f32 %v1201_v54, %v7598_v7  ;;  %v3421_v16 = vmax.f32 %v3181_v8, %v3189_v46  ;;  %v1271_v24 = vcombine.high %v919_v0, %v919_v0  ;;  %v1278_v50 = vrot.slane %v919_v0, %v9095_v48 }
 0x123   :  { %v3184_v37 = vmax.f32 %v1202_v3, %v7600_v13  ;;  %v3423_v15 = vmax.f32 %v3183_v17, %v3191_v58  ;;  %v853_v44 = vadd.f32 %v9090_v42, %v782_v18  ;;  %v856_v30 = vadd.f32 %v9090_v42, %v785_v21 }
 0x124   :  { %v3422_v31 = vmax.f32 %v3182_v23, %v3190_v52  ;;  %v3740_v27 = vrot.slane %v3421_v16, %v9104_v62  ;;  %v1285_v20 = vrot.slane %v1271_v24, %v9095_v48  ;;  %v1286_v32 = vcombine.high %v1278_v50, %v1278_v50 }
 0x125   :  { %v3424_v10 = vmax.f32 %v3184_v37, %v3192_v2  ;;  %v3748_v35 = vrot.slane %v3423_v15, %v9104_v62  ;;  %v7617_v39 = vrot.slane %v1278_v50, 9  ;;  %v917_v45 = vmax.f32 %v853_v44, 0.0 }
 0x126   :  { %v3744_v46 = vrot.slane %v3422_v31, %v9104_v62  ;;  %v4193_v43 = vsel %vm4175_vm6, %v3740_v27, %v4192_v9  ;;  %v1287_v47 = vcombine.high %v1285_v20, %v1285_v20  ;;  %v7618_v51 = vrot.slane %v1286_v32, 9  ;;  %v9264_v18 = vpop.f32.mrb[36].mxu0 }
 0x127   :  { %v3752_v40 = vrot.slane %v3424_v10, %v9104_v62  ;;  %v7619_v53 = vrot.slane %v1285_v20, 9  ;;  %v3201_v52 = vmax.f32 %v1278_v50, %v7617_v39  ;;  %v1237_v58 = vcombine.high %v917_v45, %v917_v45  ;;  %v9268_v50 = vpop.f32.mrb[37].mxu0 }
 0x128   :  { %v4194_v54 = vsel %vm4177_vm7, %v3744_v46, %v4193_v43  ;;  %v7620_v59 = vrot.slane %v1287_v47, 9  ;;  %v3202_v61 = vmax.f32 %v1286_v32, %v7618_v51  ;;  %v1244_v2 = vrot.slane %v917_v45, %v9095_v48  ;;  %v9276_v46 = vpop.f32.mrb[38].mxu0 }
 0x129   :  { %v4195_v3 = vsel %vm4179_vm8, %v3748_v35, %v4194_v54  ;;  %v3203_v63 = vmax.f32 %v1285_v20, %v7619_v53  ;;  %v1251_v7 = vrot.slane %v1237_v58, %v9095_v48  ;;  %v920_v8 = vmax.f32 %v856_v30, 0.0 }
 0x12a   :  { %v4196_v9 = vsel %vm4181_vm9, %v3752_v40, %v4195_v3  ;;  %v3204_v0 = vmax.f32 %v1287_v47, %v7620_v59  ;;  %v1252_v13 = vcombine.high %v1244_v2, %v1244_v2  ;;  %v7609_v17 = vrot.slane %v1244_v2, 9 }
 0x12b   :  { %4307 = vst.msk [vmem:[#allocation2 + $0x31] sm:$0xff] %vm55_vm0, %v4196_v9  ;;  %v1253_v21 = vcombine.high %v1251_v7, %v1251_v7  ;;  %v7611_v23 = vrot.slane %v1251_v7, 9  ;;  %v1288_v16 = vcombine.high %v920_v8, %v920_v8  ;;  %v1295_v24 = vrot.slane %v920_v8, %v9095_v48 }
 0x12c   :  { %v7610_v37 = vrot.slane %v1252_v13, 9  ;;  %v3193_v15 = vmax.f32 %v1244_v2, %v7609_v17  ;;  %v783_v44 = vmul.f32 %v9085_v38, %v9143_v28  ;;  %v788_v30 = vmul.f32 %v9153_v57, %v9085_v38  ;;  %v9278_v28 = vpop.f32.mrb[39].mxu0 }
 0x12d   :  { %v7612_v31 = vrot.slane %v1253_v21, 9  ;;  %v3195_v27 = vmax.f32 %v1251_v7, %v7611_v23  ;;  %v1302_v20 = vrot.slane %v1288_v16, %v9095_v48  ;;  %v1303_v32 = vcombine.high %v1295_v24, %v1295_v24 }
 0x12e   :  { %v3194_v10 = vmax.f32 %v1252_v13, %v7610_v37  ;;  %v3425_v35 = vmax.f32 %v3193_v15, %v3201_v52  ;;  %v7621_v39 = vrot.slane %v1295_v24, 9  ;;  %v854_v45 = vadd.f32 %v9090_v42, %v783_v44 }
 0x12f   :  { %v3196_v43 = vmax.f32 %v1253_v21, %v7612_v31  ;;  %v3427_v47 = vmax.f32 %v3195_v27, %v3203_v63  ;;  %v1304_v51 = vcombine.high %v1302_v20, %v1302_v20  ;;  %v7622_v40 = vrot.slane %v1303_v32, 9 }
 0x130   :  { %v3426_v53 = vmax.f32 %v3194_v10, %v3202_v61  ;;  %v3756_v57 = vrot.slane %v3425_v35, %v9104_v62  ;;  %v7623_v58 = vrot.slane %v1302_v20, 9  ;;  %v3205_v54 = vmax.f32 %v1295_v24, %v7621_v39  ;;  %v9301_v39 = vpop.f32.mrb[40].mxu0 }
 0x131   :  { %v3428_v59 = vmax.f32 %v3196_v43, %v3204_v0  ;;  %v3764_v2 = vrot.slane %v3427_v47, %v9104_v62  ;;  %v7624_v52 = vrot.slane %v1304_v51, 9  ;;  %v3206_v3 = vmax.f32 %v1303_v32, %v7622_v40  ;;  %v9303_v40 = vpop.f32.mrb[41].mxu0 }
 0x132   :  { %v3760_v7 = vrot.slane %v3426_v53, %v9104_v62  ;;  %v3207_v8 = vmax.f32 %v1302_v20, %v7623_v58  ;;  %v918_v9 = vmax.f32 %v854_v45, 0.0  ;;  %v859_v63 = vadd.f32 %v9090_v42, %v788_v30 }
 0x133   :  { %v3768_v13 = vrot.slane %v3428_v59, %v9104_v62  ;;  %v3208_v17 = vmax.f32 %v1304_v51, %v7624_v52  ;;  %v786_v61 = vmul.f32 %v9085_v38, %v9156_v1  ;;  %v789_v21 = vmul.f32 %v9160_v6, %v9085_v38 }
 0x134   :  { %v4197_v0 = vsel %vm4169_vm3, %v3760_v7, %v3756_v57  ;;  %v1254_v23 = vcombine.high %v918_v9, %v918_v9  ;;  %v1261_v16 = vrot.slane %v918_v9, %v9095_v48  ;;  %v923_v24 = vmax.f32 %v859_v63, 0.0 }
 0x135   :  { %v4198_v37 = vsel %vm4171_vm4, %v3764_v2, %v4197_v0  ;;  %v857_v15 = vadd.f32 %v9090_v42, %v786_v61  ;;  %v860_v44 = vadd.f32 %v9090_v42, %v789_v21  ;;  %v9296_v30 = vmul.f32 %v9085_v38, %v9164_v11 }
 0x136   :  { %v1268_v1 = vrot.slane %v1254_v23, %v9095_v48  ;;  %v1269_v31 = vcombine.high %v1261_v16, %v1261_v16  ;;  %v7613_v6 = vrot.slane %v1261_v16, 9  ;;  %v4199_v27 = vsel %vm4173_vm5, %v3768_v13, %v4198_v37 }
 0x137   :  { %v1339_v20 = vcombine.high %v923_v24, %v923_v24  ;;  %v1346_v32 = vrot.slane %v923_v24, %v9095_v48  ;;  %v921_v10 = vmax.f32 %v857_v15, 0.0  ;;  %v924_v35 = vmax.f32 %v860_v44, 0.0 }
 0x138   :  { %v1270_v45 = vcombine.high %v1268_v1, %v1268_v1  ;;  %v7614_v43 = vrot.slane %v1269_v31, 9  ;;  %v7615_v47 = vrot.slane %v1268_v1, 9  ;;  %v3197_v51 = vmax.f32 %v1261_v16, %v7613_v6 }
 0x139   :  { %v1353_v11 = vrot.slane %v1339_v20, %v9095_v48  ;;  %v1354_v53 = vcombine.high %v1346_v32, %v1346_v32  ;;  %v7633_v57 = vrot.slane %v1346_v32, 9  ;;  %v1305_v58 = vcombine.high %v921_v10, %v921_v10 }
 0x13a   :  { %v7616_v59 = vrot.slane %v1270_v45, 9  ;;  %v3198_v2 = vmax.f32 %v1269_v31, %v7614_v43  ;;  %v3199_v52 = vmax.f32 %v1268_v1, %v7615_v47  ;;  %v3429_v7 = vmax.f32 %v3197_v51, %v3205_v54  ;;  %v9311_v31 = vpop.f32.mrb[42].mxu0 }
 0x13b   :  { %v1355_v9 = vcombine.high %v1353_v11, %v1353_v11  ;;  %v7634_v63 = vrot.slane %v1354_v53, 9  ;;  %v7635_v13 = vrot.slane %v1353_v11, 9  ;;  %v3217_v61 = vmax.f32 %v1346_v32, %v7633_v57 }
 0x13c   :  { %v3200_v21 = vmax.f32 %v1270_v45, %v7616_v59  ;;  %v3430_v0 = vmax.f32 %v3198_v2, %v3206_v3  ;;  %v3431_v23 = vmax.f32 %v3199_v52, %v3207_v8  ;;  %v3772_v16 = vrot.slane %v3429_v7, %v9104_v62 }
 0x13d   :  { %v7636_v24 = vrot.slane %v1355_v9, 9  ;;  %v3218_v37 = vmax.f32 %v1354_v53, %v7634_v63  ;;  %v3219_v15 = vmax.f32 %v1353_v11, %v7635_v13  ;;  %v1312_v44 = vrot.slane %v921_v10, %v9095_v48 }
 0x13e   :  { %v3432_v6 = vmax.f32 %v3200_v21, %v3208_v17  ;;  %v3776_v20 = vrot.slane %v3430_v0, %v9104_v62  ;;  %v3780_v1 = vrot.slane %v3431_v23, %v9104_v62  ;;  %v4200_v54 = vsel %vm4175_vm6, %v3772_v16, %v4199_v27  ;;  %v9318_v27 = vpop.f32.mrb[43].mxu0  ;;  %v4353_v16 = vld [vmem:[#allocation2 + $0x2] sm:$0xff] }
 0x13f   :  { %v3220_v32 = vmax.f32 %v1355_v9, %v7636_v24  ;;  %v1319_v3 = vrot.slane %v1305_v58, %v9095_v48  ;;  %v1320_v8 = vcombine.high %v1312_v44, %v1312_v44  ;;  %v7625_v45 = vrot.slane %v1312_v44, 9 }
 0x140   :  { %v3784_v43 = vrot.slane %v3432_v6, %v9104_v62  ;;  %v4201_v47 = vsel %vm4177_vm7, %v3776_v20, %v4200_v54  ;;  %v1356_v51 = vcombine.high %v924_v35, %v924_v35  ;;  %v1363_v17 = vrot.slane %v924_v35, %v9095_v48  ;;  %v4337_v54 = vld [vmem:[#allocation2 + $0x1] sm:$0xff] }
 0x141   :  { %v4202_v10 = vsel %vm4179_vm8, %v3780_v1, %v4201_v47  ;;  %v1321_v11 = vcombine.high %v1319_v3, %v1319_v3  ;;  %v7626_v53 = vrot.slane %v1320_v8, 9  ;;  %v7627_v57 = vrot.slane %v1319_v3, 9 }
 0x142   :  { %v4203_v59 = vsel %vm4181_vm9, %v3784_v43, %v4202_v10  ;;  %v3209_v2 = vmax.f32 %v1312_v44, %v7625_v45  ;;  %v1370_v58 = vrot.slane %v1356_v51, %v9095_v48  ;;  %v1371_v52 = vcombine.high %v1363_v17, %v1363_v17  ;;  %v9325_v44 = vld [vmem:[#allocation2 + $0x12] sm:$0xff] }
 0x143   :  { %4308 = vst.msk [vmem:[#allocation2 + $0x41] sm:$0xff] %vm55_vm0, %v4203_v59  ;;  %v7628_v7 = vrot.slane %v1321_v11, 9  ;;  %v3210_v9 = vmax.f32 %v1320_v8, %v7626_v53  ;;  %v3211_v63 = vmax.f32 %v1319_v3, %v7627_v57  ;;  %v7637_v13 = vrot.slane %v1363_v17, 9  ;;  %v4338_v45 = vld [vmem:[#allocation2 + $0x11] sm:$0xff] }
 0x144   :  { %v3433_v35 = vmax.f32 %v3209_v2, %v3217_v61  ;;  %v1372_v21 = vcombine.high %v1370_v58, %v1370_v58  ;;  %v7638_v0 = vrot.slane %v1371_v52, 9  ;;  %v7639_v23 = vrot.slane %v1370_v58, 9 }
 0x145   :  { %v3212_v24 = vmax.f32 %v1321_v11, %v7628_v7  ;;  %v3434_v6 = vmax.f32 %v3210_v9, %v3218_v37  ;;  %v3435_v20 = vmax.f32 %v3211_v63, %v3219_v15  ;;  %v9323_v1 = vmax.f32 %v1363_v17, %v7637_v13  ;;  %v4369_v13 = vld [vmem:[#allocation2 + $0x10] sm:$0xff] }
 0x146   :  { %v3788_v43 = vrot.slane %v3433_v35, %v9104_v62  ;;  %v7640_v47 = vrot.slane %v1372_v21, 9  ;;  %v9328_v8 = vmax.f32 %v1371_v52, %v7638_v0  ;;  %v9330_v3 = vmax.f32 %v1370_v58, %v7639_v23  ;;  %v9345_v58 = vld [vmem:[#allocation2 + $0x20] sm:$0xff] }
 0x147   :  { %v3436_v61 = vmax.f32 %v3212_v24, %v3220_v32  ;;  %v3792_v51 = vrot.slane %v3434_v6, %v9104_v62  ;;  %v3796_v10 = vrot.slane %v3435_v20, %v9104_v62  ;;  %v858_v37 = vadd.f32 %v9090_v42, %v9296_v30 }
 0x148   :  { %v9336_v15 = vmax.f32 %v1372_v21, %v7640_v47  ;;  %v8323_v17 = vpack.i.bf16 %v9325_v44, %v4353_v16  ;;  %v8318_v11 = vpack.i.bf16 %v4338_v45, %v4337_v54  ;;  %v792_v53 = vmul.f32 %v9173_v33, %v9085_v38 }
 0x149   :  { %v3800_v57 = vrot.slane %v3436_v61, %v9104_v62  ;;  %v4204_v59 = vsel %vm4169_vm3, %v3792_v51, %v3788_v43  ;;  %v922_v32 = vmax.f32 %v858_v37, 0.0  ;;  %v790_v2 = vmul.f32 %v9085_v38, %v9178_v41 }
 0x14a   :  { %v4205_v30 = vsel %vm4171_vm4, %v3796_v10, %v4204_v59  ;;  %8324 = vrot.lane.b32.xlu1 %v8323_v17, %s8766_s17  ;;  %8319 = vrot.lane.b32.xlu0 %v8318_v11, %s8767_s18  ;;  %v863_v33 = vadd.f32 %v9090_v42, %v792_v53  ;;  %v793_v52 = vmul.f32 %v9181_v49, %v9085_v38 }
 0x14b   :  { %v1322_v7 = vcombine.high %v922_v32, %v922_v32  ;;  %v1329_v9 = vrot.slane %v922_v32, %v9095_v48  ;;  %v4206_v41 = vsel %vm4173_vm5, %v3800_v57, %v4205_v30  ;;  %v861_v63 = vadd.f32 %v9090_v42, %v790_v2 }
 0x14c   :  { %v927_v35 = vmax.f32 %v863_v33, 0.0  ;;  %v864_v21 = vadd.f32 %v9090_v42, %v793_v52  ;;  %v791_v0 = vmul.f32 %v9085_v38, %v9183_v56  ;;  %v8333_v23 = vpack.i.bf16 %v9345_v58, %v4369_v13 }
 0x14d   :  { %v1336_v16 = vrot.slane %v1322_v7, %v9095_v48  ;;  %v1337_v24 = vcombine.high %v1329_v9, %v1329_v9  ;;  %v7629_v49 = vrot.slane %v1329_v9, 9  ;;  %v925_v6 = vmax.f32 %v861_v63, 0.0  ;;  %v9371_v63 = vpop.f32.mrb[44].mxu0 }
 0x14e   :  { %v1407_v20 = vcombine.high %v927_v35, %v927_v35  ;;  %v1414_v54 = vrot.slane %v927_v35, %v9095_v48  ;;  %v928_v45 = vmax.f32 %v864_v21, 0.0  ;;  %v9363_v43 = vadd.f32 %v9090_v42, %v791_v0  ;;  %8334 = vrot.lane.b32.xlu1 %v8333_v23, %s8768_s19  ;;  %v9374_v23 = vpop.f32.mrb[45].mxu0 }
 0x14f   :  { %v1338_v47 = vcombine.high %v1336_v16, %v1336_v16  ;;  %v7630_v61 = vrot.slane %v1337_v24, 9  ;;  %v7631_v38 = vrot.slane %v1336_v16, 9  ;;  %v3213_v56 = vmax.f32 %v1329_v9, %v7629_v49 }
 0x150   :  { %v1421_v51 = vrot.slane %v1407_v20, %v9095_v48  ;;  %v1422_v10 = vcombine.high %v1414_v54, %v1414_v54  ;;  %v7649_v37 = vrot.slane %v1414_v54, 9  ;;  %v1373_v17 = vcombine.high %v925_v6, %v925_v6 }
 0x151   :  { %v7632_v11 = vrot.slane %v1338_v47, 9  ;;  %v3214_v53 = vmax.f32 %v1337_v24, %v7630_v61  ;;  %v3215_v57 = vmax.f32 %v1336_v16, %v7631_v38  ;;  %v3437_v59 = vmax.f32 %v3213_v56, %v9323_v1  ;;  %v9384_v56 = vpop.f32.mrb[46].mxu0 }
 0x152   :  { %v1423_v32 = vcombine.high %v1421_v51, %v1421_v51  ;;  %v7650_v42 = vrot.slane %v1422_v10, 9  ;;  %v7651_v2 = vrot.slane %v1421_v51, 9  ;;  %v3233_v30 = vmax.f32 %v1414_v54, %v7649_v37 }
 0x153   :  { %v3216_v33 = vmax.f32 %v1338_v47, %v7632_v11  ;;  %v3438_v52 = vmax.f32 %v3214_v53, %v9328_v8  ;;  %v3439_v7 = vmax.f32 %v3215_v57, %v9330_v3  ;;  %v3804_v9 = vrot.slane %v3437_v59, %v9104_v62 }
 0x154   :  { %v7652_v13 = vrot.slane %v1423_v32, 9  ;;  %v3234_v35 = vmax.f32 %v1422_v10, %v7650_v42  ;;  %v3235_v21 = vmax.f32 %v1421_v51, %v7651_v2  ;;  %v1380_v0 = vrot.slane %v925_v6, %v9095_v48 }
 0x155   :  { %v3440_v1 = vmax.f32 %v3216_v33, %v9336_v15  ;;  %v3808_v16 = vrot.slane %v3438_v52, %v9104_v62  ;;  %v3812_v24 = vrot.slane %v3439_v7, %v9104_v62  ;;  %v4207_v8 = vsel %vm4175_vm6, %v3804_v9, %v4206_v41 }
 0x156   :  { %v3236_v3 = vmax.f32 %v1423_v32, %v7652_v13  ;;  %v1387_v49 = vrot.slane %v1373_v17, %v9095_v48  ;;  %v1388_v20 = vcombine.high %v1380_v0, %v1380_v0  ;;  %v7641_v54 = vrot.slane %v1380_v0, 9 }
 0x157   :  { %v3816_v47 = vrot.slane %v3440_v1, %v9104_v62  ;;  %v4208_v61 = vsel %vm4177_vm7, %v3808_v16, %v4207_v8  ;;  %v1424_v6 = vcombine.high %v928_v45, %v928_v45  ;;  %v1431_v38 = vrot.slane %v928_v45, %v9095_v48  ;;  %v9390_v45 = vpop.f32.mrb[47].mxu0 }
 0x158   :  { %v4209_v15 = vsel %vm4179_vm8, %v3812_v24, %v4208_v61  ;;  %v1389_v51 = vcombine.high %v1387_v49, %v1387_v49  ;;  %v7642_v10 = vrot.slane %v1388_v20, 9  ;;  %v7643_v37 = vrot.slane %v1387_v49, 9 }
 0x159   :  { %v4210_v41 = vsel %vm4181_vm9, %v3816_v47, %v4209_v15  ;;  %v3225_v11 = vmax.f32 %v1380_v0, %v7641_v54  ;;  %v1438_v17 = vrot.slane %v1424_v6, %v9095_v48  ;;  %v1439_v53 = vcombine.high %v1431_v38, %v1431_v38  ;;  %v9392_v0 = vld [vmem:[#allocation2 + $0x22] sm:$0xff] }
 0x15a   :  { %4309 = vst.msk [vmem:[#allocation2 + $0x51] sm:$0xff] %vm55_vm0, %v4210_v41  ;;  %v7644_v57 = vrot.slane %v1389_v51, 9  ;;  %v3226_v59 = vmax.f32 %v1388_v20, %v7642_v10  ;;  %v3227_v32 = vmax.f32 %v1387_v49, %v7643_v37  ;;  %v7653_v42 = vrot.slane %v1431_v38, 9  ;;  %v9417_v37 = vld [vmem:[%s10836_s3] ss:$0 sm:$0xff] }
 0x15b   :  { %v3441_v2 = vmax.f32 %v3225_v11, %v3233_v30  ;;  %v1440_v33 = vcombine.high %v1438_v17, %v1438_v17  ;;  %v7654_v52 = vrot.slane %v1439_v53, 9  ;;  %v7655_v7 = vrot.slane %v1438_v17, 9 }
 0x15c   :  { %v3228_v9 = vmax.f32 %v1389_v51, %v7644_v57  ;;  %v3442_v13 = vmax.f32 %v3226_v59, %v3234_v35  ;;  %v3443_v1 = vmax.f32 %v3227_v32, %v3235_v21  ;;  %v3237_v16 = vmax.f32 %v1431_v38, %v7653_v42  ;;  %v9403_v21 = vld [vmem:[%s10835_s2] ss:$0 sm:$0xff] }
 0x15d   :  { %v3820_v24 = vrot.slane %v3441_v2, %v9104_v62  ;;  %v7656_v8 = vrot.slane %v1440_v33, 9  ;;  %v3238_v54 = vmax.f32 %v1439_v53, %v7654_v52  ;;  %v3239_v47 = vmax.f32 %v1438_v17, %v7655_v7 }
 0x15e   :  { %v3444_v20 = vmax.f32 %v3228_v9, %v3236_v3  ;;  %v3824_v49 = vrot.slane %v3442_v13, %v9104_v62  ;;  %v3828_v61 = vrot.slane %v3443_v1, %v9104_v62  ;;  %v926_v30 = vmax.f32 %v9363_v43, 0.0 }
 0x15f   :  { %v3240_v6 = vmax.f32 %v1440_v33, %v7656_v8  ;;  %v8328_v35 = vpack.i.bf16 %v9392_v0, %v9325_v44  ;;  %v796_v38 = vmul.f32 %v9403_v21, %v9193_v14  ;;  %v794_v3 = vmul.f32 %v9403_v21, %v9197_v26 }
 0x160   :  { %v3832_v15 = vrot.slane %v3444_v20, %v9104_v62  ;;  %v4211_v51 = vsel %vm4169_vm3, %v3824_v49, %v3820_v24  ;;  %v1390_v43 = vcombine.high %v926_v30, %v926_v30  ;;  %v1397_v10 = vrot.slane %v926_v30, %v9095_v48  ;;  %v9430_v30 = vpop.f32.mrb[48].mxu0 }
 0x161   :  { %v4212_v44 = vsel %vm4171_vm4, %v3828_v61, %v4211_v51  ;;  %8329 = vrot.lane.b32.xlu0 %v8328_v35, %s8767_s18  ;;  %v867_v14 = vadd.f32 %v9417_v37, %v796_v38  ;;  %v865_v26 = vadd.f32 %v9417_v37, %v794_v3  ;;  %v797_v41 = vmul.f32 %v9403_v21, %v9199_v29 }
 0x162   :  { %v1404_v11 = vrot.slane %v1390_v43, %v9095_v48  ;;  %v1405_v17 = vcombine.high %v1397_v10, %v1397_v10  ;;  %v7645_v53 = vrot.slane %v1397_v10, 9  ;;  %v4213_v57 = vsel %vm4173_vm5, %v3832_v15, %v4212_v44  ;;  %v9434_v15 = vpop.f32.mrb[49].mxu0 }
 0x163   :  { %v931_v59 = vmax.f32 %v867_v14, 0.0  ;;  %v929_v32 = vmax.f32 %v865_v26, 0.0  ;;  %v868_v42 = vadd.f32 %v9417_v37, %v797_v41  ;;  %v795_v2 = vmul.f32 %v9403_v21, %v9204_v36 }
 0x164   :  { %v1406_v33 = vcombine.high %v1404_v11, %v1404_v11  ;;  %v7646_v52 = vrot.slane %v1405_v17, 9  ;;  %v7647_v7 = vrot.slane %v1404_v11, 9  ;;  %v3229_v9 = vmax.f32 %v1397_v10, %v7645_v53 }
 0x165   :  { %v1475_v13 = vcombine.high %v931_v59, %v931_v59  ;;  %v1482_v29 = vrot.slane %v931_v59, %v9095_v48  ;;  %v1441_v1 = vcombine.high %v929_v32, %v929_v32  ;;  %v1448_v24 = vrot.slane %v929_v32, %v9095_v48 }
 0x166   :  { %v7648_v8 = vrot.slane %v1406_v33, 9  ;;  %v3230_v20 = vmax.f32 %v1405_v17, %v7646_v52  ;;  %v3231_v49 = vmax.f32 %v1404_v11, %v7647_v7  ;;  %v3445_v61 = vmax.f32 %v3229_v9, %v3237_v16 }
 0x167   :  { %v1489_v35 = vrot.slane %v1475_v13, %v9095_v48  ;;  %v1490_v38 = vcombine.high %v1482_v29, %v1482_v29  ;;  %v7665_v36 = vrot.slane %v1482_v29, 9  ;;  %v1455_v3 = vrot.slane %v1441_v1, %v9095_v48  ;;  %v9442_v1 = vld [vmem:[#allocation2 + $0x30] sm:$0xff] }
 0x168   :  { %v3232_v51 = vmax.f32 %v1406_v33, %v7648_v8  ;;  %v3446_v43 = vmax.f32 %v3230_v20, %v3238_v54  ;;  %v3447_v10 = vmax.f32 %v3231_v49, %v3239_v47  ;;  %v3836_v44 = vrot.slane %v3445_v61, %v9104_v62 }
 0x169   :  { %v1491_v14 = vcombine.high %v1489_v35, %v1489_v35  ;;  %v7666_v26 = vrot.slane %v1490_v38, 9  ;;  %v7667_v41 = vrot.slane %v1489_v35, 9  ;;  %v3249_v11 = vmax.f32 %v1482_v29, %v7665_v36 }
 0x16a   :  { %v3448_v16 = vmax.f32 %v3232_v51, %v3240_v6  ;;  %v3840_v17 = vrot.slane %v3446_v43, %v9104_v62  ;;  %v3844_v53 = vrot.slane %v3447_v10, %v9104_v62  ;;  %v4214_v59 = vsel %vm4175_vm6, %v3836_v44, %v4213_v57 }
 0x16b   :  { %v7668_v32 = vrot.slane %v1491_v14, 9  ;;  %v3250_v52 = vmax.f32 %v1490_v38, %v7666_v26  ;;  %v3251_v7 = vmax.f32 %v1489_v35, %v7667_v41  ;;  %v1456_v9 = vcombine.high %v1448_v24, %v1448_v24  ;;  %v4435_v35 = vld [vmem:[#allocation2 + $0x31] sm:$0xff] }
 0x16c   :  { %v3848_v54 = vrot.slane %v3448_v16, %v9104_v62  ;;  %v4215_v47 = vsel %vm4177_vm7, %v3840_v17, %v4214_v59  ;;  %v1457_v33 = vcombine.high %v1455_v3, %v1455_v3  ;;  %v7657_v13 = vrot.slane %v1448_v24, 9  ;;  %v4434_v16 = vld [vmem:[#allocation2 + $0x21] sm:$0xff]  ;;  %v9451_v17 = vpop.f32.mrb[50].mxu0 }
 0x16d   :  { %v4216_v6 = vsel %vm4179_vm8, %v3844_v53, %v4215_v47  ;;  %v3252_v29 = vmax.f32 %v1491_v14, %v7668_v32  ;;  %v7658_v8 = vrot.slane %v1456_v9, 9  ;;  %v7659_v20 = vrot.slane %v1455_v3, 9 }
 0x16e   :  { %v4217_v49 = vsel %vm4181_vm9, %v3848_v54, %v4216_v6  ;;  %v7660_v57 = vrot.slane %v1457_v33, 9  ;;  %v3241_v61 = vmax.f32 %v1448_v24, %v7657_v13  ;;  %v932_v38 = vmax.f32 %v868_v42, 0.0 }
 0x16f   :  { %4310 = vst.msk [vmem:[#allocation2 + $0x61] sm:$0xff] %vm55_vm0, %v4217_v49  ;;  %v3242_v36 = vmax.f32 %v1456_v9, %v7658_v8  ;;  %v3243_v51 = vmax.f32 %v1455_v3, %v7659_v20  ;;  %v866_v43 = vadd.f32 %v9417_v37, %v795_v2  ;;  %v8338_v10 = vpack.i.bf16 %v9442_v1, %v9345_v58 }
 0x170   :  { %v3244_v44 = vmax.f32 %v1457_v33, %v7660_v57  ;;  %v3449_v26 = vmax.f32 %v3241_v61, %v3249_v11  ;;  %v1492_v14 = vcombine.high %v932_v38, %v932_v38  ;;  %v1499_v41 = vrot.slane %v932_v38, %v9095_v48 }
 0x171   :  { %v3450_v24 = vmax.f32 %v3242_v36, %v3250_v52  ;;  %v3451_v42 = vmax.f32 %v3243_v51, %v3251_v7  ;;  %v930_v53 = vmax.f32 %v866_v43, 0.0  ;;  %8339 = vrot.lane.b32.xlu1 %v8338_v10, %s8766_s17  ;;  %v8343_v59 = vpack.i.bf16 %v4435_v35, %v4434_v16  ;;  %v9459_v52 = vpop.f32.mrb[51].mxu0 }
 0x172   :  { %v3452_v3 = vmax.f32 %v3244_v44, %v3252_v29  ;;  %v3852_v2 = vrot.slane %v3449_v26, %v9104_v62  ;;  %v1506_v32 = vrot.slane %v1492_v14, %v9095_v48  ;;  %v1507_v58 = vcombine.high %v1499_v41, %v1499_v41 }
 0x173   :  { %v3856_v11 = vrot.slane %v3450_v24, %v9104_v62  ;;  %v3860_v9 = vrot.slane %v3451_v42, %v9104_v62  ;;  %v7669_v54 = vrot.slane %v1499_v41, 9  ;;  %v1458_v47 = vcombine.high %v930_v53, %v930_v53  ;;  %8344 = vrot.lane.b32.xlu0 %v8343_v59, %s8768_s19 }
 0x174   :  { %v3864_v7 = vrot.slane %v3452_v3, %v9104_v62  ;;  %v1508_v33 = vcombine.high %v1506_v32, %v1506_v32  ;;  %v7670_v13 = vrot.slane %v1507_v58, 9  ;;  %v7671_v6 = vrot.slane %v1506_v32, 9 }
 0x175   :  { %v4218_v29 = vsel %vm4169_vm3, %v3856_v11, %v3852_v2  ;;  %v3253_v8 = vmax.f32 %v1499_v41, %v7669_v54  ;;  %v1465_v20 = vrot.slane %v930_v53, %v9095_v48  ;;  %v1472_v49 = vrot.slane %v1458_v47, %v9095_v48  ;;  %8349 = vrot.lane.b32.xlu1 %v8343_v59, %s8767_s18 }
 0x176   :  { %v4219_v57 = vsel %vm4171_vm4, %v3860_v9, %v4218_v29  ;;  %v7672_v61 = vrot.slane %v1508_v33, 9  ;;  %v3254_v38 = vmax.f32 %v1507_v58, %v7670_v13  ;;  %v3255_v35 = vmax.f32 %v1506_v32, %v7671_v6 }
 0x177   :  { %v1473_v36 = vcombine.high %v1465_v20, %v1465_v20  ;;  %v1474_v51 = vcombine.high %v1472_v49, %v1472_v49  ;;  %v7661_v43 = vrot.slane %v1465_v20, 9  ;;  %v7663_v10 = vrot.slane %v1472_v49, 9 }
 0x178   :  { %v3256_v44 = vmax.f32 %v1508_v33, %v7672_v61  ;;  %v4220_v26 = vsel %vm4173_vm5, %v3864_v7, %v4219_v57  ;;  %v800_v14 = vmul.f32 %v9403_v21, %v9218_v55  ;;  %v798_v41 = vmul.f32 %v9403_v21, %v9221_v5 }
 0x179   :  { %v7662_v16 = vrot.slane %v1473_v36, 9  ;;  %v7664_v24 = vrot.slane %v1474_v51, 9  ;;  %v3245_v42 = vmax.f32 %v1465_v20, %v7661_v43  ;;  %v3247_v53 = vmax.f32 %v1472_v49, %v7663_v10 }
 0x17a   :  { %v871_v59 = vadd.f32 %v9417_v37, %v800_v14  ;;  %v869_v3 = vadd.f32 %v9417_v37, %v798_v41  ;;  %v801_v2 = vmul.f32 %v9403_v21, %v9224_v19  ;;  %v799_v32 = vmul.f32 %v9403_v21, %v9227_v25 }
 0x17b   :  { %v3246_v58 = vmax.f32 %v1473_v36, %v7662_v16  ;;  %v3248_v11 = vmax.f32 %v1474_v51, %v7664_v24  ;;  %v3453_v55 = vmax.f32 %v3245_v42, %v3253_v8  ;;  %v3455_v9 = vmax.f32 %v3247_v53, %v3255_v35 }
 0x17c   :  { %v935_v54 = vmax.f32 %v871_v59, 0.0  ;;  %v933_v5 = vmax.f32 %v869_v3, 0.0  ;;  %v872_v47 = vadd.f32 %v9417_v37, %v801_v2  ;;  %v870_v7 = vadd.f32 %v9417_v37, %v799_v32  ;;  %v9492_v32 = vpop.f32.mrb[52].mxu0 }
 0x17d   :  { %v3454_v33 = vmax.f32 %v3246_v58, %v3254_v38  ;;  %v3456_v13 = vmax.f32 %v3248_v11, %v3256_v44  ;;  %v3868_v6 = vrot.slane %v3453_v55, %v9104_v62  ;;  %v3876_v29 = vrot.slane %v3455_v9, %v9104_v62 }
 0x17e   :  { %v1543_v19 = vcombine.high %v935_v54, %v935_v54  ;;  %v1550_v20 = vrot.slane %v935_v54, %v9095_v48  ;;  %v1509_v25 = vcombine.high %v933_v5, %v933_v5  ;;  %v1516_v49 = vrot.slane %v933_v5, %v9095_v48  ;;  %v9495_v54 = vpop.f32.mrb[53].mxu0 }
 0x17f   :  { %v3872_v8 = vrot.slane %v3454_v33, %v9104_v62  ;;  %v3880_v57 = vrot.slane %v3456_v13, %v9104_v62  ;;  %v4221_v61 = vsel %vm4175_vm6, %v3868_v6, %v4220_v26  ;;  %v936_v35 = vmax.f32 %v872_v47, 0.0 }
 0x180   :  { %v1557_v38 = vrot.slane %v1543_v19, %v9095_v48  ;;  %v1558_v36 = vcombine.high %v1550_v20, %v1550_v20  ;;  %v7681_v51 = vrot.slane %v1550_v20, 9  ;;  %v1523_v43 = vrot.slane %v1509_v25, %v9095_v48 }
 0x181   :  { %v4222_v10 = vsel %vm4177_vm7, %v3872_v8, %v4221_v61  ;;  %v1524_v44 = vcombine.high %v1516_v49, %v1516_v49  ;;  %v7673_v14 = vrot.slane %v1516_v49, 9  ;;  %v1560_v41 = vcombine.high %v936_v35, %v936_v35 }
 0x182   :  { %v4223_v16 = vsel %vm4179_vm8, %v3876_v29, %v4222_v10  ;;  %v1559_v24 = vcombine.high %v1557_v38, %v1557_v38  ;;  %v7682_v42 = vrot.slane %v1558_v36, 9  ;;  %v7683_v53 = vrot.slane %v1557_v38, 9 }
 0x183   :  { %v4224_v59 = vsel %vm4181_vm9, %v3880_v57, %v4223_v16  ;;  %v3265_v26 = vmax.f32 %v1550_v20, %v7681_v51  ;;  %v1525_v3 = vcombine.high %v1523_v43, %v1523_v43  ;;  %v7674_v2 = vrot.slane %v1524_v44, 9  ;;  %v9499_v16 = vpop.f32.mrb[54].mxu0 }
 0x184   :  { %4311 = vst.msk [vmem:[#allocation2 + $0x71] sm:$0xff] %vm55_vm0, %v4224_v59  ;;  %v7684_v58 = vrot.slane %v1559_v24, 9  ;;  %v3266_v11 = vmax.f32 %v1558_v36, %v7682_v42  ;;  %v3267_v55 = vmax.f32 %v1557_v38, %v7683_v53  ;;  %v7675_v9 = vrot.slane %v1523_v43, 9  ;;  %v9506_v59 = vld [vmem:[#allocation2 + $0x42] sm:$0xff] }
 0x185   :  { %v7676_v5 = vrot.slane %v1525_v3, 9  ;;  %v3257_v47 = vmax.f32 %v1516_v49, %v7673_v14  ;;  %v3258_v33 = vmax.f32 %v1524_v44, %v7674_v2  ;;  %v1567_v13 = vrot.slane %v936_v35, %v9095_v48  ;;  %v9503_v14 = vpop.f32.mrb[55].mxu0 }
 0x186   :  { %v3268_v6 = vmax.f32 %v1559_v24, %v7684_v58  ;;  %v3259_v29 = vmax.f32 %v1523_v43, %v7675_v9  ;;  %v1574_v19 = vrot.slane %v1560_v41, %v9095_v48  ;;  %v934_v20 = vmax.f32 %v870_v7, 0.0  ;;  %v4356_v43 = vld [vmem:[#allocation2 + $0x32] sm:$0xff] }
 0x187   :  { %v3260_v25 = vmax.f32 %v1525_v3, %v7676_v5  ;;  %v3457_v8 = vmax.f32 %v3257_v47, %v3265_v26  ;;  %v3458_v57 = vmax.f32 %v3258_v33, %v3266_v11  ;;  %v1575_v61 = vcombine.high %v1567_v13, %v1567_v13  ;;  %v9510_v11 = vld [vmem:[#allocation2 + $0x40] sm:$0xff] }
 0x188   :  { %v3459_v51 = vmax.f32 %v3259_v29, %v3267_v55  ;;  %v1576_v36 = vcombine.high %v1574_v19, %v1574_v19  ;;  %v7685_v38 = vrot.slane %v1567_v13, 9  ;;  %v7687_v10 = vrot.slane %v1574_v19, 9 }
 0x189   :  { %v3460_v42 = vmax.f32 %v3260_v25, %v3268_v6  ;;  %v3884_v49 = vrot.slane %v3457_v8, %v9104_v62  ;;  %v3888_v35 = vrot.slane %v3458_v57, %v9104_v62  ;;  %v7686_v44 = vrot.slane %v1575_v61, 9 }
 0x18a   :  { %v3892_v7 = vrot.slane %v3459_v51, %v9104_v62  ;;  %v7688_v41 = vrot.slane %v1576_v36, 9  ;;  %v3269_v24 = vmax.f32 %v1567_v13, %v7685_v38  ;;  %v3271_v53 = vmax.f32 %v1574_v19, %v7687_v10 }
 0x18b   :  { %v3896_v26 = vrot.slane %v3460_v42, %v9104_v62  ;;  %v4225_v3 = vsel %vm4169_vm3, %v3888_v35, %v3884_v49  ;;  %v3270_v2 = vmax.f32 %v1575_v61, %v7686_v44  ;;  %v1526_v58 = vcombine.high %v934_v20, %v934_v20 }
 0x18c   :  { %v4226_v55 = vsel %vm4171_vm4, %v3892_v7, %v4225_v3  ;;  %v3272_v9 = vmax.f32 %v1576_v36, %v7688_v41  ;;  %v1533_v5 = vrot.slane %v934_v20, %v9095_v48  ;;  %v8353_v47 = vpack.i.bf16 %v4356_v43, %v9392_v0 }
 0x18d   :  { %v1540_v33 = vrot.slane %v1526_v58, %v9095_v48  ;;  %v4227_v13 = vsel %vm4173_vm5, %v3896_v26, %v4226_v55  ;;  %v8358_v6 = vpack.i.bf16 %v9506_v59, %v4356_v43  ;;  %v804_v29 = vmul.f32 %v9403_v21, %v9236_v60 }
 0x18e   :  { %v1541_v19 = vcombine.high %v1533_v5, %v1533_v5  ;;  %v7677_v25 = vrot.slane %v1533_v5, 9  ;;  %8354 = vrot.lane.b32.xlu1 %v8353_v47, %s8766_s17  ;;  %v802_v8 = vmul.f32 %v9403_v21, %v9239_v4  ;;  %v8363_v20 = vpack.i.bf16 %v9510_v11, %v9442_v1 }
 0x18f   :  { %v1542_v0 = vcombine.high %v1540_v33, %v1540_v33  ;;  %v7679_v57 = vrot.slane %v1540_v33, 9  ;;  %8359 = vrot.lane.b32.xlu0 %v8358_v6, %s8767_s18  ;;  %v875_v61 = vadd.f32 %v9417_v37, %v804_v29  ;;  %v805_v51 = vmul.f32 %v9403_v21, %v9242_v12 }
 0x190   :  { %v7678_v60 = vrot.slane %v1541_v19, 9  ;;  %v3261_v36 = vmax.f32 %v1533_v5, %v7677_v25  ;;  %v873_v38 = vadd.f32 %v9417_v37, %v802_v8  ;;  %v803_v10 = vmul.f32 %v9403_v21, %v9248_v22 }
 0x191   :  { %v7680_v4 = vrot.slane %v1542_v0, 9  ;;  %v3263_v42 = vmax.f32 %v1540_v33, %v7679_v57  ;;  %v939_v49 = vmax.f32 %v875_v61, 0.0  ;;  %v876_v1 = vadd.f32 %v9417_v37, %v805_v51  ;;  %v9544_v57 = vpop.f32.mrb[56].mxu0 }
 0x192   :  { %v3262_v35 = vmax.f32 %v1541_v19, %v7678_v60  ;;  %v3461_v44 = vmax.f32 %v3261_v36, %v3269_v24  ;;  %v937_v43 = vmax.f32 %v873_v38, 0.0  ;;  %8364 = vrot.lane.b32.xlu1 %v8363_v20, %s8768_s19  ;;  %v874_v7 = vadd.f32 %v9417_v37, %v803_v10  ;;  %v9547_v36 = vpop.f32.mrb[57].mxu0 }
 0x193   :  { %v3264_v12 = vmax.f32 %v1542_v0, %v7680_v4  ;;  %v3463_v41 = vmax.f32 %v3263_v42, %v3271_v53  ;;  %v1611_v26 = vcombine.high %v939_v49, %v939_v49  ;;  %v1618_v3 = vrot.slane %v939_v49, %v9095_v48  ;;  %v4342_v42 = vld [vmem:[#allocation2 + $0x51] sm:$0xff]  ;;  %v9550_v49 = vpop.f32.mrb[58].mxu0 }
 0x194   :  { %v3462_v58 = vmax.f32 %v3262_v35, %v3270_v2  ;;  %v3900_v22 = vrot.slane %v3461_v44, %v9104_v62  ;;  %v1577_v55 = vcombine.high %v937_v43, %v937_v43  ;;  %v1584_v5 = vrot.slane %v937_v43, %v9095_v48 }
 0x195   :  { %v3464_v47 = vmax.f32 %v3264_v12, %v3272_v9  ;;  %v3908_v33 = vrot.slane %v3463_v41, %v9104_v62  ;;  %v1625_v24 = vrot.slane %v1611_v26, %v9095_v48  ;;  %v1626_v6 = vcombine.high %v1618_v3, %v1618_v3 }
 0x196   :  { %v3904_v29 = vrot.slane %v3462_v58, %v9104_v62  ;;  %v4228_v19 = vsel %vm4175_vm6, %v3900_v22, %v4227_v13  ;;  %v7697_v53 = vrot.slane %v1618_v3, 9  ;;  %v1591_v25 = vrot.slane %v1577_v55, %v9095_v48  ;;  %v4341_v22 = vld [vmem:[#allocation2 + $0x41] sm:$0xff] }
 0x197   :  { %v3912_v2 = vrot.slane %v3464_v47, %v9104_v62  ;;  %v1627_v8 = vcombine.high %v1625_v24, %v1625_v24  ;;  %v7698_v20 = vrot.slane %v1626_v6, 9  ;;  %v7699_v0 = vrot.slane %v1625_v24, 9 }
 0x198   :  { %v4229_v9 = vsel %vm4177_vm7, %v3904_v29, %v4228_v19  ;;  %v3281_v61 = vmax.f32 %v1618_v3, %v7697_v53  ;;  %v1592_v51 = vcombine.high %v1584_v5, %v1584_v5  ;;  %v1593_v60 = vcombine.high %v1591_v25, %v1591_v25 }
 0x199   :  { %v4230_v38 = vsel %vm4179_vm8, %v3908_v33, %v4229_v9  ;;  %v7700_v13 = vrot.slane %v1627_v8, 9  ;;  %v3282_v10 = vmax.f32 %v1626_v6, %v7698_v20  ;;  %v3283_v4 = vmax.f32 %v1625_v24, %v7699_v0 }
 0x19a   :  { %v4231_v35 = vsel %vm4181_vm9, %v3912_v2, %v4230_v38  ;;  %v7689_v44 = vrot.slane %v1584_v5, 9  ;;  %v7690_v43 = vrot.slane %v1592_v51, 9  ;;  %v7691_v12 = vrot.slane %v1591_v25, 9  ;;  %v9557_v2 = vpop.f32.mrb[59].mxu0 }
 0x19b   :  { %4312 = vst.msk [vmem:[#allocation2 + $0x81] sm:$0xff] %vm55_vm0, %v4231_v35  ;;  %v3284_v41 = vmax.f32 %v1627_v8, %v7700_v13  ;;  %v7692_v26 = vrot.slane %v1593_v60, 9  ;;  %v940_v3 = vmax.f32 %v876_v1, 0.0  ;;  %v938_v58 = vmax.f32 %v874_v7, 0.0 }
 0x19c   :  { %v3273_v55 = vmax.f32 %v1584_v5, %v7689_v44  ;;  %v3274_v47 = vmax.f32 %v1592_v51, %v7690_v43  ;;  %v3275_v33 = vmax.f32 %v1591_v25, %v7691_v12  ;;  %v9554_v6 = vpack.i.bf16 %v4342_v42, %v4341_v22 }
 0x19d   :  { %v3276_v24 = vmax.f32 %v1593_v60, %v7692_v26  ;;  %v1628_v29 = vcombine.high %v940_v3, %v940_v3  ;;  %v1635_v19 = vrot.slane %v940_v3, %v9095_v48  ;;  %v1594_v53 = vcombine.high %v938_v58, %v938_v58 }
 0x19e   :  { %v3465_v20 = vmax.f32 %v3273_v55, %v3281_v61  ;;  %v3466_v0 = vmax.f32 %v3274_v47, %v3282_v10  ;;  %v3467_v9 = vmax.f32 %v3275_v33, %v3283_v4  ;;  %v1601_v8 = vrot.slane %v938_v58, %v9095_v48  ;;  %8379 = vrot.lane.b32.xlu1 %v9554_v6, %s8767_s18 }
 0x19f   :  { %v3468_v1 = vmax.f32 %v3276_v24, %v3284_v41  ;;  %v1642_v7 = vrot.slane %v1628_v29, %v9095_v48  ;;  %v1643_v5 = vcombine.high %v1635_v19, %v1635_v19  ;;  %v7701_v25 = vrot.slane %v1635_v19, 9  ;;  %v4421_v41 = vld [vmem:[#allocation2 + $0x50] sm:$0xff] }
 0x1a0   :  { %v3916_v51 = vrot.slane %v3465_v20, %v9104_v62  ;;  %v3920_v60 = vrot.slane %v3466_v0, %v9104_v62  ;;  %v3924_v38 = vrot.slane %v3467_v9, %v9104_v62  ;;  %v1608_v61 = vrot.slane %v1594_v53, %v9095_v48  ;;  %v4358_v29 = vld [vmem:[#allocation2 + $0x52] sm:$0xff] }
 0x1a1   :  { %v3928_v13 = vrot.slane %v3468_v1, %v9104_v62  ;;  %v1644_v10 = vcombine.high %v1642_v7, %v1642_v7  ;;  %v7702_v4 = vrot.slane %v1643_v5, 9  ;;  %v7703_v42 = vrot.slane %v1642_v7, 9 }
 0x1a2   :  { %v4232_v35 = vsel %vm4169_vm3, %v3920_v60, %v3916_v51  ;;  %v3285_v44 = vmax.f32 %v1635_v19, %v7701_v25  ;;  %v1609_v43 = vcombine.high %v1601_v8, %v1601_v8  ;;  %v1610_v12 = vcombine.high %v1608_v61, %v1608_v61 }
 0x1a3   :  { %v4233_v26 = vsel %vm4171_vm4, %v3924_v38, %v4232_v35  ;;  %v7704_v3 = vrot.slane %v1644_v10, 9  ;;  %v3286_v58 = vmax.f32 %v1643_v5, %v7702_v4  ;;  %v3287_v22 = vmax.f32 %v1642_v7, %v7703_v42 }
 0x1a4   :  { %v7693_v55 = vrot.slane %v1601_v8, 9  ;;  %v7694_v47 = vrot.slane %v1609_v43, 9  ;;  %v7695_v33 = vrot.slane %v1608_v61, 9  ;;  %v7696_v24 = vrot.slane %v1610_v12, 9 }
 0x1a5   :  { %v3288_v53 = vmax.f32 %v1644_v10, %v7704_v3  ;;  %v4234_v20 = vsel %vm4173_vm5, %v3928_v13, %v4233_v26  ;;  %v8368_v0 = vpack.i.bf16 %v4421_v41, %v9510_v11  ;;  %v808_v19 = vmul.f32 %v9403_v21, %v9264_v18 }
 0x1a6   :  { %v3277_v9 = vmax.f32 %v1601_v8, %v7693_v55  ;;  %v3278_v1 = vmax.f32 %v1609_v43, %v7694_v47  ;;  %v3279_v25 = vmax.f32 %v1608_v61, %v7695_v33  ;;  %v3280_v51 = vmax.f32 %v1610_v12, %v7696_v24 }
 0x1a7   :  { %8369 = vrot.lane.b32.xlu0 %v8368_v0, %s8766_s17  ;;  %v879_v7 = vadd.f32 %v9417_v37, %v808_v19  ;;  %v806_v5 = vmul.f32 %v9403_v21, %v9268_v50  ;;  %v8383_v60 = vpack.i.bf16 %v4358_v29, %v9506_v59  ;;  %v809_v38 = vmul.f32 %v9403_v21, %v9276_v46  ;;  %v9586_v50 = vld [vmem:[#allocation2 + $0x60] sm:$0xff] }
 0x1a8   :  { %v3469_v11 = vmax.f32 %v3277_v9, %v3285_v44  ;;  %v3470_v13 = vmax.f32 %v3278_v1, %v3286_v58  ;;  %v3471_v10 = vmax.f32 %v3279_v25, %v3287_v22  ;;  %v3472_v18 = vmax.f32 %v3280_v51, %v3288_v53  ;;  %v9588_v59 = vld [vmem:[#allocation2 + $0x62] sm:$0xff] }
 0x1a9   :  { %v943_v8 = vmax.f32 %v879_v7, 0.0  ;;  %v877_v61 = vadd.f32 %v9417_v37, %v806_v5  ;;  %8384 = vrot.lane.b32.xlu1 %v8383_v60, %s8766_s17  ;;  %v880_v4 = vadd.f32 %v9417_v37, %v809_v38  ;;  %v807_v42 = vmul.f32 %v9403_v21, %v9278_v28 }
 0x1aa   :  { %v3932_v46 = vrot.slane %v3469_v11, %v9104_v62  ;;  %v3936_v35 = vrot.slane %v3470_v13, %v9104_v62  ;;  %v3940_v44 = vrot.slane %v3471_v10, %v9104_v62  ;;  %v3944_v43 = vrot.slane %v3472_v18, %v9104_v62 }
 0x1ab   :  { %v1679_v12 = vcombine.high %v943_v8, %v943_v8  ;;  %v1686_v26 = vrot.slane %v943_v8, %v9095_v48  ;;  %v941_v3 = vmax.f32 %v877_v61, 0.0  ;;  %8374 = vrot.lane.b32.xlu0 %v9554_v6, %s8768_s19  ;;  %v944_v28 = vmax.f32 %v880_v4, 0.0 }
 0x1ac   :  { %v4235_v58 = vsel %vm4175_vm6, %v3932_v46, %v4234_v20  ;;  %v878_v22 = vadd.f32 %v9417_v37, %v807_v42  ;;  %v8393_v55 = vpack.i.bf16 %v9586_v50, %v4421_v41  ;;  %v8388_v47 = vpack.i.bf16 %v9588_v59, %v4358_v29  ;;  %v9608_v29 = vpop.f32.mrb[60].mxu0 }
 0x1ad   :  { %v4236_v33 = vsel %vm4177_vm7, %v3936_v35, %v4235_v58  ;;  %v1693_v24 = vrot.slane %v1679_v12, %v9095_v48  ;;  %v1694_v53 = vcombine.high %v1686_v26, %v1686_v26  ;;  %v7713_v0 = vrot.slane %v1686_v26, 9  ;;  %v9612_v11 = vpop.f32.mrb[61].mxu0 }
 0x1ae   :  { %v4237_v19 = vsel %vm4179_vm8, %v3940_v44, %v4236_v33  ;;  %v1645_v9 = vcombine.high %v941_v3, %v941_v3  ;;  %v1652_v6 = vrot.slane %v941_v3, %v9095_v48  ;;  %v1696_v1 = vcombine.high %v944_v28, %v944_v28  ;;  %8394 = vrot.lane.b32.xlu1 %v8393_v55, %s8768_s19 }
 0x1af   :  { %v4238_v20 = vsel %vm4181_vm9, %v3944_v43, %v4237_v19  ;;  %v1695_v25 = vcombine.high %v1693_v24, %v1693_v24  ;;  %v7714_v41 = vrot.slane %v1694_v53, 9  ;;  %v7715_v51 = vrot.slane %v1693_v24, 9  ;;  %8389 = vrot.lane.b32.xlu0 %v8388_v47, %s8767_s18 }
 0x1b0   :  { %4313 = vst.msk [vmem:[#allocation2 + $0xb1] sm:$0xff] %vm55_vm0, %v4238_v20  ;;  %v3297_v7 = vmax.f32 %v1686_v26, %v7713_v0  ;;  %v1659_v5 = vrot.slane %v1645_v9, %v9095_v48  ;;  %v1660_v60 = vcombine.high %v1652_v6, %v1652_v6  ;;  %v7705_v38 = vrot.slane %v1652_v6, 9  ;;  %v9616_v26 = vpop.f32.mrb[62].mxu0 }
 0x1b1   :  { %v7716_v13 = vrot.slane %v1695_v25, 9  ;;  %v3298_v10 = vmax.f32 %v1694_v53, %v7714_v41  ;;  %v3299_v18 = vmax.f32 %v1693_v24, %v7715_v51  ;;  %v1703_v8 = vrot.slane %v944_v28, %v9095_v48  ;;  %v9618_v33 = vpop.f32.mrb[63].mxu0 }
 0x1b2   :  { %v1661_v61 = vcombine.high %v1659_v5, %v1659_v5  ;;  %v7706_v4 = vrot.slane %v1660_v60, 9  ;;  %v7707_v42 = vrot.slane %v1659_v5, 9  ;;  %v3289_v46 = vmax.f32 %v1652_v6, %v7705_v38 }
 0x1b3   :  { %v3300_v35 = vmax.f32 %v1695_v25, %v7716_v13  ;;  %v1710_v44 = vrot.slane %v1696_v1, %v9095_v48  ;;  %v1711_v43 = vcombine.high %v1703_v8, %v1703_v8  ;;  %v7717_v12 = vrot.slane %v1703_v8, 9 }
 0x1b4   :  { %v7708_v3 = vrot.slane %v1661_v61, 9  ;;  %v3290_v58 = vmax.f32 %v1660_v60, %v7706_v4  ;;  %v3291_v55 = vmax.f32 %v1659_v5, %v7707_v42  ;;  %v3473_v47 = vmax.f32 %v3289_v46, %v3297_v7 }
 0x1b5   :  { %v1712_v24 = vcombine.high %v1710_v44, %v1710_v44  ;;  %v7718_v53 = vrot.slane %v1711_v43, 9  ;;  %v7719_v28 = vrot.slane %v1710_v44, 9  ;;  %v3301_v0 = vmax.f32 %v1703_v8, %v7717_v12 }
 0x1b6   :  { %v3292_v19 = vmax.f32 %v1661_v61, %v7708_v3  ;;  %v3474_v9 = vmax.f32 %v3290_v58, %v3298_v10  ;;  %v3475_v6 = vmax.f32 %v3291_v55, %v3299_v18  ;;  %v3948_v20 = vrot.slane %v3473_v47, %v9104_v62 }
 0x1b7   :  { %v7720_v1 = vrot.slane %v1712_v24, 9  ;;  %v3302_v25 = vmax.f32 %v1711_v43, %v7718_v53  ;;  %v3303_v41 = vmax.f32 %v1710_v44, %v7719_v28  ;;  %v942_v51 = vmax.f32 %v878_v22, 0.0 }
 0x1b8   :  { %v3476_v38 = vmax.f32 %v3292_v19, %v3300_v35  ;;  %v3952_v60 = vrot.slane %v3474_v9, %v9104_v62  ;;  %v3956_v7 = vrot.slane %v3475_v6, %v9104_v62  ;;  %v812_v5 = vmul.f32 %v9403_v21, %v9301_v39 }
 0x1b9   :  { %v3304_v13 = vmax.f32 %v1712_v24, %v7720_v1  ;;  %v1662_v4 = vcombine.high %v942_v51, %v942_v51  ;;  %v1669_v8 = vrot.slane %v942_v51, %v9095_v48  ;;  %v810_v10 = vmul.f32 %v9403_v21, %v9303_v40 }
 0x1ba   :  { %v3960_v18 = vrot.slane %v3476_v38, %v9104_v62  ;;  %v4239_v61 = vsel %vm4169_vm3, %v3952_v60, %v3948_v20  ;;  %v883_v22 = vadd.f32 %v9417_v37, %v812_v5  ;;  %v813_v42 = vmul.f32 %v9403_v21, %v9311_v31 }
 0x1bb   :  { %v4240_v46 = vsel %vm4171_vm4, %v3956_v7, %v4239_v61  ;;  %v1676_v39 = vrot.slane %v1662_v4, %v9095_v48  ;;  %v1677_v35 = vcombine.high %v1669_v8, %v1669_v8  ;;  %v7709_v44 = vrot.slane %v1669_v8, 9 }
 0x1bc   :  { %v4241_v43 = vsel %vm4173_vm5, %v3960_v18, %v4240_v46  ;;  %v947_v12 = vmax.f32 %v883_v22, 0.0  ;;  %v881_v40 = vadd.f32 %v9417_v37, %v810_v10  ;;  %v884_v3 = vadd.f32 %v9417_v37, %v813_v42 }
 0x1bd   :  { %v1678_v58 = vcombine.high %v1676_v39, %v1676_v39  ;;  %v7710_v55 = vrot.slane %v1677_v35, 9  ;;  %v7711_v47 = vrot.slane %v1676_v39, 9  ;;  %v3293_v24 = vmax.f32 %v1669_v8, %v7709_v44 }
 0x1be   :  { %v1747_v53 = vcombine.high %v947_v12, %v947_v12  ;;  %v1754_v31 = vrot.slane %v947_v12, %v9095_v48  ;;  %v945_v28 = vmax.f32 %v881_v40, 0.0  ;;  %v948_v19 = vmax.f32 %v884_v3, 0.0 }
 0x1bf   :  { %v7712_v9 = vrot.slane %v1678_v58, 9  ;;  %v3294_v6 = vmax.f32 %v1677_v35, %v7710_v55  ;;  %v3295_v20 = vmax.f32 %v1676_v39, %v7711_v47  ;;  %v3477_v1 = vmax.f32 %v3293_v24, %v3301_v0 }
 0x1c0   :  { %v1761_v51 = vrot.slane %v1747_v53, %v9095_v48  ;;  %v1762_v38 = vcombine.high %v1754_v31, %v1754_v31  ;;  %v7729_v60 = vrot.slane %v1754_v31, 9  ;;  %v1713_v7 = vcombine.high %v945_v28, %v945_v28 }
 0x1c1   :  { %v3296_v5 = vmax.f32 %v1678_v58, %v7712_v9  ;;  %v3478_v4 = vmax.f32 %v3294_v6, %v3302_v25  ;;  %v3479_v10 = vmax.f32 %v3295_v20, %v3303_v41  ;;  %v3964_v18 = vrot.slane %v3477_v1, %v9104_v62 }
 0x1c2   :  { %v1763_v8 = vcombine.high %v1761_v51, %v1761_v51  ;;  %v7730_v61 = vrot.slane %v1762_v38, 9  ;;  %v7731_v22 = vrot.slane %v1761_v51, 9  ;;  %v3313_v42 = vmax.f32 %v1754_v31, %v7729_v60 }
 0x1c3   :  { %v3480_v46 = vmax.f32 %v3296_v5, %v3304_v13  ;;  %v3968_v44 = vrot.slane %v3478_v4, %v9104_v62  ;;  %v3972_v39 = vrot.slane %v3479_v10, %v9104_v62  ;;  %v4242_v0 = vsel %vm4175_vm6, %v3964_v18, %v4241_v43 }
 0x1c4   :  { %v7732_v35 = vrot.slane %v1763_v8, 9  ;;  %v3314_v12 = vmax.f32 %v1762_v38, %v7730_v61  ;;  %v3315_v40 = vmax.f32 %v1761_v51, %v7731_v22  ;;  %v1720_v3 = vrot.slane %v945_v28, %v9095_v48 }
 0x1c5   :  { %v3976_v25 = vrot.slane %v3480_v46, %v9104_v62  ;;  %v4243_v41 = vsel %vm4177_vm7, %v3968_v44, %v4242_v0  ;;  %v1727_v58 = vrot.slane %v1713_v7, %v9095_v48  ;;  %v1764_v55 = vcombine.high %v948_v19, %v948_v19  ;;  %v4344_v44 = vld [vmem:[#allocation2 + $0x71] sm:$0xff] }
 0x1c6   :  { %v4244_v13 = vsel %vm4179_vm8, %v3972_v39, %v4243_v41  ;;  %v3316_v47 = vmax.f32 %v1763_v8, %v7732_v35  ;;  %v1728_v24 = vcombine.high %v1720_v3, %v1720_v3  ;;  %v7721_v53 = vrot.slane %v1720_v3, 9  ;;  %v9657_v39 = vld [vmem:[#allocation2 + $0x70] sm:$0xff] }
 0x1c7   :  { %v4245_v31 = vsel %vm4181_vm9, %v3976_v25, %v4244_v13  ;;  %v1729_v43 = vcombine.high %v1727_v58, %v1727_v58  ;;  %v7723_v9 = vrot.slane %v1727_v58, 9  ;;  %v1771_v6 = vrot.slane %v948_v19, %v9095_v48 }
 0x1c8   :  { %4314 = vst.msk [vmem:[#allocation2 + $0xc1] sm:$0xff] %vm55_vm0, %v4245_v31  ;;  %v7722_v28 = vrot.slane %v1728_v24, 9  ;;  %v3305_v20 = vmax.f32 %v1720_v3, %v7721_v53  ;;  %v1778_v1 = vrot.slane %v1764_v55, %v9095_v48  ;;  %v811_v51 = vmul.f32 %v9403_v21, %v9318_v27  ;;  %v9666_v55 = vld [vmem:[#allocation2 + $0x72] sm:$0xff]  ;;  %v8633_v31 = vld [vmem:[%s10837_s4] sm:$0xff]  }
 0x1c9   :  { %v7724_v38 = vrot.slane %v1729_v43, 9  ;;  %v3307_v60 = vmax.f32 %v1727_v58, %v7723_v9  ;;  %v1779_v7 = vcombine.high %v1771_v6, %v1771_v6  ;;  %v7733_v5 = vrot.slane %v1771_v6, 9 }
 0x1ca   :  { %v3306_v4 = vmax.f32 %v1728_v24, %v7722_v28  ;;  %v3481_v10 = vmax.f32 %v3305_v20, %v3313_v42  ;;  %v1780_v18 = vcombine.high %v1778_v1, %v1778_v1  ;;  %v7735_v8 = vrot.slane %v1778_v1, 9 }
 0x1cb   :  { %v3308_v61 = vmax.f32 %v1729_v43, %v7724_v38  ;;  %v3483_v22 = vmax.f32 %v3307_v60, %v3315_v40  ;;  %v7734_v19 = vrot.slane %v1779_v7, 9  ;;  %v9655_v46 = vmax.f32 %v1771_v6, %v7733_v5  ;;  %v4343_v40 = vld [vmem:[#allocation2 + $0x61] sm:$0xff] }
 0x1cc   :  { %v3482_v0 = vmax.f32 %v3306_v4, %v3314_v12  ;;  %v3980_v35 = vrot.slane %v3481_v10, %v9104_v62  ;;  %v7736_v27 = vrot.slane %v1780_v18, 9  ;;  %v9660_v3 = vmax.f32 %v1778_v1, %v7735_v8 }
 0x1cd   :  { %v3484_v25 = vmax.f32 %v3308_v61, %v3316_v47  ;;  %v3988_v41 = vrot.slane %v3483_v22, %v9104_v62  ;;  %v9663_v42 = vmax.f32 %v1779_v7, %v7734_v19  ;;  %v882_v58 = vadd.f32 %v9417_v37, %v811_v51  ;;  %v8632_v47 = vld [vmem:[%s10837_s4 + $0x40] sm:$0xff]  }
 0x1ce   :  { %v3984_v13 = vrot.slane %v3482_v0, %v9104_v62  ;;  %v9669_v24 = vmax.f32 %v1780_v18, %v7736_v27  ;;  %v8408_v12 = vpack.i.bf16 %v4344_v44, %v4343_v40  ;;  %v8398_v53 = vpack.i.bf16 %v9657_v39, %v9586_v50  ;;  %v8634_v50 = vld [vmem:[%s10837_s4 + $0x48] sm:$0xff]   ;;  %v9697_v7 = vld [vmem:[#allocation2 + $0x80] sm:$0xff]  ;;  %8018 = vmatprep.subr.bf16.mxu1 %v8632_v47  ;;  %v8637_v47 = vld [vmem:[%s10837_s4 + $0x10] sm:$0xff]  }
 0x1cf   :  { %v3992_v43 = vrot.slane %v3484_v25, %v9104_v62  ;;  %v946_v9 = vmax.f32 %v882_v58, 0.0  ;;  %v816_v6 = vmul.f32 %v9403_v21, %v9371_v63  ;;  %v814_v28 = vmul.f32 %v9403_v21, %v9374_v23  ;;  %8019 = vmatpush3.bf16.msra.mxu1 %v8633_v31  ;;  %v9723_v44 = vld [vmem:[%s10836_s3] ss:$0 sm:$0xff] }
 0x1d0   :  { %v4246_v20 = vsel %vm4169_vm3, %v3984_v13, %v3980_v35  ;;  %8409 = vrot.lane.b32.xlu1 %v8408_v12, %s8767_s18  ;;  %8399 = vrot.lane.b32.xlu0 %v8398_v53, %s8766_s17  ;;  %v8413_v1 = vpack.i.bf16 %v9666_v55, %v9588_v59  ;;  %v817_v51 = vmul.f32 %v9403_v21, %v9384_v56  ;;  %v9705_v56 = vld [vmem:[%s10835_s2] ss:$0 sm:$0xff]  ;;  %v8635_v59 = vld [vmem:[%s10837_s4 + $0x8] sm:$0xff]  }
 0x1d1   :  { %v4247_v63 = vsel %vm4171_vm4, %v3988_v41, %v4246_v20  ;;  %v1730_v38 = vcombine.high %v946_v9, %v946_v9  ;;  %v1737_v23 = vrot.slane %v946_v9, %v9095_v48  ;;  %v887_v60 = vadd.f32 %v9417_v37, %v816_v6  ;;  %8020 = vmatprep.subr.bf16.mxu1 %v8634_v50  ;;  %v8638_v6 = vld [vmem:[%s10837_s4 + $0x58] sm:$0xff]  }
 0x1d2   :  { %v4248_v5 = vsel %vm4173_vm5, %v3992_v43, %v4247_v63  ;;  %v885_v4 = vadd.f32 %v9417_v37, %v814_v28  ;;  %v888_v10 = vadd.f32 %v9417_v37, %v817_v51  ;;  %v815_v21 = vmul.f32 %v9705_v56, %v9390_v45  ;;  %v8636_v37 = vld [vmem:[%s10837_s4 + $0x50] sm:$0xff]  }
 0x1d3   :  { %v1744_v18 = vrot.slane %v1730_v38, %v9095_v48  ;;  %v1745_v8 = vcombine.high %v1737_v23, %v1737_v23  ;;  %v7725_v61 = vrot.slane %v1737_v23, 9  ;;  %v951_v22 = vmax.f32 %v887_v60, 0.0  ;;  %8021 = vmatpush3.bf16.msra.mxu1 %v8635_v59 }
 0x1d4   :  { %v949_v19 = vmax.f32 %v885_v4, 0.0  ;;  %8414 = vrot.lane.b32.xlu1 %v8413_v1, %s8766_s17  ;;  %8404 = vrot.lane.b32.xlu0 %v8408_v12, %s8768_s19  ;;  %v9718_v45 = vmax.f32 %v888_v10, 0.0  ;;  %v9726_v0 = vadd.f32 %v9723_v44, %v815_v21  ;;  %v8433_v35 = vpack.i.bf16 %v9697_v7, %v9657_v39  ;;  %v8639_v21 = vld [vmem:[%s10837_s4 + $0x18] sm:$0xff]  }
 0x1d5   :  { %v1746_v27 = vcombine.high %v1744_v18, %v1744_v18  ;;  %v7726_v25 = vrot.slane %v1745_v8, 9  ;;  %v7727_v41 = vrot.slane %v1744_v18, 9  ;;  %v3309_v58 = vmax.f32 %v1737_v23, %v7725_v61  ;;  %8022 = vmatprep.subr.bf16.mxu1 %v8636_v37 }
 0x1d6   :  { %v1815_v40 = vcombine.high %v951_v22, %v951_v22  ;;  %v1822_v13 = vrot.slane %v951_v22, %v9095_v48  ;;  %v1781_v12 = vcombine.high %v949_v19, %v949_v19  ;;  %v1788_v53 = vrot.slane %v949_v19, %v9095_v48 }
 0x1d7   :  { %v7728_v31 = vrot.slane %v1746_v27, 9  ;;  %v3310_v43 = vmax.f32 %v1745_v8, %v7726_v25  ;;  %v3311_v9 = vmax.f32 %v1744_v18, %v7727_v41  ;;  %v3485_v39 = vmax.f32 %v3309_v58, %v9655_v46  ;;  %8023 = vmatpush3.bf16.msra.mxu1 %v8637_v47 }
 0x1d8   :  { %v1829_v28 = vrot.slane %v1815_v40, %v9095_v48  ;;  %v1830_v50 = vcombine.high %v1822_v13, %v1822_v13  ;;  %v7745_v20 = vrot.slane %v1822_v13, 9  ;;  %v1795_v1 = vrot.slane %v1781_v12, %v9095_v48  ;;  %8434 = vrot.lane.b32.xlu1 %v8433_v35, %s8768_s19  ;;  %8024 = vmatprep.subr.bf16.mxu1 %v8638_v6  ;;  %v8641_v12 = vld [vmem:[%s10837_s4 + $0x20] sm:$0xff]  }
 0x1d9   :  { %v3312_v51 = vmax.f32 %v1746_v27, %v7728_v31  ;;  %v3486_v63 = vmax.f32 %v3310_v43, %v9663_v42  ;;  %v3487_v38 = vmax.f32 %v3311_v9, %v9660_v3  ;;  %v3996_v46 = vrot.slane %v3485_v39, %v9104_v62  ;;  %v8640_v3 = vld [vmem:[%s10837_s4 + $0x60] sm:$0xff]   ;;  %v8642_v39 = vld [vmem:[%s10837_s4 + $0x68] sm:$0xff]  }
 0x1da   :  { %v1831_v23 = vcombine.high %v1829_v28, %v1829_v28  ;;  %v7746_v60 = vrot.slane %v1830_v50, 9  ;;  %v7747_v4 = vrot.slane %v1829_v28, 9  ;;  %v3329_v10 = vmax.f32 %v1822_v13, %v7745_v20  ;;  %v4408_v13 = vld [vmem:[#allocation2 + $0x82] sm:$0xff] }
 0x1db   :  { %v3488_v59 = vmax.f32 %v3312_v51, %v9669_v24  ;;  %v4000_v18 = vrot.slane %v3486_v63, %v9104_v62  ;;  %v4004_v8 = vrot.slane %v3487_v38, %v9104_v62  ;;  %v4249_v42 = vsel %vm4175_vm6, %v3996_v46, %v4248_v5  ;;  %8025 = vmatpush3.bf16.msra.mxu1 %v8639_v21 }
 0x1dc   :  { %v7748_v61 = vrot.slane %v1831_v23, 9  ;;  %v3330_v22 = vmax.f32 %v1830_v50, %v7746_v60  ;;  %v3331_v37 = vmax.f32 %v1829_v28, %v7747_v4  ;;  %v1796_v19 = vcombine.high %v1788_v53, %v1788_v53  ;;  %8026 = vmatprep.subr.bf16.mxu1 %v8640_v3 }
 0x1dd   :  { %v4008_v35 = vrot.slane %v3488_v59, %v9104_v62  ;;  %v4250_v27 = vsel %vm4177_vm7, %v4000_v18, %v4249_v42  ;;  %v1797_v24 = vcombine.high %v1795_v1, %v1795_v1  ;;  %v7737_v25 = vrot.slane %v1788_v53, 9 }
 0x1de   :  { %v4251_v41 = vsel %vm4179_vm8, %v4004_v8, %v4250_v27  ;;  %v3332_v58 = vmax.f32 %v1831_v23, %v7748_v61  ;;  %v7738_v40 = vrot.slane %v1796_v19, 9  ;;  %v7739_v5 = vrot.slane %v1795_v1, 9 }
 0x1df   :  { %v4252_v47 = vsel %vm4181_vm9, %v4008_v35, %v4251_v41  ;;  %v7740_v31 = vrot.slane %v1797_v24, 9  ;;  %v3321_v43 = vmax.f32 %v1788_v53, %v7737_v25  ;;  %v1832_v9 = vcombine.high %v9718_v45, %v9718_v45  ;;  %8027 = vmatpush3.bf16.msra.mxu1 %v8641_v12  ;;  %v4425_v25 = vld [vmem:[#allocation2 + $0x90] sm:$0xff]  ;;  %v8646_v12 = vld [vmem:[%s10837_s4 + $0x78] sm:$0xff]  }
 0x1e0   :  { %4315 = vst.msk [vmem:[#allocation2 + $0xd1] sm:$0xff] %vm55_vm0, %v4252_v47  ;;  %v3322_v6 = vmax.f32 %v1796_v19, %v7738_v40  ;;  %v3323_v28 = vmax.f32 %v1795_v1, %v7739_v5  ;;  %v1839_v50 = vrot.slane %v9718_v45, %v9095_v48  ;;  %v950_v20 = vmax.f32 %v9726_v0, 0.0  ;;  %v8643_v1 = vld [vmem:[%s10837_s4 + $0x28] sm:$0xff]   ;;  %8028 = vmatprep.subr.bf16.mxu1 %v8642_v39  ;;  %v8645_v41 = vld [vmem:[%s10837_s4 + $0x30] sm:$0xff]  }
 0x1e1   :  { %v3324_v51 = vmax.f32 %v1797_v24, %v7740_v31  ;;  %v3489_v63 = vmax.f32 %v3321_v43, %v3329_v10  ;;  %v1846_v53 = vrot.slane %v1832_v9, %v9095_v48  ;;  %v8418_v38 = vpack.i.bf16 %v4408_v13, %v9666_v55  ;;  %v8644_v55 = vld [vmem:[%s10837_s4 + $0x70] sm:$0xff]  }
 0x1e2   :  { %v3490_v46 = vmax.f32 %v3322_v6, %v3330_v22  ;;  %v3491_v23 = vmax.f32 %v3323_v28, %v3331_v37  ;;  %v1847_v60 = vcombine.high %v1839_v50, %v1839_v50  ;;  %v7749_v4 = vrot.slane %v1839_v50, 9 }
 0x1e3   :  { %v3492_v21 = vmax.f32 %v3324_v51, %v3332_v58  ;;  %v4012_v45 = vrot.slane %v3489_v63, %v9104_v62  ;;  %v1848_v59 = vcombine.high %v1846_v53, %v1846_v53  ;;  %v7751_v0 = vrot.slane %v1846_v53, 9  ;;  %8419 = vrot.lane.b32.xlu0 %v8418_v38, %s8767_s18  ;;  %8029 = vmatpush3.bf16.msra.mxu1 %v8643_v1  ;;  %v8647_v63 = vld [vmem:[%s10837_s4 + $0x38] sm:$0xff]  }
 0x1e4   :  { %v4016_v10 = vrot.slane %v3490_v46, %v9104_v62  ;;  %v4020_v18 = vrot.slane %v3491_v23, %v9104_v62  ;;  %v7750_v8 = vrot.slane %v1847_v60, 9  ;;  %v3333_v42 = vmax.f32 %v1839_v50, %v7749_v4  ;;  %8030 = vmatprep.subr.bf16.mxu1 %v8644_v55 }
 0x1e5   :  { %v4024_v3 = vrot.slane %v3492_v21, %v9104_v62  ;;  %v7752_v61 = vrot.slane %v1848_v59, 9  ;;  %v3335_v22 = vmax.f32 %v1846_v53, %v7751_v0  ;;  %v1798_v37 = vcombine.high %v950_v20, %v950_v20 }
 0x1e6   :  { %v4253_v19 = vsel %vm4169_vm3, %v4016_v10, %v4012_v45  ;;  %v3334_v35 = vmax.f32 %v1847_v60, %v7750_v8  ;;  %v1805_v27 = vrot.slane %v950_v20, %v9095_v48  ;;  %v820_v24 = vmul.f32 %v9705_v56, %v9430_v30 }
 0x1e7   :  { %v4254_v58 = vsel %vm4171_vm4, %v4020_v18, %v4253_v19  ;;  %v3336_v40 = vmax.f32 %v1848_v59, %v7752_v61  ;;  %v1812_v5 = vrot.slane %v1798_v37, %v9095_v48  ;;  %v818_v13 = vmul.f32 %v9705_v56, %v9434_v15  ;;  %8031 = vmatpush3.bf16.msra.mxu1 %v8645_v41 }
 0x1e8   :  { %v1813_v30 = vcombine.high %v1805_v27, %v1805_v27  ;;  %v7741_v47 = vrot.slane %v1805_v27, 9  ;;  %v4255_v31 = vsel %vm4173_vm5, %v4024_v3, %v4254_v58  ;;  %v891_v43 = vadd.f32 %v9723_v44, %v820_v24  ;;  %8032 = vmatprep.subr.bf16.mxu1 %v8646_v12 }
 0x1e9   :  { %v1814_v9 = vcombine.high %v1812_v5, %v1812_v5  ;;  %v7743_v39 = vrot.slane %v1812_v5, 9  ;;  %v889_v6 = vadd.f32 %v9723_v44, %v818_v13  ;;  %v8423_v28 = vpack.i.bf16 %v4425_v25, %v9697_v7  ;;  %v4441_v13 = vld [vmem:[#allocation2 + $0x91] sm:$0xff] }
 0x1ea   :  { %v7742_v50 = vrot.slane %v1813_v30, 9  ;;  %v3325_v20 = vmax.f32 %v1805_v27, %v7741_v47  ;;  %v955_v15 = vmax.f32 %v891_v43, 0.0  ;;  %v821_v51 = vmul.f32 %v9705_v56, %v9451_v17 }
 0x1eb   :  { %v7744_v53 = vrot.slane %v1814_v9, 9  ;;  %v3327_v38 = vmax.f32 %v1812_v5, %v7743_v39  ;;  %v953_v46 = vmax.f32 %v889_v6, 0.0  ;;  %8424 = vrot.lane.b32.xlu0 %v8423_v28, %s8766_s17  ;;  %v819_v23 = vmul.f32 %v9705_v56, %v9459_v52  ;;  %8033 = vmatpush3.bf16.msra.mxu1 %v8647_v63  ;;  %v4440_v39 = vld [vmem:[#allocation2 + $0x81] sm:$0xff] }
 0x1ec   :  { %v3326_v7 = vmax.f32 %v1813_v30, %v7742_v50  ;;  %v3493_v60 = vmax.f32 %v3325_v20, %v3333_v42  ;;  %v1883_v4 = vcombine.high %v955_v15, %v955_v15  ;;  %v1890_v1 = vrot.slane %v955_v15, %v9095_v48 }
 0x1ed   :  { %v3328_v17 = vmax.f32 %v1814_v9, %v7744_v53  ;;  %v3495_v21 = vmax.f32 %v3327_v38, %v3335_v22  ;;  %v1849_v45 = vcombine.high %v953_v46, %v953_v46  ;;  %v1856_v59 = vrot.slane %v953_v46, %v9095_v48  ;;  %v4345_v9 = vld [vmem:[#allocation2 + $0xa1] sm:$0xff] }
 0x1ee   :  { %v3494_v0 = vmax.f32 %v3326_v7, %v3334_v35  ;;  %v4028_v55 = vrot.slane %v3493_v60, %v9104_v62  ;;  %v1897_v10 = vrot.slane %v1883_v4, %v9095_v48  ;;  %v1898_v18 = vcombine.high %v1890_v1, %v1890_v1 }
 0x1ef   :  { %v3496_v8 = vmax.f32 %v3328_v17, %v3336_v40  ;;  %v4036_v52 = vrot.slane %v3495_v21, %v9104_v62  ;;  %v7761_v3 = vrot.slane %v1890_v1, 9  ;;  %v1863_v42 = vrot.slane %v1849_v45, %v9095_v48 }
 0x1f0   :  { %v4032_v61 = vrot.slane %v3494_v0, %v9104_v62  ;;  %v4256_v22 = vsel %vm4175_vm6, %v4028_v55, %v4255_v31  ;;  %v1899_v37 = vcombine.high %v1897_v10, %v1897_v10  ;;  %v7762_v19 = vrot.slane %v1898_v18, 9  ;;  %v4346_v31 = vld [vmem:[#allocation2 + $0xb1] sm:$0xff] }
 0x1f1   :  { %v4040_v35 = vrot.slane %v3496_v8, %v9104_v62  ;;  %v7763_v27 = vrot.slane %v1897_v10, 9  ;;  %v3345_v24 = vmax.f32 %v1890_v1, %v7761_v3  ;;  %v1864_v25 = vcombine.high %v1856_v59, %v1856_v59 }
 0x1f2   :  { %v4257_v41 = vsel %vm4177_vm7, %v4032_v61, %v4256_v22  ;;  %v7764_v58 = vrot.slane %v1899_v37, 9  ;;  %v3346_v40 = vmax.f32 %v1898_v18, %v7762_v19  ;;  %v1865_v5 = vcombine.high %v1863_v42, %v1863_v42 }
 0x1f3   :  { %v4258_v12 = vsel %vm4179_vm8, %v4036_v52, %v4257_v41  ;;  %v3347_v30 = vmax.f32 %v1897_v10, %v7763_v27  ;;  %v7753_v47 = vrot.slane %v1856_v59, 9  ;;  %v7754_v43 = vrot.slane %v1864_v25, 9 }
 0x1f4   :  { %v4259_v6 = vsel %vm4181_vm9, %v4040_v35, %v4258_v12  ;;  %v3348_v28 = vmax.f32 %v1899_v37, %v7764_v58  ;;  %v7755_v50 = vrot.slane %v1863_v42, 9  ;;  %v7756_v20 = vrot.slane %v1865_v5, 9 }
 0x1f5   :  { %4316 = vst.msk [vmem:[#allocation2 + $0xe1] sm:$0xff] %vm55_vm0, %v4259_v6  ;;  %v3337_v15 = vmax.f32 %v1856_v59, %v7753_v47  ;;  %v3338_v63 = vmax.f32 %v1864_v25, %v7754_v43  ;;  %v892_v53 = vadd.f32 %v9723_v44, %v821_v51  ;;  %v890_v38 = vadd.f32 %v9723_v44, %v819_v23  ;;  %v4361_v47 = vld [vmem:[#allocation2 + $0xa2] sm:$0xff]  ;;  %v9839_v43 = vld [vmem:[#allocation2 + $0xb2] sm:$0xff] }
 0x1f6   :  { %v3339_v46 = vmax.f32 %v1863_v42, %v7755_v50  ;;  %v3340_v7 = vmax.f32 %v1865_v5, %v7756_v20  ;;  %v8438_v60 = vpack.i.bf16 %v4346_v31, %v4345_v9  ;;  %v8428_v4 = vpack.i.bf16 %v4441_v13, %v4440_v39 }
 0x1f7   :  { %v3497_v1 = vmax.f32 %v3337_v15, %v3345_v24  ;;  %v3498_v17 = vmax.f32 %v3338_v63, %v3346_v40  ;;  %v956_v21 = vmax.f32 %v892_v53, 0.0  ;;  %v954_v45 = vmax.f32 %v890_v38, 0.0 }
 0x1f8   :  { %v3499_v0 = vmax.f32 %v3339_v46, %v3347_v30  ;;  %v3500_v55 = vmax.f32 %v3340_v7, %v3348_v28  ;;  %8439 = vrot.lane.b32.xlu1 %v8438_v60, %s8767_s18  ;;  %8429 = vrot.lane.b32.xlu0 %v8428_v4, %s8768_s19  ;;  %v824_v59 = vmul.f32 %v9705_v56, %v9492_v32 }
 0x1f9   :  { %v4044_v51 = vrot.slane %v3497_v1, %v9104_v62  ;;  %v4048_v23 = vrot.slane %v3498_v17, %v9104_v62  ;;  %v1900_v10 = vcombine.high %v956_v21, %v956_v21  ;;  %v1907_v18 = vrot.slane %v956_v21, %v9095_v48 }
 0x1fa   :  { %v4052_v8 = vrot.slane %v3499_v0, %v9104_v62  ;;  %v4056_v52 = vrot.slane %v3500_v55, %v9104_v62  ;;  %v1866_v3 = vcombine.high %v954_v45, %v954_v45  ;;  %v1873_v42 = vrot.slane %v954_v45, %v9095_v48  ;;  %v9853_v55 = vld [vmem:[#allocation2 + $0xc0] sm:$0xff] }
 0x1fb   :  { %v4260_v61 = vsel %vm4169_vm3, %v4048_v23, %v4044_v51  ;;  %v1914_v22 = vrot.slane %v1900_v10, %v9095_v48  ;;  %v1915_v37 = vcombine.high %v1907_v18, %v1907_v18  ;;  %v7765_v32 = vrot.slane %v1907_v18, 9 }
 0x1fc   :  { %v4261_v19 = vsel %vm4171_vm4, %v4052_v8, %v4260_v61  ;;  %v1880_v35 = vrot.slane %v1866_v3, %v9095_v48  ;;  %v1881_v27 = vcombine.high %v1873_v42, %v1873_v42  ;;  %v7757_v24 = vrot.slane %v1873_v42, 9  ;;  %v9860_v3 = vld [vmem:[#allocation2 + $0xb0] sm:$0xff] }
 0x1fd   :  { %v1916_v25 = vcombine.high %v1914_v22, %v1914_v22  ;;  %v7766_v41 = vrot.slane %v1915_v37, 9  ;;  %v7767_v58 = vrot.slane %v1914_v22, 9  ;;  %v3349_v40 = vmax.f32 %v1907_v18, %v7765_v32 }
 0x1fe   :  { %v1882_v5 = vcombine.high %v1880_v35, %v1880_v35  ;;  %v7758_v13 = vrot.slane %v1881_v27, 9  ;;  %v7759_v12 = vrot.slane %v1880_v35, 9  ;;  %v3341_v30 = vmax.f32 %v1873_v42, %v7757_v24 }
 0x1ff   :  { %v7768_v9 = vrot.slane %v1916_v25, 9  ;;  %v3350_v31 = vmax.f32 %v1915_v37, %v7766_v41  ;;  %v3351_v39 = vmax.f32 %v1914_v22, %v7767_v58  ;;  %v4262_v6 = vsel %vm4173_vm5, %v4056_v52, %v4261_v19 }
 0x200   :  { %v7760_v28 = vrot.slane %v1882_v5, 9  ;;  %v3342_v50 = vmax.f32 %v1881_v27, %v7758_v13  ;;  %v3343_v20 = vmax.f32 %v1880_v35, %v7759_v12  ;;  %v3501_v15 = vmax.f32 %v3341_v30, %v3349_v40  ;;  %v9876_v13 = vld [vmem:[%s10837_s4 + $0x80] sm:$0xff]  }
 0x201   :  { %v3352_v63 = vmax.f32 %v1916_v25, %v7768_v9  ;;  %v895_v53 = vadd.f32 %v9723_v44, %v824_v59  ;;  %v822_v38 = vmul.f32 %v9705_v56, %v9495_v54  ;;  %v8443_v46 = vpack.i.bf16 %v9839_v43, %v4361_v47  ;;  %8239 = vmatprep.subr.bf16.mxu1 %v9876_v13 }
 0x202   :  { %v3344_v7 = vmax.f32 %v1882_v5, %v7760_v28  ;;  %v3502_v60 = vmax.f32 %v3342_v50, %v3350_v31  ;;  %v3503_v4 = vmax.f32 %v3343_v20, %v3351_v39  ;;  %v4060_v1 = vrot.slane %v3501_v15, %v9104_v62 }
 0x203   :  { %v959_v17 = vmax.f32 %v895_v53, 0.0  ;;  %v893_v21 = vadd.f32 %v9723_v44, %v822_v38  ;;  %8444 = vrot.lane.b32.xlu1 %v8443_v46, %s8766_s17  ;;  %v825_v45 = vmul.f32 %v9705_v56, %v9499_v16  ;;  %v823_v0 = vmul.f32 %v9705_v56, %v9503_v14 }
 0x204   :  { %v3504_v54 = vmax.f32 %v3344_v7, %v3352_v63  ;;  %v4064_v59 = vrot.slane %v3502_v60, %v9104_v62  ;;  %v4068_v51 = vrot.slane %v3503_v4, %v9104_v62  ;;  %v4263_v23 = vsel %vm4175_vm6, %v4060_v1, %v4262_v6 }
 0x205   :  { %v1951_v10 = vcombine.high %v959_v17, %v959_v17  ;;  %v1958_v18 = vrot.slane %v959_v17, %v9095_v48  ;;  %v957_v8 = vmax.f32 %v893_v21, 0.0  ;;  %v896_v52 = vadd.f32 %v9723_v44, %v825_v45 }
 0x206   :  { %v4072_v16 = vrot.slane %v3504_v54, %v9104_v62  ;;  %v4264_v14 = vsel %vm4177_vm7, %v4064_v59, %v4263_v23  ;;  %v894_v42 = vadd.f32 %v9723_v44, %v823_v0  ;;  %v8453_v61 = vpack.i.bf16 %v9853_v55, %v9860_v3  ;;  %v9882_v59 = vld [vmem:[#allocation2 + $0xc2] sm:$0xff] }
 0x207   :  { %v4265_v22 = vsel %vm4179_vm8, %v4068_v51, %v4264_v14  ;;  %v1965_v37 = vrot.slane %v1951_v10, %v9095_v48  ;;  %v1966_v32 = vcombine.high %v1958_v18, %v1958_v18  ;;  %v7777_v19 = vrot.slane %v1958_v18, 9 }
 0x208   :  { %v4266_v35 = vsel %vm4181_vm9, %v4072_v16, %v4265_v22  ;;  %v1917_v27 = vcombine.high %v957_v8, %v957_v8  ;;  %v1924_v24 = vrot.slane %v957_v8, %v9095_v48  ;;  %v960_v25 = vmax.f32 %v896_v52, 0.0  ;;  %8454 = vrot.lane.b32.xlu1 %v8453_v61, %s8768_s19 }
 0x209   :  { %4317 = vst.msk [vmem:[#allocation2 + $0xf1] sm:$0xff] %vm55_vm0, %v4266_v35  ;;  %v1967_v41 = vcombine.high %v1965_v37, %v1965_v37  ;;  %v7778_v58 = vrot.slane %v1966_v32, 9  ;;  %v7779_v40 = vrot.slane %v1965_v37, 9  ;;  %v3361_v5 = vmax.f32 %v1958_v18, %v7777_v19 }
 0x20a   :  { %v1931_v12 = vrot.slane %v1917_v27, %v9095_v48  ;;  %v1932_v30 = vcombine.high %v1924_v24, %v1924_v24  ;;  %v7769_v47 = vrot.slane %v1924_v24, 9  ;;  %v1968_v9 = vcombine.high %v960_v25, %v960_v25 }
 0x20b   :  { %v7780_v31 = vrot.slane %v1967_v41, 9  ;;  %v3362_v39 = vmax.f32 %v1966_v32, %v7778_v58  ;;  %v3363_v6 = vmax.f32 %v1965_v37, %v7779_v40  ;;  %v1975_v28 = vrot.slane %v960_v25, %v9095_v48 }
 0x20c   :  { %v1933_v50 = vcombine.high %v1931_v12, %v1931_v12  ;;  %v7770_v20 = vrot.slane %v1932_v30, 9  ;;  %v7771_v15 = vrot.slane %v1931_v12, 9  ;;  %v3353_v63 = vmax.f32 %v1924_v24, %v7769_v47 }
 0x20d   :  { %v3364_v53 = vmax.f32 %v1967_v41, %v7780_v31  ;;  %v1982_v38 = vrot.slane %v1968_v9, %v9095_v48  ;;  %v1983_v46 = vcombine.high %v1975_v28, %v1975_v28  ;;  %v7781_v7 = vrot.slane %v1975_v28, 9 }
 0x20e   :  { %v7772_v60 = vrot.slane %v1933_v50, 9  ;;  %v3354_v4 = vmax.f32 %v1932_v30, %v7770_v20  ;;  %v3355_v1 = vmax.f32 %v1931_v12, %v7771_v15  ;;  %v3505_v17 = vmax.f32 %v3353_v63, %v3361_v5 }
 0x20f   :  { %v1984_v21 = vcombine.high %v1982_v38, %v1982_v38  ;;  %v7782_v45 = vrot.slane %v1983_v46, 9  ;;  %v7783_v0 = vrot.slane %v1982_v38, 9  ;;  %v3365_v54 = vmax.f32 %v1975_v28, %v7781_v7 }
 0x210   :  { %v3356_v51 = vmax.f32 %v1933_v50, %v7772_v60  ;;  %v3506_v23 = vmax.f32 %v3354_v4, %v3362_v39  ;;  %v3507_v10 = vmax.f32 %v3355_v1, %v3363_v6  ;;  %v4076_v18 = vrot.slane %v3505_v17, %v9104_v62 }
 0x211   :  { %v7784_v8 = vrot.slane %v1984_v21, 9  ;;  %v3366_v52 = vmax.f32 %v1983_v46, %v7782_v45  ;;  %v3367_v16 = vmax.f32 %v1982_v38, %v7783_v0  ;;  %v958_v14 = vmax.f32 %v894_v42, 0.0 }
 0x212   :  { %v3508_v61 = vmax.f32 %v3356_v51, %v3364_v53  ;;  %v4080_v22 = vrot.slane %v3506_v23, %v9104_v62  ;;  %v4084_v37 = vrot.slane %v3507_v10, %v9104_v62  ;;  %v8448_v32 = vpack.i.bf16 %v9882_v59, %v9839_v43 }
 0x213   :  { %v3368_v19 = vmax.f32 %v1984_v21, %v7784_v8  ;;  %v1934_v35 = vcombine.high %v958_v14, %v958_v14  ;;  %v1941_v27 = vrot.slane %v958_v14, %v9095_v48  ;;  %v828_v24 = vmul.f32 %v9705_v56, %v9544_v57 }
 0x214   :  { %v4088_v25 = vrot.slane %v3508_v61, %v9104_v62  ;;  %v4267_v41 = vsel %vm4169_vm3, %v4080_v22, %v4076_v18  ;;  %8449 = vrot.lane.b32.xlu0 %v8448_v32, %s8767_s18  ;;  %v826_v42 = vmul.f32 %v9705_v56, %v9547_v36  ;;  %v829_v58 = vmul.f32 %v9705_v56, %v9550_v49 }
 0x215   :  { %v4268_v43 = vsel %vm4171_vm4, %v4084_v37, %v4267_v41  ;;  %v1948_v40 = vrot.slane %v1934_v35, %v9095_v48  ;;  %v1949_v5 = vcombine.high %v1941_v27, %v1941_v27  ;;  %v7773_v12 = vrot.slane %v1941_v27, 9 }
 0x216   :  { %v4269_v57 = vsel %vm4173_vm5, %v4088_v25, %v4268_v43  ;;  %v899_v30 = vadd.f32 %v9723_v44, %v828_v24  ;;  %v897_v47 = vadd.f32 %v9723_v44, %v826_v42  ;;  %v900_v9 = vadd.f32 %v9723_v44, %v829_v58 }
 0x217   :  { %v1950_v31 = vcombine.high %v1948_v40, %v1948_v40  ;;  %v7774_v39 = vrot.slane %v1949_v5, 9  ;;  %v7775_v36 = vrot.slane %v1948_v40, 9  ;;  %v3357_v6 = vmax.f32 %v1941_v27, %v7773_v12 }
 0x218   :  { %v963_v28 = vmax.f32 %v899_v30, 0.0  ;;  %v961_v49 = vmax.f32 %v897_v47, 0.0  ;;  %v964_v50 = vmax.f32 %v900_v9, 0.0  ;;  %v827_v20 = vmul.f32 %v9705_v56, %v9557_v2 }
 0x219   :  { %v7776_v15 = vrot.slane %v1950_v31, 9  ;;  %v3358_v63 = vmax.f32 %v1949_v5, %v7774_v39  ;;  %v3359_v53 = vmax.f32 %v1948_v40, %v7775_v36  ;;  %v3509_v38 = vmax.f32 %v3357_v6, %v3365_v54 }
 0x21a   :  { %v2019_v46 = vcombine.high %v963_v28, %v963_v28  ;;  %v2026_v7 = vrot.slane %v963_v28, %v9095_v48  ;;  %v1985_v60 = vcombine.high %v961_v49, %v961_v49  ;;  %v1992_v4 = vrot.slane %v961_v49, %v9095_v48 }
 0x21b   :  { %v3360_v1 = vmax.f32 %v1950_v31, %v7776_v15  ;;  %v3510_v17 = vmax.f32 %v3358_v63, %v3366_v52  ;;  %v3511_v21 = vmax.f32 %v3359_v53, %v3367_v16  ;;  %v4092_v45 = vrot.slane %v3509_v38, %v9104_v62 }
 0x21c   :  { %v2033_v0 = vrot.slane %v2019_v46, %v9095_v48  ;;  %v2034_v51 = vcombine.high %v2026_v7, %v2026_v7  ;;  %v7793_v23 = vrot.slane %v2026_v7, 9  ;;  %v1999_v2 = vrot.slane %v1985_v60, %v9095_v48 }
 0x21d   :  { %v3512_v10 = vmax.f32 %v3360_v1, %v3368_v19  ;;  %v4096_v54 = vrot.slane %v3510_v17, %v9104_v62  ;;  %v4100_v18 = vrot.slane %v3511_v21, %v9104_v62  ;;  %v4270_v8 = vsel %vm4175_vm6, %v4092_v45, %v4269_v57  ;;  %v9923_v1 = vld [vmem:[#allocation2 + $0xd1] sm:$0xff] }
 0x21e   :  { %v2035_v14 = vcombine.high %v2033_v0, %v2033_v0  ;;  %v7794_v61 = vrot.slane %v2034_v51, 9  ;;  %v7795_v22 = vrot.slane %v2033_v0, 9  ;;  %v3377_v52 = vmax.f32 %v2026_v7, %v7793_v23  ;;  %v9928_v21 = vld [vmem:[#allocation2 + $0xd0] sm:$0xff] }
 0x21f   :  { %v4104_v16 = vrot.slane %v3512_v10, %v9104_v62  ;;  %v4271_v37 = vsel %vm4177_vm7, %v4096_v54, %v4270_v8  ;;  %v2000_v32 = vcombine.high %v1992_v4, %v1992_v4  ;;  %v2001_v35 = vcombine.high %v1999_v2, %v1999_v2 }
 0x220   :  { %v4272_v27 = vsel %vm4179_vm8, %v4100_v18, %v4271_v37  ;;  %v7796_v24 = vrot.slane %v2035_v14, 9  ;;  %v3378_v19 = vmax.f32 %v2034_v51, %v7794_v61  ;;  %v3379_v25 = vmax.f32 %v2033_v0, %v7795_v22  ;;  %v9939_v61 = vpop.permute.xlu1 %8324 }
 0x221   :  { %v4273_v41 = vsel %vm4181_vm9, %v4104_v16, %v4272_v27  ;;  %v7785_v42 = vrot.slane %v1992_v4, 9  ;;  %v7786_v58 = vrot.slane %v2000_v32, 9  ;;  %v7787_v43 = vrot.slane %v1999_v2, 9 }
 0x222   :  { %4318 = vst.msk [vmem:[#allocation2 + $0x101] sm:$0xff] %vm55_vm0, %v4273_v41  ;;  %v3380_v40 = vmax.f32 %v2035_v14, %v7796_v24  ;;  %v7788_v5 = vrot.slane %v2001_v35, 9  ;;  %v2036_v12 = vcombine.high %v964_v50, %v964_v50  ;;  %v2043_v57 = vrot.slane %v964_v50, %v9095_v48  ;;  %v9937_v14 = vld [vmem:[#allocation2 + $0xd2] sm:$0xff] }
 0x223   :  { %v3369_v30 = vmax.f32 %v1992_v4, %v7785_v42  ;;  %v3370_v47 = vmax.f32 %v2000_v32, %v7786_v58  ;;  %v3371_v9 = vmax.f32 %v1999_v2, %v7787_v43  ;;  %v898_v31 = vadd.f32 %v9723_v44, %v827_v20  ;;  %v9931_v2 = vld [vmem:[#allocation2 + $0xc1] sm:$0xff] }
 0x224   :  { %v3372_v39 = vmax.f32 %v2001_v35, %v7788_v5  ;;  %v2050_v36 = vrot.slane %v2036_v12, %v9095_v48  ;;  %v2051_v6 = vcombine.high %v2043_v57, %v2043_v57  ;;  %v7797_v28 = vrot.slane %v2043_v57, 9 }
 0x225   :  { %v3513_v49 = vmax.f32 %v3369_v30, %v3377_v52  ;;  %v3514_v15 = vmax.f32 %v3370_v47, %v3378_v19  ;;  %v3515_v63 = vmax.f32 %v3371_v9, %v3379_v25  ;;  %v962_v53 = vmax.f32 %v898_v31, 0.0 }
 0x226   :  { %v3516_v38 = vmax.f32 %v3372_v39, %v3380_v40  ;;  %v2052_v46 = vcombine.high %v2050_v36, %v2050_v36  ;;  %v7798_v7 = vrot.slane %v2051_v6, 9  ;;  %v7799_v60 = vrot.slane %v2050_v36, 9  ;;  %v9957_v40 = vpop.permute.xlu1 %8334 }
 0x227   :  { %v4108_v50 = vrot.slane %v3513_v49, %v9104_v62  ;;  %v4112_v4 = vrot.slane %v3514_v15, %v9104_v62  ;;  %v4116_v20 = vrot.slane %v3515_v63, %v9104_v62  ;;  %v3381_v17 = vmax.f32 %v2043_v57, %v7797_v28 }
 0x228   :  { %v4120_v45 = vrot.slane %v3516_v38, %v9104_v62  ;;  %v7800_v0 = vrot.slane %v2052_v46, 9  ;;  %v3382_v51 = vmax.f32 %v2051_v6, %v7798_v7  ;;  %v3383_v23 = vmax.f32 %v2050_v36, %v7799_v60 }
 0x229   :  { %v4274_v10 = vsel %vm4169_vm3, %v4112_v4, %v4108_v50  ;;  %v2002_v54 = vcombine.high %v962_v53, %v962_v53  ;;  %v2009_v18 = vrot.slane %v962_v53, %v9095_v48  ;;  %v8468_v8 = vpack.i.bf16 %v9923_v1, %v9931_v2 }
 0x22a   :  { %v4275_v22 = vsel %vm4171_vm4, %v4116_v20, %v4274_v10  ;;  %v3384_v52 = vmax.f32 %v2052_v46, %v7800_v0  ;;  %v8458_v16 = vpack.i.bf16 %v9928_v21, %v9853_v55  ;;  %v832_v37 = vmul.f32 %v9705_v56, %v9608_v29  ;;  %v9967_v63 = vpop.permute.xlu1 %8339  ;;  %v9970_v46 = vpop.permute.xlu0 %8319 }
 0x22b   :  { %v2016_v32 = vrot.slane %v2002_v54, %v9095_v48  ;;  %v2017_v35 = vcombine.high %v2009_v18, %v2009_v18  ;;  %v7789_v27 = vrot.slane %v2009_v18, 9  ;;  %v4276_v24 = vsel %vm4173_vm5, %v4120_v45, %v4275_v22  ;;  %8469 = vrot.lane.b32.xlu1 %v8468_v8, %s8767_s18 }
 0x22c   :  { %8459 = vrot.lane.b32.xlu0 %v8458_v16, %s8766_s17  ;;  %v903_v19 = vadd.f32 %v9723_v44, %v832_v37  ;;  %v830_v25 = vmul.f32 %v9705_v56, %v9612_v11  ;;  %v8473_v55 = vpack.i.bf16 %v9937_v14, %v9882_v59  ;;  %v833_v29 = vmul.f32 %v9705_v56, %v9616_v26 }
 0x22d   :  { %v2018_v41 = vcombine.high %v2016_v32, %v2016_v32  ;;  %v7790_v42 = vrot.slane %v2017_v35, 9  ;;  %v7791_v58 = vrot.slane %v2016_v32, 9  ;;  %v3373_v43 = vmax.f32 %v2009_v18, %v7789_v27 }
 0x22e   :  { %v967_v5 = vmax.f32 %v903_v19, 0.0  ;;  %v901_v12 = vadd.f32 %v9723_v44, %v830_v25  ;;  %v904_v57 = vadd.f32 %v9723_v44, %v833_v29  ;;  %v831_v11 = vmul.f32 %v9705_v56, %v9618_v33  ;;  %v9980_v16 = vpop.permute.xlu0 %8329 }
 0x22f   :  { %v7792_v30 = vrot.slane %v2018_v41, 9  ;;  %v3374_v47 = vmax.f32 %v2017_v35, %v7790_v42  ;;  %v3375_v59 = vmax.f32 %v2016_v32, %v7791_v58  ;;  %v3517_v9 = vmax.f32 %v3373_v43, %v3381_v17  ;;  %8474 = vrot.lane.b32.xlu1 %v8473_v55, %s8766_s17 }
 0x230   :  { %v2087_v26 = vcombine.high %v967_v5, %v967_v5  ;;  %v2094_v31 = vrot.slane %v967_v5, %v9095_v48  ;;  %v965_v39 = vmax.f32 %v901_v12, 0.0  ;;  %8464 = vrot.lane.b32.xlu0 %v8468_v8, %s8768_s19  ;;  %v968_v36 = vmax.f32 %v904_v57, 0.0 }
 0x231   :  { %v3376_v6 = vmax.f32 %v2018_v41, %v7792_v30  ;;  %v3518_v28 = vmax.f32 %v3374_v47, %v3382_v51  ;;  %v3519_v49 = vmax.f32 %v3375_v59, %v3383_v23  ;;  %v4124_v15 = vrot.slane %v3517_v9, %v9104_v62 }
 0x232   :  { %v2101_v33 = vrot.slane %v2087_v26, %v9095_v48  ;;  %v2102_v56 = vcombine.high %v2094_v31, %v2094_v31  ;;  %v7809_v53 = vrot.slane %v2094_v31, 9  ;;  %v2053_v38 = vcombine.high %v965_v39, %v965_v39  ;;  %v9989_v47 = vpop.permute.xlu0 %8344 }
 0x233   :  { %v3520_v7 = vmax.f32 %v3376_v6, %v3384_v52  ;;  %v4128_v60 = vrot.slane %v3518_v28, %v9104_v62  ;;  %v4132_v50 = vrot.slane %v3519_v49, %v9104_v62  ;;  %v4277_v4 = vsel %vm4175_vm6, %v4124_v15, %v4276_v24  ;;  %v9983_v24 = vpop.permute.xlu1 %8349 }
 0x234   :  { %v2103_v20 = vcombine.high %v2101_v33, %v2101_v33  ;;  %v7810_v17 = vrot.slane %v2102_v56, 9  ;;  %v7811_v45 = vrot.slane %v2101_v33, 9  ;;  %v3393_v0 = vmax.f32 %v2094_v31, %v7809_v53 }
 0x235   :  { %v4136_v51 = vrot.slane %v3520_v7, %v9104_v62  ;;  %v4278_v23 = vsel %vm4177_vm7, %v4128_v60, %v4277_v4  ;;  %v2060_v10 = vrot.slane %v965_v39, %v9095_v48  ;;  %v2067_v54 = vrot.slane %v2053_v38, %v9095_v48 }
 0x236   :  { %v4279_v18 = vsel %vm4179_vm8, %v4132_v50, %v4278_v23  ;;  %v7812_v8 = vrot.slane %v2103_v20, 9  ;;  %v3394_v22 = vmax.f32 %v2102_v56, %v7810_v17  ;;  %v3395_v52 = vmax.f32 %v2101_v33, %v7811_v45  ;;  %v9991_v33 = vld [vmem:[#allocation2 + $0xe0] sm:$0xff]  ;;  %v9999_v60 = vpop.permute.xlu0 %8359  ;;  %v10003_v45 = vld [vmem:[#allocation2 + $0xf1] sm:$0xff] }
 0x237   :  { %v4280_v37 = vsel %vm4181_vm9, %v4136_v51, %v4279_v18  ;;  %v2068_v32 = vcombine.high %v2060_v10, %v2060_v10  ;;  %v2069_v35 = vcombine.high %v2067_v54, %v2067_v54  ;;  %v7801_v27 = vrot.slane %v2060_v10, 9 }
 0x238   :  { %4319 = vst.msk [vmem:[#allocation2 + $0x111] sm:$0xff] %vm55_vm0, %v4280_v37  ;;  %v3396_v19 = vmax.f32 %v2103_v20, %v7812_v8  ;;  %v7803_v25 = vrot.slane %v2067_v54, 9  ;;  %v2104_v55 = vcombine.high %v968_v36, %v968_v36  ;;  %v2111_v29 = vrot.slane %v968_v36, %v9095_v48  ;;  %v10014_v37 = vld [vmem:[#allocation2 + $0xe1] sm:$0xff] }
 0x239   :  { %v7802_v41 = vrot.slane %v2068_v32, 9  ;;  %v7804_v42 = vrot.slane %v2069_v35, 9  ;;  %v3385_v58 = vmax.f32 %v2060_v10, %v7801_v27  ;;  %v902_v43 = vadd.f32 %v9723_v44, %v831_v11  ;;  %v9993_v44 = vld [vmem:[#allocation2 + $0xe2] sm:$0xff]  ;;  %v9995_v11 = vpop.permute.xlu1 %8354 }
 0x23a   :  { %v3387_v5 = vmax.f32 %v2067_v54, %v7803_v25  ;;  %v2118_v12 = vrot.slane %v2104_v55, %v9095_v48  ;;  %v2119_v57 = vcombine.high %v2111_v29, %v2111_v29  ;;  %v7813_v30 = vrot.slane %v2111_v29, 9  ;;  %v10023_v27 = vpop.permute.xlu0 %8369 }
 0x23b   :  { %v3386_v59 = vmax.f32 %v2068_v32, %v7802_v41  ;;  %v3388_v9 = vmax.f32 %v2069_v35, %v7804_v42  ;;  %v3521_v26 = vmax.f32 %v3385_v58, %v3393_v0  ;;  %v966_v31 = vmax.f32 %v902_v43, 0.0  ;;  %v10005_v0 = vld [vmem:[#allocation2 + $0xf0] sm:$0xff]  ;;  %v10027_v42 = vld [vmem:[#allocation2 + $0x100] sm:$0xff] }
 0x23c   :  { %v3523_v39 = vmax.f32 %v3387_v5, %v3395_v52  ;;  %v2120_v6 = vcombine.high %v2118_v12, %v2118_v12  ;;  %v7814_v28 = vrot.slane %v2119_v57, 9  ;;  %v7815_v36 = vrot.slane %v2118_v12, 9  ;;  %v10025_v41 = vld [vmem:[#allocation2 + $0xf2] sm:$0xff] }
 0x23d   :  { %v3522_v49 = vmax.f32 %v3386_v59, %v3394_v22  ;;  %v3524_v15 = vmax.f32 %v3388_v9, %v3396_v19  ;;  %v4140_v56 = vrot.slane %v3521_v26, %v9104_v62  ;;  %v3397_v7 = vmax.f32 %v2111_v29, %v7813_v30  ;;  %v10029_v58 = vpop.permute.xlu1 %8364  ;;  %v10032_v9 = vld [vmem:[#allocation2 + $0x102] sm:$0xff] }
 0x23e   :  { %v4148_v53 = vrot.slane %v3523_v39, %v9104_v62  ;;  %v7816_v38 = vrot.slane %v2120_v6, 9  ;;  %v3398_v4 = vmax.f32 %v2119_v57, %v7814_v28  ;;  %v2070_v20 = vcombine.high %v966_v31, %v966_v31 }
 0x23f   :  { %v4144_v50 = vrot.slane %v3522_v49, %v9104_v62  ;;  %v2077_v17 = vrot.slane %v966_v31, %v9095_v48  ;;  %v4152_v51 = vrot.slane %v3524_v15, %v9104_v62  ;;  %v3399_v23 = vmax.f32 %v2118_v12, %v7815_v36  ;;  %v10034_v26 = vld [vmem:[#allocation2 + $0x111] sm:$0xff] }
 0x240   :  { %v8483_v10 = vpack.i.bf16 %v9991_v33, %v9928_v21  ;;  %v8478_v54 = vpack.i.bf16 %v9993_v44, %v9937_v14  ;;  %v2084_v8 = vrot.slane %v2070_v20, %v9095_v48  ;;  %v8498_v35 = vpack.i.bf16 %v10003_v45, %v10014_v37 }
 0x241   :  { %v4281_v18 = vsel %vm4169_vm3, %v4144_v50, %v4140_v56  ;;  %v2085_v22 = vcombine.high %v2077_v17, %v2077_v17  ;;  %v7805_v52 = vrot.slane %v2077_v17, 9  ;;  %v8488_v14 = vpack.i.bf16 %v10005_v0, %v9991_v33 }
 0x242   :  { %v4282_v32 = vsel %vm4171_vm4, %v4148_v53, %v4281_v18  ;;  %8484 = vrot.lane.b32.xlu1 %v8483_v10, %s8768_s19  ;;  %8479 = vrot.lane.b32.xlu0 %v8478_v54, %s8767_s18  ;;  %v2086_v19 = vcombine.high %v2084_v8, %v2084_v8  ;;  %v7807_v55 = vrot.slane %v2084_v8, 9  ;;  %v3400_v43 = vmax.f32 %v2120_v6, %v7816_v38  ;;  %v10042_v6 = vld [vmem:[#allocation2 + $0x110] sm:$0xff]  ;;  %v10047_v38 = vld [vmem:[#allocation2 + $0x101] sm:$0xff]  ;;  %v10063_v18 = vpop.permute.xlu1 %8379 }
 0x243   :  { %v7806_v25 = vrot.slane %v2085_v22, 9  ;;  %v3389_v29 = vmax.f32 %v2077_v17, %v7805_v52  ;;  %v4283_v5 = vsel %vm4173_vm5, %v4152_v51, %v4282_v32  ;;  %v8503_v31 = vpack.i.bf16 %v10025_v41, %v9993_v44  ;;  %v10057_v51 = vpop.permute.xlu0 %8374  ;;  %v4321_v54 = vld [vmem:[#allocation2] sm:$0xff] }
 0x244   :  { %v7808_v12 = vrot.slane %v2086_v19, 9  ;;  %v3391_v30 = vmax.f32 %v2084_v8, %v7807_v55  ;;  %v8513_v39 = vpack.i.bf16 %v10027_v42, %v10005_v0  ;;  %v8327_v28 = vunpack.i.h.bf16 %v9939_v61 }
 0x245   :  { %v3390_v57 = vmax.f32 %v2085_v22, %v7806_v25  ;;  %v3525_v59 = vmax.f32 %v3389_v29, %v3397_v7  ;;  %v8326_v36 = vunpack.i.l.bf16 %v9939_v61  ;;  %v8508_v7 = vpack.i.bf16 %v10032_v9, %v10025_v41 }
 0x246   :  { %8499 = vrot.lane.b32.xlu1 %v8498_v35, %s8767_s18  ;;  %8489 = vrot.lane.b32.xlu0 %v8488_v14, %s8766_s17  ;;  %v3392_v49 = vmax.f32 %v2086_v19, %v7808_v12  ;;  %v3527_v56 = vmax.f32 %v3391_v30, %v3399_v23  ;;  %v10053_v50 = vpack.i.bf16 %v10034_v26, %v10047_v38  ;;  %v8322_v20 = vunpack.i.h.bf16 %v9970_v46  ;;  %v4322_v19 = vld [vmem:[#allocation2 + $0x10] sm:$0xff]  ;;  %v4386_v30 = vld [vmem:[#allocation2 + $0x21] sm:$0xff] }
 0x247   :  { %v3526_v15 = vmax.f32 %v3390_v57, %v3398_v4  ;;  %v4156_v53 = vrot.slane %v3525_v59, %v9104_v62  ;;  %v8321_v17 = vunpack.i.l.bf16 %v9970_v46  ;;  %v8518_v10 = vpack.i.bf16 %v10042_v6, %v10027_v42 }
 0x248   :  { %v3528_v61 = vmax.f32 %v3392_v49, %v3400_v43  ;;  %v4164_v8 = vrot.slane %v3527_v56, %v9104_v62  ;;  %v8332_v46 = vunpack.i.h.bf16 %v9980_v16  ;;  %v8331_v22 = vunpack.i.l.bf16 %v9980_v16  ;;  %v4385_v16 = vld [vmem:[#allocation2 + $0x11] sm:$0xff]  ;;  %v10088_v49 = vpop.permute.xlu0 %8389 }
 0x249   :  { %v4160_v4 = vrot.slane %v3526_v15, %v9104_v62  ;;  %v4284_v23 = vsel %vm4175_vm6, %v4156_v53, %v4283_v5  ;;  %v8341_v52 = vunpack.i.l.bf16 %v9967_v63  ;;  %v8342_v25 = vunpack.i.h.bf16 %v9967_v63  ;;  %v10092_v53 = vpop.permute.xlu1 %8384 }
 0x24a   :  { %8504 = vrot.lane.b32.xlu1 %v8503_v31, %s8766_s17  ;;  %8494 = vrot.lane.b32.xlu0 %v8498_v35, %s8768_s19  ;;  %v4168_v32 = vrot.slane %v3528_v61, %v9104_v62  ;;  %v8346_v55 = vunpack.i.l.bf16 %v9989_v47  ;;  %v4851_v43 = vsel %vm55_vm0, %v4322_v19, %v8322_v20  ;;  %v4850_v35 = vsel %vm55_vm0, %v4321_v54, %v8321_v17 }
 0x24b   :  { %v4285_v14 = vsel %vm4177_vm7, %v4160_v4, %v4284_v23  ;;  %v8347_v5 = vunpack.i.h.bf16 %v9989_v47  ;;  %v8337_v57 = vunpack.i.h.bf16 %v9957_v40  ;;  %v4900_v59 = vsel %vm55_vm0, %v4385_v16, %v8331_v22  ;;  %v4324_v22 = vld [vmem:[#allocation2 + $0x30] sm:$0xff] }
 0x24c   :  { %v4286_v29 = vsel %vm4179_vm8, %v4164_v8, %v4285_v14  ;;  %v8336_v63 = vunpack.i.l.bf16 %v9957_v40  ;;  %v4901_v47 = vsel %vm55_vm0, %v4386_v30, %v8332_v46  ;;  %v4916_v31 = vsel %vm4866_vm10, %v4900_v59, %v8341_v52  ;;  %v10107_v46 = vpop.permute.xlu0 %8399  ;;  %v4387_v30 = vld [vmem:[#allocation2 + $0x31] sm:$0xff] }
 0x24d   :  { %v4287_v12 = vsel %vm4181_vm9, %v4168_v32, %v4286_v29  ;;  %v4917_v15 = vsel %vm4866_vm10, %v4901_v47, %v8342_v25  ;;  %v4932_v56 = vsel %vm4883_vm11, %v4916_v31, %v8346_v55  ;;  %v8352_v20 = vunpack.i.h.bf16 %v9983_v24  ;;  %v8649_v25 = vld [vmem:[%s10837_s4 + $0x88] sm:$0xff]   ;;  %v4323_v29 = vld [vmem:[#allocation2 + $0x20] sm:$0xff]  ;;  %v10126_v16 = vpop.permute.xlu1 %8394 }
 0x24e   :  { %4320 = vst.msk [vmem:[#allocation2 + $0x121] sm:$0xff] %vm55_vm0, %v4287_v12  ;;  %8514 = vrot.lane.b32.xlu1 %v8513_v39, %s8768_s19  ;;  %8509 = vrot.lane.b32.xlu0 %v8508_v7, %s8767_s18  ;;  %v4933_v39 = vsel %vm4883_vm11, %v4917_v15, %v8347_v5  ;;  %v10096_v7 = vld [vmem:[#allocation2 + $0x112] sm:$0xff]  ;;  %v4867_v17 = vsel %vm4866_vm10, %v4850_v35, %v8326_v36  ;;  %v8351_v4 = vunpack.i.l.bf16 %v9983_v24  ;;  %v8357_v23 = vunpack.i.h.bf16 %v9995_v11 }
 0x24f   :  { %v4949_v40 = vpack.c.bf16 %v4933_v39, %v4932_v56  ;;  %v4868_v61 = vsel %vm4866_vm10, %v4851_v43, %v8327_v28  ;;  %v4884_v54 = vsel %vm4883_vm11, %v4867_v17, %v8336_v63  ;;  %v8356_v36 = vunpack.i.l.bf16 %v9995_v11  ;;  %v4433_v39 = vld [vmem:[#allocation2 + $0x130] sm:$0xff] }
 0x250   :  { %v4885_v8 = vsel %vm4883_vm11, %v4868_v61, %v8337_v57  ;;  %v8362_v28 = vunpack.i.h.bf16 %v9999_v60  ;;  %v8361_v52 = vunpack.i.l.bf16 %v9999_v60  ;;  %v8533_v24 = vpack.i.bf16 %v10096_v7, %v10032_v9 }
 0x251   :  { %5172 = vmatprep.mubr.bf16.mxu1 %v4949_v40  ;;  %v4948_v32 = vpack.c.bf16 %v4885_v8, %v4884_v54  ;;  %v8372_v14 = vunpack.i.h.bf16 %v10023_v27  ;;  %v8371_v19 = vunpack.i.l.bf16 %v10023_v27  ;;  %v8367_v60 = vunpack.i.h.bf16 %v10029_v58 }
 0x252   :  { %8529 = vrot.lane.b32.xlu1 %v10053_v50, %s8767_s18  ;;  %8519 = vrot.lane.b32.xlu0 %v8518_v10, %s8766_s17  ;;  %v4853_v10 = vsel %vm55_vm0, %v4324_v22, %v8352_v20  ;;  %v8366_v43 = vunpack.i.l.bf16 %v10029_v58  ;;  %v8377_v35 = vunpack.i.h.bf16 %v10057_v51  ;;  %v8376_v5 = vunpack.i.l.bf16 %v10057_v51  ;;  %v4388_v58 = vld [vmem:[#allocation2 + $0x41] sm:$0xff]  ;;  %v8405_v20 = vpop.permute.xlu0 %8404 }
 0x253   :  { %5173 = vmatmul.mubr.bf16.vlgmr.msra.gmra.mrb[0].mxu1 %v4948_v32  ;;  %v4852_v57 = vsel %vm55_vm0, %v4323_v29, %v8351_v4  ;;  %v4870_v51 = vsel %vm4866_vm10, %v4853_v10, %v8357_v23  ;;  %v4903_v63 = vsel %vm55_vm0, %v4388_v58, %v8362_v28  ;;  %v4902_v47 = vsel %vm55_vm0, %v4387_v30, %v8361_v52  ;;  %v4390_v29 = vld [vmem:[#allocation2 + $0x61] sm:$0xff] }
 0x254   :  { %v4869_v59 = vsel %vm4866_vm10, %v4852_v57, %v8356_v36  ;;  %8240 = vmatpush3.bf16.msra.mxu1 %v9876_v13  ;;  %v4919_v31 = vsel %vm4866_vm10, %v4903_v63, %v8372_v14  ;;  %v8392_v15 = vunpack.i.h.bf16 %v10088_v49  ;;  %v8391_v56 = vunpack.i.l.bf16 %v10088_v49  ;;  %v10148_v13 = vpop.permute.xlu1 %8409 }
 0x255   :  { %v4384_v55 = vld [vmem:[#allocation2 + $0x120] sm:$0xff]  ;;  %8241 = vmatprep.subr.bf16.mxu1 %v8649_v25  ;;  %v4935_v17 = vsel %vm4883_vm11, %v4919_v31, %v8377_v35  ;;  %v4886_v61 = vsel %vm4883_vm11, %v4869_v59, %v8366_v43  ;;  %v4887_v4 = vsel %vm4883_vm11, %v4870_v51, %v8367_v60  ;;  %v8382_v23 = vunpack.i.h.bf16 %v10063_v18  ;;  %v4449_v43 = vld [vmem:[#allocation2 + $0x131] sm:$0xff] }
 0x256   :  { %v10120_v11 = vld [vmem:[#allocation2 + $0x122] sm:$0xff]  ;;  %8534 = vrot.lane.b32.xlu1 %v8533_v24, %s8766_s17  ;;  %8524 = vrot.lane.b32.xlu0 %v10053_v50, %s8768_s19  ;;  %v8553_v27 = vpack.i.bf16 %v4384_v55, %v10042_v6  ;;  %v4918_v50 = vsel %vm4866_vm10, %v4902_v47, %v8371_v19  ;;  %v8381_v49 = vunpack.i.l.bf16 %v10063_v18  ;;  %v8387_v54 = vunpack.i.h.bf16 %v10092_v53  ;;  %v4389_v19 = vld [vmem:[#allocation2 + $0x51] sm:$0xff] }
 0x257   :  { %v8538_v12 = vpack.i.bf16 %v10120_v11, %v10096_v7  ;;  %v4934_v40 = vsel %vm4883_vm11, %v4918_v50, %v8376_v5  ;;  %v8386_v22 = vunpack.i.l.bf16 %v10092_v53  ;;  %v4951_v36 = vpack.c.bf16 %v4887_v4, %v4886_v61  ;;  %v4325_v24 = vld [vmem:[#allocation2 + $0x40] sm:$0xff]  ;;  %v4326_v53 = vld [vmem:[#allocation2 + $0x50] sm:$0xff] }
 0x258   :  { %v4952_v8 = vpack.c.bf16 %v4935_v17, %v4934_v40  ;;  %v8402_v28 = vunpack.i.h.bf16 %v10107_v46  ;;  %v8401_v52 = vunpack.i.l.bf16 %v10107_v46  ;;  %8242 = vmatpush3.bf16.msra.mxu1 %v8649_v25  ;;  %v8543_v32 = vpack.i.bf16 %v4433_v39, %v4384_v55  ;;  %v10160_v60 = vld [vmem:[#allocation2 + $0x121] sm:$0xff]  ;;  %v8415_v58 = vpop.permute.xlu1 %8414 }
 0x259   :  { %v8397_v10 = vunpack.i.h.bf16 %v10126_v16  ;;  %v8396_v14 = vunpack.i.l.bf16 %v10126_v16  ;;  %v8407_v18 = vunpack.i.h.bf16 %v8405_v20  ;;  %v4905_v35 = vsel %vm55_vm0, %v4390_v29, %v8392_v15  ;;  %v4392_v29 = vld [vmem:[#allocation2 + $0x81] sm:$0xff] }
 0x25a   :  { %8554 = vrot.lane.b32.xlu1 %v8553_v27, %s8768_s19  ;;  %8539 = vrot.lane.b32.xlu0 %v8538_v12, %s8767_s18  ;;  %v4904_v5 = vsel %vm55_vm0, %v4389_v19, %v8391_v56  ;;  %v8406_v46 = vunpack.i.l.bf16 %v8405_v20  ;;  %v4855_v25 = vsel %vm55_vm0, %v4326_v53, %v8382_v23  ;;  %v4854_v55 = vsel %vm55_vm0, %v4325_v24, %v8381_v49  ;;  %v8420_v12 = vpop.permute.xlu0 %8419  ;;  %v4391_v19 = vld [vmem:[#allocation2 + $0x71] sm:$0xff] }
 0x25b   :  { %5180 = vmatprep.mubr.bf16.mxu1 %v4952_v8  ;;  %v4920_v16 = vsel %vm4866_vm10, %v4904_v5, %v8401_v52  ;;  %v4921_v27 = vsel %vm4866_vm10, %v4905_v35, %v8402_v28  ;;  %v4871_v57 = vsel %vm4866_vm10, %v4854_v55, %v8386_v22  ;;  %v4872_v30 = vsel %vm4866_vm10, %v4855_v25, %v8387_v54  ;;  %v4327_v8 = vld [vmem:[#allocation2 + $0x60] sm:$0xff]  ;;  %v4328_v22 = vld [vmem:[#allocation2 + $0x70] sm:$0xff] }
 0x25c   :  { %5181 = vmatmul.mubr.bf16.gmra.mrb[4].mxu1 %v4951_v36  ;;  %v4936_v59 = vsel %vm4883_vm11, %v4920_v16, %v8406_v46  ;;  %v4937_v51 = vsel %vm4883_vm11, %v4921_v27, %v8407_v18  ;;  %v8548_v63 = vpack.i.bf16 %v4449_v43, %v10160_v60  ;;  %v4888_v50 = vsel %vm4883_vm11, %v4871_v57, %v8396_v14  ;;  %v8435_v17 = vpop.permute.xlu1 %8434 }
 0x25d   :  { %v4955_v47 = vpack.c.bf16 %v4937_v51, %v4936_v59  ;;  %v4889_v31 = vsel %vm4883_vm11, %v4872_v30, %v8397_v10  ;;  %v4965_v20 = vpack.c.bf16 %v10025_v41, %v9993_v44  ;;  %v8412_v39 = vunpack.i.h.bf16 %v10148_v13 }
 0x25e   :  { %8544 = vrot.lane.b32.xlu0 %v8543_v32, %s8766_s17  ;;  %v4954_v15 = vpack.c.bf16 %v4889_v31, %v4888_v50  ;;  %v8425_v56 = vpop.permute.xlu0 %8424  ;;  %v8411_v40 = vunpack.i.l.bf16 %v10148_v13  ;;  %v4968_v61 = vpack.c.bf16 %v10096_v7, %v10032_v9  ;;  %v8417_v4 = vunpack.i.h.bf16 %v8415_v58  ;;  %v4329_v31 = vld [vmem:[#allocation2 + $0xa0] sm:$0xff] }
 0x25f   :  { %5188 = vmatprep.mubr.bf16.mxu1 %v4955_v47  ;;  %v8416_v23 = vunpack.i.l.bf16 %v8415_v58  ;;  %v8422_v49 = vunpack.i.h.bf16 %v8420_v12  ;;  %v8421_v54 = vunpack.i.l.bf16 %v8420_v12  ;;  %v8437_v36 = vunpack.i.h.bf16 %v8435_v17 }
 0x260   :  { %v8436_v28 = vunpack.i.l.bf16 %v8435_v17  ;;  %v8427_v52 = vunpack.i.h.bf16 %v8425_v56  ;;  %v8426_v32 = vunpack.i.l.bf16 %v8425_v56  ;;  %v4857_v24 = vsel %vm55_vm0, %v4328_v22, %v8412_v39 }
 0x261   :  { %v4856_v10 = vsel %vm55_vm0, %v4327_v8, %v8411_v40  ;;  %v4874_v14 = vsel %vm4866_vm10, %v4857_v24, %v8417_v4  ;;  %v4907_v43 = vsel %vm55_vm0, %v4392_v29, %v8422_v49  ;;  %v4906_v53 = vsel %vm55_vm0, %v4391_v19, %v8421_v54 }
 0x262   :  { %8549 = vrot.lane.b32.xlu0 %v8548_v63, %s8768_s19  ;;  %v4873_v13 = vsel %vm4866_vm10, %v4856_v10, %v8416_v23  ;;  %v4922_v46 = vsel %vm4866_vm10, %v4906_v53, %v8426_v32  ;;  %v4923_v25 = vsel %vm4866_vm10, %v4907_v43, %v8427_v52  ;;  %v4891_v16 = vsel %vm4883_vm11, %v4874_v14, %v8437_v36  ;;  %v4393_v52 = vld [vmem:[#allocation2 + $0xb1] sm:$0xff] }
 0x263   :  { %v4890_v55 = vsel %vm4883_vm11, %v4873_v13, %v8436_v28 }
 0x264   :  { %5189 = vmatmul.mubr.bf16.gmra.mrb[8].mxu1 %v4954_v15  ;;  %v4957_v30 = vpack.c.bf16 %v4891_v16, %v4890_v55 }
 0x26a   :  { %v8430_v18 = vpop.permute.xlu0 %8429  ;;  %v8440_v58 = vpop.permute.xlu1 %8439 }
 0x26b   :  { %v8432_v35 = vunpack.i.h.bf16 %v8430_v18  ;;  %v8431_v5 = vunpack.i.l.bf16 %v8430_v18  ;;  %v8442_v63 = vunpack.i.h.bf16 %v8440_v58  ;;  %v8441_v47 = vunpack.i.l.bf16 %v8440_v58 }
 0x26d   :  { %v4938_v27 = vsel %vm4883_vm11, %v4922_v46, %v8431_v5  ;;  %v4939_v12 = vsel %vm4883_vm11, %v4923_v25, %v8432_v35  ;;  %v4859_v8 = vsel %vm55_vm0, %v9860_v3, %v8442_v63  ;;  %v4858_v22 = vsel %vm55_vm0, %v4329_v31, %v8441_v47  ;;  %v4331_v63 = vld [vmem:[#allocation2 + $0xc0] sm:$0xff] }
 0x26e   :  { %v4958_v57 = vpack.c.bf16 %v4939_v12, %v4938_v27 }
 0x270   :  { %5196 = vmatprep.mubr.bf16.mxu1 %v4958_v57 }
 0x271   :  { %5197 = vmatmul.mubr.bf16.gmra.mrb[12].mxu1 %v4957_v30 }
 0x275   :  { %v8445_v59 = vpop.permute.xlu1 %8444 }
 0x276   :  { %v8447_v15 = vunpack.i.h.bf16 %v8445_v59  ;;  %v8446_v56 = vunpack.i.l.bf16 %v8445_v59 }
 0x278   :  { %v4875_v36 = vsel %vm4866_vm10, %v4858_v22, %v8446_v56  ;;  %v4876_v28 = vsel %vm4866_vm10, %v4859_v8, %v8447_v15 }
 0x27a   :  { %v8455_v50 = vpop.permute.xlu1 %8454 }
 0x27b   :  { %v8457_v4 = vunpack.i.h.bf16 %v8455_v50  ;;  %v8456_v23 = vunpack.i.l.bf16 %v8455_v50 }
 0x27d   :  { %v4892_v3 = vsel %vm4883_vm11, %v4875_v36, %v8456_v23  ;;  %v4893_v18 = vsel %vm4883_vm11, %v4876_v28, %v8457_v4 }
 0x27e   :  { %v4960_v5 = vpack.c.bf16 %v4893_v18, %v4892_v3 }
 0x286   :  { %v8450_v51 = vpop.permute.xlu0 %8449 }
 0x287   :  { %v8452_v40 = vunpack.i.h.bf16 %v8450_v51  ;;  %v8451_v17 = vunpack.i.l.bf16 %v8450_v51 }
 0x289   :  { %v4909_v24 = vsel %vm55_vm0, %v9931_v2, %v8452_v40  ;;  %v4908_v10 = vsel %vm55_vm0, %v4393_v52, %v8451_v17 }
 0x29d   :  { %v8470_v46 = vpop.permute.xlu1 %8469 }
 0x29e   :  { %v8460_v39 = vpop.permute.xlu0 %8459  ;;  %v8472_v16 = vunpack.i.h.bf16 %v8470_v46  ;;  %v8471_v27 = vunpack.i.l.bf16 %v8470_v46 }
 0x29f   :  { %v8462_v49 = vunpack.i.h.bf16 %v8460_v39  ;;  %v8461_v54 = vunpack.i.l.bf16 %v8460_v39 }
 0x2a0   :  { %v4861_v56 = vsel %vm55_vm0, %v9928_v21, %v8472_v16  ;;  %v4860_v39 = vsel %vm55_vm0, %v4331_v63, %v8471_v27 }
 0x2a1   :  { %v4924_v19 = vsel %vm4866_vm10, %v4908_v10, %v8461_v54  ;;  %v4925_v29 = vsel %vm4866_vm10, %v4909_v24, %v8462_v49  ;;  %v8475_v2 = vpop.permute.xlu1 %8474 }
 0x2a2   :  { %v8465_v32 = vpop.permute.xlu0 %8464  ;;  %v8477_v12 = vunpack.i.h.bf16 %v8475_v2  ;;  %v8476_v57 = vunpack.i.l.bf16 %v8475_v2 }
 0x2a3   :  { %v8467_v13 = vunpack.i.h.bf16 %v8465_v32  ;;  %v8466_v14 = vunpack.i.l.bf16 %v8465_v32 }
 0x2a4   :  { %v4877_v40 = vsel %vm4866_vm10, %v4860_v39, %v8476_v57  ;;  %v4878_v17 = vsel %vm4866_vm10, %v4861_v56, %v8477_v12 }
 0x2a5   :  { %v4940_v43 = vsel %vm4883_vm11, %v4924_v19, %v8466_v14  ;;  %v4941_v53 = vsel %vm4883_vm11, %v4925_v29, %v8467_v13 }
 0x2a6   :  { %v4961_v35 = vpack.c.bf16 %v4941_v53, %v4940_v43 }
 0x2a8   :  { %5204 = vmatprep.mubr.bf16.mxu1 %v4961_v35 }
 0x2a9   :  { %5205 = vmatmul.mubr.bf16.gmra.mrb[16].mxu1 %v4960_v5 }
 0x2b4   :  { %v8485_v25 = vpop.permute.xlu1 %8484  ;;  %v8480_v55 = vpop.permute.xlu0 %8479 }
 0x2b5   :  { %v8482_v59 = vunpack.i.h.bf16 %v8480_v55  ;;  %v8481_v51 = vunpack.i.l.bf16 %v8480_v55  ;;  %v8487_v47 = vunpack.i.h.bf16 %v8485_v25  ;;  %v8486_v50 = vunpack.i.l.bf16 %v8485_v25 }
 0x2b7   :  { %v4911_v49 = vsel %vm55_vm0, %v10014_v37, %v8482_v59  ;;  %v4910_v54 = vsel %vm55_vm0, %v9923_v1, %v8481_v51  ;;  %v4894_v28 = vsel %vm4883_vm11, %v4877_v40, %v8486_v50  ;;  %v4895_v52 = vsel %vm4883_vm11, %v4878_v17, %v8487_v47 }
 0x2b8   :  { %v8500_v30 = vpop.permute.xlu1 %8499  ;;  %v8490_v58 = vpop.permute.xlu0 %8489  ;;  %v4963_v14 = vpack.c.bf16 %v4895_v52, %v4894_v28 }
 0x2b9   :  { %v8492_v31 = vunpack.i.h.bf16 %v8490_v58  ;;  %v8491_v15 = vunpack.i.l.bf16 %v8490_v58  ;;  %v8502_v1 = vunpack.i.h.bf16 %v8500_v30  ;;  %v8501_v19 = vunpack.i.l.bf16 %v8500_v30 }
 0x2bb   :  { %v4926_v36 = vsel %vm4866_vm10, %v4910_v54, %v8491_v15  ;;  %v4927_v21 = vsel %vm4866_vm10, %v4911_v49, %v8492_v31  ;;  %v4863_v55 = vsel %vm55_vm0, %v10005_v0, %v8502_v1  ;;  %v4862_v16 = vsel %vm55_vm0, %v9991_v33, %v8501_v19 }
 0x2bc   :  { %v8505_v4 = vpop.permute.xlu1 %8504  ;;  %v8495_v23 = vpop.permute.xlu0 %8494 }
 0x2bd   :  { %v8497_v8 = vunpack.i.h.bf16 %v8495_v23  ;;  %v8496_v22 = vunpack.i.l.bf16 %v8495_v23  ;;  %v8507_v29 = vunpack.i.h.bf16 %v8505_v4  ;;  %v8506_v3 = vunpack.i.l.bf16 %v8505_v4 }
 0x2bf   :  { %v4942_v32 = vsel %vm4883_vm11, %v4926_v36, %v8496_v22  ;;  %v4943_v24 = vsel %vm4883_vm11, %v4927_v21, %v8497_v8  ;;  %v4879_v27 = vsel %vm4866_vm10, %v4862_v16, %v8506_v3  ;;  %v4880_v12 = vsel %vm4866_vm10, %v4863_v55, %v8507_v29  ;;  %v4454_v16 = vld [vmem:[#allocation2 + $0x62] sm:$0xff] }
 0x2c0   :  { %v8515_v10 = vpop.permute.xlu1 %8514  ;;  %v8510_v13 = vpop.permute.xlu0 %8509  ;;  %v4964_v37 = vpack.c.bf16 %v4943_v24, %v4942_v32 }
 0x2c1   :  { %v8512_v53 = vunpack.i.h.bf16 %v8510_v13  ;;  %v8511_v35 = vunpack.i.l.bf16 %v8510_v13  ;;  %v8517_v5 = vunpack.i.h.bf16 %v8515_v10  ;;  %v8516_v46 = vunpack.i.l.bf16 %v8515_v10 }
 0x2c2   :  { %5212 = vmatprep.mubr.bf16.mxu1 %v4964_v37 }
 0x2c3   :  { %5213 = vmatmul.mubr.bf16.gmra.mrb[20].mxu1 %v4963_v14  ;;  %v4913_v30 = vsel %vm55_vm0, %v10047_v38, %v8512_v53  ;;  %v4912_v58 = vsel %vm55_vm0, %v10003_v45, %v8511_v35  ;;  %v4896_v33 = vsel %vm4883_vm11, %v4879_v27, %v8516_v46  ;;  %v4897_v50 = vsel %vm4883_vm11, %v4880_v12, %v8517_v5  ;;  %v4451_v53 = vld [vmem:[#allocation2 + $0x32] sm:$0xff]  ;;  %v4450_v5 = vld [vmem:[#allocation2 + $0x22] sm:$0xff] }
 0x2c4   :  { %v8530_v18 = vpop.permute.xlu1 %8529  ;;  %v8520_v43 = vpop.permute.xlu0 %8519  ;;  %v4966_v39 = vpack.c.bf16 %v4897_v50, %v4896_v33  ;;  %v4453_v46 = vld [vmem:[#allocation2 + $0x52] sm:$0xff]  ;;  %v4456_v12 = vld [vmem:[#allocation2 + $0x82] sm:$0xff] }
 0x2c5   :  { %v8522_v2 = vunpack.i.h.bf16 %v8520_v43  ;;  %v8521_v25 = vunpack.i.l.bf16 %v8520_v43  ;;  %v8532_v45 = vunpack.i.h.bf16 %v8530_v18  ;;  %v8531_v40 = vunpack.i.l.bf16 %v8530_v18 }
 0x2c7   :  { %v4928_v47 = vsel %vm4866_vm10, %v4912_v58, %v8521_v25  ;;  %v4929_v0 = vsel %vm4866_vm10, %v4913_v30, %v8522_v2  ;;  %v4865_v52 = vsel %vm55_vm0, %v10042_v6, %v8532_v45  ;;  %v4864_v32 = vsel %vm55_vm0, %v10027_v42, %v8531_v40  ;;  %v4455_v2 = vld [vmem:[#allocation2 + $0x72] sm:$0xff]  ;;  %v4452_v25 = vld [vmem:[#allocation2 + $0x42] sm:$0xff] }
 0x2c8   :  { %v8525_v57 = vpop.permute.xlu0 %8524  ;;  %v8535_v59 = vpop.permute.xlu1 %8534  ;;  %v4953_v55 = vpack.c.bf16 %v4453_v46, %v4452_v25  ;;  %v4956_v27 = vpack.c.bf16 %v4455_v2, %v4454_v16  ;;  %v4459_v30 = vld [vmem:[#allocation2 + $0xd2] sm:$0xff]  ;;  %v8678_v16 = vld [vmem:[%s10840_s7 + $0x40] sm:$0xff]  }
 0x2c9   :  { %v8527_v51 = vunpack.i.h.bf16 %v8525_v57  ;;  %v8526_v63 = vunpack.i.l.bf16 %v8525_v57  ;;  %v8537_v4 = vunpack.i.h.bf16 %v8535_v59  ;;  %v8536_v23 = vunpack.i.l.bf16 %v8535_v59  ;;  %v4457_v57 = vld [vmem:[#allocation2 + $0x92] sm:$0xff]  ;;  %v4458_v59 = vld [vmem:[#allocation2 + $0xc2] sm:$0xff]  ;;  %8092 = vmatprep.subr.bf16.mxu1 %v8678_v16 }
 0x2ca   :  { %v4959_v58 = vpack.c.bf16 %v4457_v57, %v4456_v12  ;;  %v8671_v2 = vld [vmem:[%s10840_s7 + $0x90] sm:$0xff]   ;;  %v8672_v25 = vld [vmem:[%s10840_s7 + $0xd8] sm:$0xff]   ;;  %v8680_v12 = vld [vmem:[%s10840_s7 + $0x48] sm:$0xff]  }
 0x2cb   :  { %v4944_v31 = vsel %vm4883_vm11, %v4928_v47, %v8526_v63  ;;  %v4945_v15 = vsel %vm4883_vm11, %v4929_v0, %v8527_v51  ;;  %v4881_v24 = vsel %vm4866_vm10, %v4864_v32, %v8536_v23  ;;  %v4882_v10 = vsel %vm4866_vm10, %v4865_v52, %v8537_v4  ;;  %v4465_v63 = vld [vmem:[#allocation2 + $0x132] sm:$0xff] }
 0x2cc   :  { %v8540_v56 = vpop.permute.xlu0 %8539  ;;  %v4967_v38 = vpack.c.bf16 %v4945_v15, %v4944_v31  ;;  %v8555_v17 = vpop.permute.xlu1 %8554  ;;  %v4962_v51 = vpack.c.bf16 %v4459_v30, %v4458_v59  ;;  %v4971_v47 = vpack.c.bf16 %v4465_v63, %v10120_v11  ;;  %v8681_v63 = vld [vmem:[%s10840_s7 + $0x8] sm:$0xff]  }
 0x2cd   :  { %v8542_v54 = vunpack.i.h.bf16 %v8540_v56  ;;  %v8541_v8 = vunpack.i.l.bf16 %v8540_v56  ;;  %v8557_v22 = vunpack.i.h.bf16 %v8555_v17  ;;  %v8556_v36 = vunpack.i.l.bf16 %v8555_v17 }
 0x2ce   :  { %5220 = vmatprep.mubr.bf16.mxu1 %v4967_v38 }
 0x2cf   :  { %5221 = vmatmul.mubr.bf16.gmra.mrb[24].mxu1 %v4966_v39  ;;  %v4915_v37 = vsel %vm55_vm0, %v10160_v60, %v8542_v54  ;;  %v4914_v14 = vsel %vm55_vm0, %v10034_v26, %v8541_v8  ;;  %v4898_v3 = vsel %vm4883_vm11, %v4881_v24, %v8556_v36  ;;  %v4899_v42 = vsel %vm4883_vm11, %v4882_v10, %v8557_v22 }
 0x2d0   :  { %v8545_v49 = vpop.permute.xlu0 %8544  ;;  %v4969_v60 = vpack.c.bf16 %v4899_v42, %v4898_v3  ;;  %v4950_v26 = vpack.c.bf16 %v4451_v53, %v4450_v5  ;;  %v8669_v5 = vld [vmem:[%s10840_s7 + $0x88] sm:$0xff]  }
 0x2d1   :  { %v8547_v21 = vunpack.i.h.bf16 %v8545_v49  ;;  %v8546_v28 = vunpack.i.l.bf16 %v8545_v49 }
 0x2d3   :  { %v4930_v29 = vsel %vm4866_vm10, %v4914_v14, %v8546_v28  ;;  %v4931_v6 = vsel %vm4866_vm10, %v4915_v37, %v8547_v21 }
 0x2d4   :  { %v8550_v13 = vpop.permute.xlu0 %8549 }
 0x2d5   :  { %v8552_v1 = vunpack.i.h.bf16 %v8550_v13  ;;  %v8551_v19 = vunpack.i.l.bf16 %v8550_v13 }
 0x2d7   :  { %v4946_v18 = vsel %vm4883_vm11, %v4930_v29, %v8551_v19  ;;  %v4947_v43 = vsel %vm4883_vm11, %v4931_v6, %v8552_v1  ;;  %v8654_v29 = vld [vmem:[%s10840_s7 + $0xc0] sm:$0xff]  }
 0x2d8   :  { %v4970_v35 = vpack.c.bf16 %v4947_v43, %v4946_v18  ;;  %v8659_v6 = vld [vmem:[%s10840_s7 + $0x80] sm:$0xff]   ;;  %8120 = vmatprep.subr.bf16.mxu0 %v8654_v29 }
 0x2d9   :  { %8121 = vmatpush3.bf16.msra.mxu0 %v8659_v6 }
 0x2da   :  { %5228 = vmatprep.mubr.bf16.mxu1 %v4970_v35 }
 0x2db   :  { %5229 = vmatmul.mubr.bf16.gmra.mrb[28].mxu1 %v4969_v60  ;;  %v8664_v60 = vld [vmem:[%s10840_s7 + $0xc8] sm:$0xff]  }
 0x2dc   :  { %8243 = vmatprep.mubr.msk.bf16.mxu1 %vm55_vm0, %v4950_v26  ;;  %8122 = vmatprep.subr.bf16.mxu0 %v8664_v60  ;;  %v8670_v26 = vld [vmem:[%s10840_s7 + $0xd0] sm:$0xff]  }
 0x2dd   :  { %8123 = vmatpush3.bf16.msra.mxu0 %v8669_v5 }
 0x2de   :  { %8124 = vmatprep.subr.bf16.mxu0 %v8670_v26 }
 0x2e1   :  { %8125 = vmatpush3.bf16.msra.mxu0 %v8671_v2 }
 0x2e2   :  { %8126 = vmatprep.subr.bf16.mxu0 %v8672_v25 }
 0x2e3   :  { %8244 = vmatmul.mubr.msk.bf16.vlgmr.msra.gmra.mrb[32].mxu1 %vm55_vm0, %v4953_v55 }
 0x2e4   :  { %8247 = vmatprep.mubr.msk.bf16.mxu1 %vm55_vm0, %v4956_v27  ;;  %v8679_v27 = vld [vmem:[%s10840_s7] sm:$0xff]  }
 0x2e5   :  { %8093 = vmatpush3.bf16.msra.mxu1 %v8679_v27 }
 0x2e6   :  { %8094 = vmatprep.subr.bf16.mxu1 %v8680_v12 }
 0x2e9   :  { %8095 = vmatpush3.bf16.msra.mxu1 %v8681_v63 }
 0x2eb   :  { %8248 = vmatmul.mubr.msk.bf16.gmra.mrb[36].mxu1 %vm55_vm0, %v4959_v58 }
 0x2ec   :  { %8251 = vmatprep.mubr.msk.bf16.mxu1 %vm55_vm0, %v4962_v51  ;;  %v8673_v51 = vld [vmem:[%s10840_s7 + $0x98] sm:$0xff]  }
 0x2ed   :  { %8127 = vmatpush3.bf16.msra.mxu0 %v8673_v51 }
 0x2f3   :  { %8252 = vmatmul.mubr.msk.bf16.gmra.mrb[40].mxu1 %vm55_vm0, %v4965_v20 }
 0x2f4   :  { %8255 = vmatprep.mubr.msk.bf16.mxu1 %vm55_vm0, %v4968_v61 }
 0x2fb   :  { %8256 = vmatmul.mubr.msk.bf16.gmra.mrb[44].mxu1 %vm55_vm0, %v4971_v47  ;;  %v8674_v47 = vld [vmem:[%s10840_s7 + $0xe0] sm:$0xff]  }
 0x2fc   :  { %8128 = vmatprep.subr.bf16.mxu0 %v8674_v47 }
 0x326   :  { %v8034_v0 = vpop.f32.mrb[0].mxu1 }
 0x327   :  { %v8035_v33 = vpop.f32.mrb[1].mxu1 }
 0x328   :  { %v10271_v50 = vadd.f32 %v8035_v33, %v8034_v0  ;;  %v8037_v31 = vpop.f32.mrb[2].mxu1  ;;  %v8682_v0 = vld [vmem:[%s10840_s7 + $0x50] sm:$0xff]  }
 0x329   :  { %v8038_v15 = vpop.f32.mrb[3].mxu1  ;;  %8096 = vmatprep.subr.bf16.mxu1 %v8682_v0 }
 0x32a   :  { %v10273_v56 = vadd.f32 %v8038_v15, %v8037_v31  ;;  %v10404_v31 = vld [vmem:[%s10838_s5] ss:$0 sm:$0xff] }
 0x32b   :  { %v8675_v15 = vld [vmem:[%s10840_s7 + $0xa0] sm:$0xff]  }
 0x32c   :  { %8129 = vmatpush3.bf16.msra.mxu0 %v8675_v15 }
 0x32f   :  { %v8040_v44 = vpop.f32.mrb[4].mxu1 }
 0x330   :  { %v8041_v41 = vpop.f32.mrb[5].mxu1 }
 0x331   :  { %v10275_v20 = vadd.f32 %v8041_v41, %v8040_v44  ;;  %v8043_v9 = vpop.f32.mrb[6].mxu1  ;;  %v8683_v44 = vld [vmem:[%s10840_s7 + $0x10] sm:$0xff]  }
 0x332   :  { %v8044_v7 = vpop.f32.mrb[7].mxu1  ;;  %8097 = vmatpush3.bf16.msra.mxu1 %v8683_v44 }
 0x333   :  { %v10277_v61 = vadd.f32 %v8044_v7, %v8043_v9  ;;  %v8676_v7 = vld [vmem:[%s10840_s7 + $0xe8] sm:$0xff]  }
 0x334   :  { %8130 = vmatprep.subr.bf16.mxu0 %v8676_v7  ;;  %v8692_v7 = vld [vmem:[%s10840_s7 + $0x70] sm:$0xff]  }
 0x337   :  { %v8046_v38 = vpop.f32.mrb[8].mxu1 }
 0x338   :  { %v8047_v11 = vpop.f32.mrb[9].mxu1 }
 0x339   :  { %v10279_v39 = vadd.f32 %v8047_v11, %v8046_v38  ;;  %v8049_v45 = vpop.f32.mrb[10].mxu1  ;;  %v8685_v38 = vld [vmem:[%s10840_s7 + $0x58] sm:$0xff]   ;;  %v10422_v11 = vld [vmem:[%s10839_s6] ss:$0 sm:$0xff] }
 0x33a   :  { %v8050_v40 = vpop.f32.mrb[11].mxu1  ;;  %8098 = vmatprep.subr.bf16.mxu1 %v8685_v38 }
 0x33b   :  { %v10281_v17 = vadd.f32 %v8050_v40, %v8049_v45 }
 0x344   :  { %v8052_v4 = vpop.f32.mrb[12].mxu1 }
 0x345   :  { %v8053_v23 = vpop.f32.mrb[13].mxu1 }
 0x346   :  { %v10283_v49 = vadd.f32 %v8053_v23, %v8052_v4  ;;  %v8055_v54 = vpop.f32.mrb[14].mxu1 }
 0x347   :  { %v8056_v8 = vpop.f32.mrb[15].mxu1 }
 0x348   :  { %v10285_v22 = vadd.f32 %v8056_v8, %v8055_v54 }
 0x37c   :  { %v8058_v36 = vpop.f32.mrb[16].mxu1 }
 0x37d   :  { %v8059_v21 = vpop.f32.mrb[17].mxu1 }
 0x37e   :  { %v10287_v28 = vadd.f32 %v8059_v21, %v8058_v36  ;;  %v8061_v52 = vpop.f32.mrb[18].mxu1  ;;  %v8677_v36 = vld [vmem:[%s10840_s7 + $0xa8] sm:$0xff]  }
 0x37f   :  { %v8062_v32 = vpop.f32.mrb[19].mxu1  ;;  %8131 = vmatpush3.bf16.msra.mxu0 %v8677_v36 }
 0x380   :  { %v10289_v24 = vadd.f32 %v8062_v32, %v8061_v52 }
 0x396   :  { %v8064_v10 = vpop.f32.mrb[20].mxu1 }
 0x397   :  { %v8065_v13 = vpop.f32.mrb[21].mxu1 }
 0x398   :  { %v10291_v37 = vadd.f32 %v8065_v13, %v8064_v10  ;;  %v8067_v14 = vpop.f32.mrb[22].mxu1 }
 0x399   :  { %v8068_v1 = vpop.f32.mrb[23].mxu1 }
 0x39a   :  { %v10293_v19 = vadd.f32 %v8068_v1, %v8067_v14 }
 0x3a2   :  { %v8070_v3 = vpop.f32.mrb[24].mxu1 }
 0x3a3   :  { %v8071_v42 = vpop.f32.mrb[25].mxu1 }
 0x3a4   :  { %v10357_v18 = vadd.f32 %v8071_v42, %v8070_v3  ;;  %v8073_v43 = vpop.f32.mrb[26].mxu1  ;;  %v8686_v3 = vld [vmem:[%s10840_s7 + $0xb0] sm:$0xff]   ;;  %v8689_v42 = vld [vmem:[%s10840_s7 + $0x20] sm:$0xff]  }
 0x3a5   :  { %v8074_v53 = vpop.f32.mrb[27].mxu1 }
 0x3a6   :  { %v10359_v35 = vadd.f32 %v8074_v53, %v8073_v43 }
 0x3ae   :  { %v8076_v46 = vpop.f32.mrb[28].mxu1 }
 0x3af   :  { %v8077_v55 = vpop.f32.mrb[29].mxu1 }
 0x3b0   :  { %v10385_v57 = vadd.f32 %v8077_v55, %v8076_v46  ;;  %v8079_v30 = vpop.f32.mrb[30].mxu1  ;;  %v8690_v46 = vld [vmem:[%s10840_s7 + $0x68] sm:$0xff]  }
 0x3b1   :  { %v8080_v58 = vpop.f32.mrb[31].mxu1 }
 0x3b2   :  { %v10387_v59 = vadd.f32 %v8080_v58, %v8079_v30 }
 0x3b6   :  { %v8245_v33 = vpop.f32.mrb[32].mxu1 }
 0x3b7   :  { %v5280_v41 = vadd.f32 %v8245_v33, %v10275_v20  ;;  %v5271_v9 = vpop.f32.mrb[33].mxu1 }
 0x3b8   :  { %v5272_v45 = vadd.f32 %v10271_v50, %v5271_v9  ;;  %v8246_v40 = vpop.f32.mrb[34].mxu1  ;;  %v8687_v50 = vld [vmem:[%s10840_s7 + $0x18] sm:$0xff]  }
 0x3b9   :  { %v5343_v20 = vmul.f32 %v10404_v31, %v5280_v41  ;;  %v5283_v4 = vadd.f32 %v8246_v40, %v10277_v61  ;;  %v5274_v23 = vpop.f32.mrb[35].mxu1  ;;  %v8684_v61 = vld [vmem:[%s10840_s7 + $0xf0] sm:$0xff]   ;;  %8099 = vmatpush3.bf16.msra.mxu1 %v8687_v50 }
 0x3ba   :  { %v5341_v54 = vmul.f32 %v10404_v31, %v5272_v45  ;;  %v5275_v8 = vadd.f32 %v10273_v56, %v5274_v23  ;;  %v8688_v56 = vld [vmem:[%s10840_s7 + $0x60] sm:$0xff]   ;;  %8132 = vmatprep.subr.bf16.mxu0 %v8684_v61 }
 0x3bb   :  { %v5366_v21 = vadd.f32 %v10422_v11, %v5343_v20  ;;  %v5344_v52 = vmul.f32 %v10404_v31, %v5283_v4  ;;  %8100 = vmatprep.subr.bf16.mxu1 %v8688_v56  ;;  %8133 = vmatpush3.bf16.msra.mxu0 %v8686_v3  ;;  %v8693_v56 = vld [vmem:[%s10840_s7 + $0x30] sm:$0xff]  }
 0x3bc   :  { %v5364_v32 = vadd.f32 %v10422_v11, %v5341_v54  ;;  %v5342_v10 = vmul.f32 %v10404_v31, %v5275_v8 }
 0x3bd   :  { %v5382_v13 = vmax.f32 %v5366_v21, 0.0  ;;  %v5367_v14 = vadd.f32 %v10422_v11, %v5344_v52  ;;  %8101 = vmatpush3.bf16.msra.mxu1 %v8689_v42 }
 0x3be   :  { %v5380_v1 = vmax.f32 %v5364_v32, 0.0  ;;  %v5365_v29 = vadd.f32 %v10422_v11, %v5342_v10  ;;  %v8249_v6 = vpop.f32.mrb[36].mxu1  ;;  %8102 = vmatprep.subr.bf16.mxu1 %v8690_v46 }
 0x3bf   :  { %v5446_v43 = vcombine.high %v5382_v13, %v5382_v13  ;;  %v5453_v53 = vrot.slane %v5382_v13, %v9095_v48  ;;  %v5383_v60 = vmax.f32 %v5367_v14, 0.0  ;;  %v5296_v5 = vadd.f32 %v8249_v6, %v10283_v49  ;;  %v5287_v26 = vpop.f32.mrb[37].mxu1 }
 0x3c0   :  { %v5412_v2 = vcombine.high %v5380_v1, %v5380_v1  ;;  %v5419_v25 = vrot.slane %v5380_v1, %v9095_v48  ;;  %v5381_v55 = vmax.f32 %v5365_v29, 0.0  ;;  %v10460_v16 = vadd.f32 %v10279_v39, %v5287_v26  ;;  %v10462_v27 = vpop.f32.mrb[38].mxu1  ;;  %v8691_v39 = vld [vmem:[%s10840_s7 + $0x28] sm:$0xff]  }
 0x3c1   :  { %v5460_v12 = vrot.slane %v5446_v43, %v9095_v48  ;;  %v5461_v30 = vcombine.high %v5453_v53, %v5453_v53  ;;  %v7853_v49 = vrot.slane %v5453_v53, 9  ;;  %v5463_v58 = vcombine.high %v5383_v60, %v5383_v60  ;;  %v10465_v51 = vpop.f32.mrb[39].mxu1  ;;  %8103 = vmatpush3.bf16.msra.mxu1 %v8691_v39 }
 0x3c2   :  { %v5426_v63 = vrot.slane %v5412_v2, %v9095_v48  ;;  %v5427_v47 = vcombine.high %v5419_v25, %v5419_v25  ;;  %v7845_v0 = vrot.slane %v5419_v25, 9  ;;  %v5470_v33 = vrot.slane %v5383_v60, %v9095_v48  ;;  %8104 = vmatprep.subr.bf16.mxu1 %v8692_v7 }
 0x3c3   :  { %v5462_v15 = vcombine.high %v5460_v12, %v5460_v12  ;;  %v7854_v44 = vrot.slane %v5461_v30, 9  ;;  %v7855_v41 = vrot.slane %v5460_v12, 9  ;;  %v5948_v9 = vmax.f32 %v5453_v53, %v7853_v49 }
 0x3c4   :  { %v5428_v38 = vcombine.high %v5426_v63, %v5426_v63  ;;  %v7846_v45 = vrot.slane %v5427_v47, 9  ;;  %v7847_v40 = vrot.slane %v5426_v63, 9  ;;  %v10475_v20 = vmax.f32 %v5419_v25, %v7845_v0 }
 0x3c5   :  { %v7856_v4 = vrot.slane %v5462_v15, 9  ;;  %v5949_v23 = vmax.f32 %v5461_v30, %v7854_v44  ;;  %v5950_v54 = vmax.f32 %v5460_v12, %v7855_v41  ;;  %v5477_v8 = vrot.slane %v5463_v58, %v9095_v48  ;;  %8105 = vmatpush3.bf16.msra.mxu1 %v8693_v56 }
 0x3c6   :  { %v7848_v36 = vrot.slane %v5428_v38, 9  ;;  %v10478_v50 = vmax.f32 %v5427_v47, %v7846_v45  ;;  %v10480_v21 = vmax.f32 %v5426_v63, %v7847_v40  ;;  %v5478_v52 = vcombine.high %v5470_v33, %v5470_v33  ;;  %v10482_v61 = vpop.f32.mrb[40].mxu1 }
 0x3c7   :  { %v5951_v32 = vmax.f32 %v5462_v15, %v7856_v4  ;;  %v5479_v10 = vcombine.high %v5477_v8, %v5477_v8  ;;  %v7857_v13 = vrot.slane %v5470_v33, 9  ;;  %v7859_v14 = vrot.slane %v5477_v8, 9  ;;  %v10487_v1 = vpop.f32.mrb[41].mxu1 }
 0x3c8   :  { %v5943_v29 = vmax.f32 %v5428_v38, %v7848_v36  ;;  %v7858_v6 = vrot.slane %v5478_v52, 9  ;;  %v5429_v3 = vcombine.high %v5381_v55, %v5381_v55  ;;  %v5436_v42 = vrot.slane %v5381_v55, %v9095_v48  ;;  %v10490_v43 = vpop.f32.mrb[42].mxu1 }
 0x3c9   :  { %v7860_v53 = vrot.slane %v5479_v10, 9  ;;  %v5952_v60 = vmax.f32 %v5470_v33, %v7857_v13  ;;  %v5954_v26 = vmax.f32 %v5477_v8, %v7859_v14  ;;  %v5347_v46 = vmul.f32 %v10404_v31, %v5296_v5  ;;  %v10493_v2 = vpop.f32.mrb[43].mxu1 }
 0x3ca   :  { %v5953_v25 = vmax.f32 %v5478_v52, %v7858_v6  ;;  %v5443_v12 = vrot.slane %v5429_v3, %v9095_v48  ;;  %v5444_v30 = vcombine.high %v5436_v42, %v5436_v42  ;;  %v7849_v49 = vrot.slane %v5436_v42, 9 }
 0x3cb   :  { %v5955_v58 = vmax.f32 %v5479_v10, %v7860_v53  ;;  %v6008_v63 = vmax.f32 %v5948_v9, %v5952_v60  ;;  %v6010_v47 = vmax.f32 %v5950_v54, %v5954_v26  ;;  %v5370_v55 = vadd.f32 %v10422_v11, %v5347_v46 }
 0x3cc   :  { %v6009_v0 = vmax.f32 %v5949_v23, %v5953_v25  ;;  %v5445_v39 = vcombine.high %v5443_v12, %v5443_v12  ;;  %v7850_v15 = vrot.slane %v5444_v30, 9  ;;  %v7851_v33 = vrot.slane %v5443_v12, 9 }
 0x3cd   :  { %v6011_v44 = vmax.f32 %v5951_v32, %v5955_v58  ;;  %v6087_v5 = vrot.slane %v6008_v63, %v9104_v62  ;;  %v6095_v41 = vrot.slane %v6010_v47, %v9104_v62  ;;  %v5944_v7 = vmax.f32 %v5436_v42, %v7849_v49 }
 0x3ce   :  { %v6091_v38 = vrot.slane %v6009_v0, %v9104_v62  ;;  %v7852_v45 = vrot.slane %v5445_v39, 9  ;;  %v5945_v40 = vmax.f32 %v5444_v30, %v7850_v15  ;;  %v5946_v4 = vmax.f32 %v5443_v12, %v7851_v33  ;;  %v10500_v8 = vpop.f32.mrb[44].mxu1 }
 0x3cf   :  { %v6099_v9 = vrot.slane %v6011_v44, %v9104_v62  ;;  %v6004_v23 = vmax.f32 %v10475_v20, %v5944_v7  ;;  %v5386_v54 = vmax.f32 %v5370_v55, 0.0  ;;  %v5345_v36 = vmul.f32 %v10404_v31, %v10460_v16  ;;  %v10506_v52 = vpop.f32.mrb[45].mxu1 }
 0x3d0   :  { %v6199_v56 = vsel %vm4169_vm3, %v6091_v38, %v6087_v5  ;;  %v5947_v32 = vmax.f32 %v5445_v39, %v7852_v45  ;;  %v6005_v10 = vmax.f32 %v10478_v50, %v5945_v40  ;;  %v6006_v13 = vmax.f32 %v10480_v21, %v5946_v4  ;;  %v10511_v14 = vpop.f32.mrb[46].mxu1 }
 0x3d1   :  { %v6200_v6 = vsel %vm4171_vm4, %v6095_v41, %v6199_v56  ;;  %v6071_v3 = vrot.slane %v6004_v23, %v9104_v62  ;;  %v5514_v20 = vcombine.high %v5386_v54, %v5386_v54  ;;  %v5521_v42 = vrot.slane %v5386_v54, %v9095_v48  ;;  %v10516_v53 = vpop.f32.mrb[47].mxu1 }
 0x3d2   :  { %v6201_v16 = vsel %vm4173_vm5, %v6099_v9, %v6200_v6  ;;  %v6007_v60 = vmax.f32 %v5943_v29, %v5947_v32  ;;  %v6075_v26 = vrot.slane %v6005_v10, %v9104_v62  ;;  %v6079_v50 = vrot.slane %v6006_v13, %v9104_v62 }
 0x3d3   :  { %6231 = vst.msk [vmem:[#allocation3 + $0x11] sm:$0xf] %vm6229_vm14, %v6201_v16  ;;  %v5528_v21 = vrot.slane %v5514_v20, %v9095_v48  ;;  %v5529_v46 = vcombine.high %v5521_v42, %v5521_v42  ;;  %v7869_v25 = vrot.slane %v5521_v42, 9  ;;  %v5368_v12 = vadd.f32 %v10422_v11, %v5345_v36 }
 0x3d4   :  { %v6083_v30 = vrot.slane %v6007_v60, %v9104_v62  ;;  %v6196_v49 = vsel %vm4169_vm3, %v6075_v26, %v6071_v3  ;;  %v5299_v58 = vadd.f32 %v10462_v27, %v10285_v22  ;;  %v5291_v29 = vadd.f32 %v10281_v17, %v10465_v51 }
 0x3d5   :  { %v6197_v63 = vsel %vm4171_vm4, %v6079_v50, %v6196_v49  ;;  %v5530_v47 = vcombine.high %v5528_v21, %v5528_v21  ;;  %v7870_v55 = vrot.slane %v5529_v46, 9  ;;  %v7871_v0 = vrot.slane %v5528_v21, 9 }
 0x3d6   :  { %v6198_v39 = vsel %vm4173_vm5, %v6083_v30, %v6197_v63  ;;  %v10532_v15 = vmax.f32 %v5521_v42, %v7869_v25  ;;  %v5384_v33 = vmax.f32 %v5368_v12, 0.0  ;;  %v5348_v44 = vmul.f32 %v10404_v31, %v5299_v58 }
 0x3d7   :  { %6230 = vst.msk [vmem:[#allocation3 + $0x9] sm:$0xf] %vm6229_vm14, %v6198_v39  ;;  %v7872_v5 = vrot.slane %v5530_v47, 9  ;;  %v10536_v41 = vmax.f32 %v5529_v46, %v7870_v55  ;;  %v10538_v22 = vmax.f32 %v5528_v21, %v7871_v0  ;;  %v5346_v17 = vmul.f32 %v10404_v31, %v5291_v29 }
 0x3d8   :  { %v5480_v27 = vcombine.high %v5384_v33, %v5384_v33  ;;  %v5487_v51 = vrot.slane %v5384_v33, %v9095_v48  ;;  %v5371_v7 = vadd.f32 %v10422_v11, %v5348_v44  ;;  %v5312_v38 = vadd.f32 %v10482_v61, %v10291_v37 }
 0x3d9   :  { %v10545_v45 = vmax.f32 %v5530_v47, %v7872_v5  ;;  %v5369_v40 = vadd.f32 %v10422_v11, %v5346_v17  ;;  %v5304_v4 = vadd.f32 %v10287_v28, %v10487_v1  ;;  %v5315_v9 = vadd.f32 %v10490_v43, %v10293_v19 }
 0x3da   :  { %v5494_v23 = vrot.slane %v5480_v27, %v9095_v48  ;;  %v5495_v54 = vcombine.high %v5487_v51, %v5487_v51  ;;  %v7861_v36 = vrot.slane %v5487_v51, 9  ;;  %v5387_v56 = vmax.f32 %v5371_v7, 0.0 }
 0x3db   :  { %v5385_v32 = vmax.f32 %v5369_v40, 0.0  ;;  %v5351_v10 = vmul.f32 %v10404_v31, %v5312_v38  ;;  %v5349_v37 = vmul.f32 %v10404_v31, %v5304_v4  ;;  %v10556_v61 = vmul.f32 %v10404_v31, %v5315_v9 }
 0x3dc   :  { %v5496_v13 = vcombine.high %v5494_v23, %v5494_v23  ;;  %v7862_v6 = vrot.slane %v5495_v54, 9  ;;  %v7863_v3 = vrot.slane %v5494_v23, 9  ;;  %v5956_v28 = vmax.f32 %v5487_v51, %v7861_v36 }
 0x3dd   :  { %v5531_v1 = vcombine.high %v5387_v56, %v5387_v56  ;;  %v5538_v19 = vrot.slane %v5387_v56, %v9095_v48  ;;  %v5497_v43 = vcombine.high %v5385_v32, %v5385_v32  ;;  %v5504_v20 = vrot.slane %v5385_v32, %v9095_v48 }
 0x3de   :  { %v7864_v42 = vrot.slane %v5496_v13, 9  ;;  %v5957_v16 = vmax.f32 %v5495_v54, %v7862_v6  ;;  %v5958_v60 = vmax.f32 %v5494_v23, %v7863_v3  ;;  %v5374_v26 = vadd.f32 %v10422_v11, %v5351_v10 }
 0x3df   :  { %v5545_v50 = vrot.slane %v5531_v1, %v9095_v48  ;;  %v5546_v21 = vcombine.high %v5538_v19, %v5538_v19  ;;  %v7873_v46 = vrot.slane %v5538_v19, 9  ;;  %v5511_v25 = vrot.slane %v5497_v43, %v9095_v48 }
 0x3e0   :  { %v5959_v12 = vmax.f32 %v5496_v13, %v7864_v42  ;;  %v5512_v30 = vcombine.high %v5504_v20, %v5504_v20  ;;  %v7865_v49 = vrot.slane %v5504_v20, 9  ;;  %v5390_v58 = vmax.f32 %v5374_v26, 0.0 }
 0x3e1   :  { %v5547_v29 = vcombine.high %v5545_v50, %v5545_v50  ;;  %v7874_v63 = vrot.slane %v5546_v21, 9  ;;  %v7875_v47 = vrot.slane %v5545_v50, 9  ;;  %v5968_v55 = vmax.f32 %v5538_v19, %v7873_v46 }
 0x3e2   :  { %v5513_v0 = vcombine.high %v5511_v25, %v5511_v25  ;;  %v7866_v39 = vrot.slane %v5512_v30, 9  ;;  %v7867_v33 = vrot.slane %v5511_v25, 9  ;;  %v5960_v44 = vmax.f32 %v5504_v20, %v7865_v49 }
 0x3e3   :  { %v7876_v5 = vrot.slane %v5547_v29, 9  ;;  %v5969_v17 = vmax.f32 %v5546_v21, %v7874_v63  ;;  %v5970_v27 = vmax.f32 %v5545_v50, %v7875_v47  ;;  %v6016_v51 = vmax.f32 %v10532_v15, %v5968_v55 }
 0x3e4   :  { %v7868_v7 = vrot.slane %v5513_v0, 9  ;;  %v5961_v38 = vmax.f32 %v5512_v30, %v7866_v39  ;;  %v5962_v40 = vmax.f32 %v5511_v25, %v7867_v33  ;;  %v6012_v4 = vmax.f32 %v5956_v28, %v5960_v44 }
 0x3e5   :  { %v5971_v9 = vmax.f32 %v5547_v29, %v7876_v5  ;;  %v6017_v23 = vmax.f32 %v10536_v41, %v5969_v17  ;;  %v6018_v54 = vmax.f32 %v10538_v22, %v5970_v27  ;;  %v6119_v36 = vrot.slane %v6016_v51, %v9104_v62 }
 0x3e6   :  { %v5963_v56 = vmax.f32 %v5513_v0, %v7868_v7  ;;  %v6013_v32 = vmax.f32 %v5957_v16, %v5961_v38  ;;  %v6014_v10 = vmax.f32 %v5958_v60, %v5962_v40  ;;  %v6103_v13 = vrot.slane %v6012_v4, %v9104_v62 }
 0x3e7   :  { %v6019_v6 = vmax.f32 %v10545_v45, %v5971_v9  ;;  %v6123_v15 = vrot.slane %v6017_v23, %v9104_v62  ;;  %v6127_v3 = vrot.slane %v6018_v54, %v9104_v62  ;;  %v5582_v1 = vcombine.high %v5390_v58, %v5390_v58 }
 0x3e8   :  { %v6015_v28 = vmax.f32 %v5959_v12, %v5963_v56  ;;  %v6107_v19 = vrot.slane %v6013_v32, %v9104_v62  ;;  %v6111_v41 = vrot.slane %v6014_v10, %v9104_v62  ;;  %v5589_v22 = vrot.slane %v5390_v58, %v9095_v48 }
 0x3e9   :  { %v6131_v43 = vrot.slane %v6019_v6, %v9104_v62  ;;  %v6205_v20 = vsel %vm4169_vm3, %v6123_v15, %v6119_v36  ;;  %v5596_v42 = vrot.slane %v5582_v1, %v9095_v48  ;;  %v5372_v45 = vadd.f32 %v10422_v11, %v5349_v37 }
 0x3ea   :  { %v6206_v16 = vsel %vm4171_vm4, %v6127_v3, %v6205_v20  ;;  %v6115_v60 = vrot.slane %v6015_v28, %v9104_v62  ;;  %v6202_v26 = vsel %vm4169_vm3, %v6107_v19, %v6103_v13  ;;  %v5597_v50 = vcombine.high %v5589_v22, %v5589_v22 }
 0x3eb   :  { %v6207_v21 = vsel %vm4173_vm5, %v6131_v43, %v6206_v16  ;;  %v6203_v46 = vsel %vm4171_vm4, %v6111_v41, %v6202_v26  ;;  %v5598_v25 = vcombine.high %v5596_v42, %v5596_v42  ;;  %v7885_v12 = vrot.slane %v5589_v22, 9 }
 0x3ec   :  { %6233 = vst.msk [vmem:[#allocation3 + $0x21] sm:$0xf] %vm6229_vm14, %v6207_v21  ;;  %v6204_v30 = vsel %vm4173_vm5, %v6115_v60, %v6203_v46  ;;  %v7886_v49 = vrot.slane %v5597_v50, 9  ;;  %v7887_v58 = vrot.slane %v5596_v42, 9  ;;  %v5388_v37 = vmax.f32 %v5372_v45, 0.0 }
 0x3ed   :  { %6232 = vst.msk [vmem:[#allocation3 + $0x19] sm:$0xf] %vm6229_vm14, %v6204_v30  ;;  %v7888_v29 = vrot.slane %v5598_v25, 9  ;;  %v5375_v63 = vadd.f32 %v10422_v11, %v10556_v61  ;;  %v5307_v47 = vadd.f32 %v10289_v24, %v10493_v2  ;;  %v5980_v55 = vmax.f32 %v5589_v22, %v7885_v12 }
 0x3ee   :  { %v5981_v0 = vmax.f32 %v5597_v50, %v7886_v49  ;;  %v5548_v39 = vcombine.high %v5388_v37, %v5388_v37  ;;  %v5555_v33 = vrot.slane %v5388_v37, %v9095_v48  ;;  %v5982_v44 = vmax.f32 %v5596_v42, %v7887_v58 }
 0x3ef   :  { %v5391_v5 = vmax.f32 %v5375_v63, 0.0  ;;  %v5350_v17 = vmul.f32 %v10404_v31, %v5307_v47  ;;  %v5328_v27 = vadd.f32 %v10500_v8, %v10385_v57  ;;  %v10597_v61 = vadd.f32 %v10357_v18, %v10506_v52 }
 0x3f0   :  { %v5562_v51 = vrot.slane %v5548_v39, %v9095_v48  ;;  %v5563_v7 = vcombine.high %v5555_v33, %v5555_v33  ;;  %v7877_v38 = vrot.slane %v5555_v33, 9  ;;  %v5983_v9 = vmax.f32 %v5598_v25, %v7888_v29 }
 0x3f1   :  { %v5599_v24 = vcombine.high %v5391_v5, %v5391_v5  ;;  %v5606_v2 = vrot.slane %v5391_v5, %v9095_v48  ;;  %v5373_v40 = vadd.f32 %v10422_v11, %v5350_v17  ;;  %v5355_v4 = vmul.f32 %v10404_v31, %v5328_v27 }
 0x3f2   :  { %v5564_v23 = vcombine.high %v5562_v51, %v5562_v51  ;;  %v7878_v54 = vrot.slane %v5563_v7, 9  ;;  %v7879_v36 = vrot.slane %v5562_v51, 9  ;;  %v5972_v13 = vmax.f32 %v5555_v33, %v7877_v38  ;;  %v8697_v38 = vld [vmem:[%s10840_s7 + $0x78] sm:$0xff]  }
 0x3f3   :  { %v5613_v57 = vrot.slane %v5599_v24, %v9095_v48  ;;  %v5614_v8 = vcombine.high %v5606_v2, %v5606_v2  ;;  %v7889_v56 = vrot.slane %v5606_v2, 9  ;;  %v5389_v32 = vmax.f32 %v5373_v40, 0.0  ;;  %v8698_v24 = vld [vmem:[%s10840_s7 + $0xb8] sm:$0xff]   ;;  %8106 = vmatprep.subr.bf16.mxu1 %v8697_v38 }
 0x3f4   :  { %v7880_v10 = vrot.slane %v5564_v23, 9  ;;  %v5973_v18 = vmax.f32 %v5563_v7, %v7878_v54  ;;  %v5378_v52 = vadd.f32 %v10422_v11, %v5355_v4  ;;  %v5974_v28 = vmax.f32 %v5562_v51, %v7879_v36  ;;  %v8696_v7 = vld [vmem:[%s10840_s7 + $0xf8] sm:$0xff]  }
 0x3f5   :  { %v5615_v6 = vcombine.high %v5613_v57, %v5613_v57  ;;  %v7890_v15 = vrot.slane %v5614_v8, 9  ;;  %v7891_v3 = vrot.slane %v5613_v57, 9  ;;  %v5984_v1 = vmax.f32 %v5606_v2, %v7889_v56  ;;  %8134 = vmatprep.subr.bf16.mxu0 %v8696_v7 }
 0x3f6   :  { %v5565_v19 = vcombine.high %v5389_v32, %v5389_v32  ;;  %v5572_v41 = vrot.slane %v5389_v32, %v9095_v48  ;;  %v5394_v22 = vmax.f32 %v5378_v52, 0.0  ;;  %v5975_v16 = vmax.f32 %v5564_v23, %v7880_v10  ;;  %v8699_v23 = vld [vmem:[%s10840_s7 + $0x38] sm:$0xff]   ;;  %8135 = vmatpush3.bf16.msra.mxu0 %v8698_v24 }
 0x3f7   :  { %v7892_v43 = vrot.slane %v5615_v6, 9  ;;  %v5985_v20 = vmax.f32 %v5614_v8, %v7890_v15  ;;  %v5986_v42 = vmax.f32 %v5613_v57, %v7891_v3  ;;  %v6024_v45 = vmax.f32 %v5980_v55, %v5984_v1  ;;  %v8651_v32 = vld [vmem:[#allocation3 + $0x18] ss:$8 sps:$4 sm:$0xff]   ;;  %8107 = vmatpush3.bf16.msra.mxu1 %v8699_v23  ;;  %8271 = vmatprep.subr.bf16.mxu0 %v8764_v34  ;;  %v8650_v1 = vld [vmem:[#allocation3 + $0x8] ss:$8 sps:$4 sm:$0xff]  }
 0x3f8   :  { %v5579_v60 = vrot.slane %v5565_v19, %v9095_v48  ;;  %v5580_v26 = vcombine.high %v5572_v41, %v5572_v41  ;;  %v7881_v50 = vrot.slane %v5572_v41, 9  ;;  %v5650_v12 = vcombine.high %v5394_v22, %v5394_v22 }
 0x3f9   :  { %v5987_v21 = vmax.f32 %v5615_v6, %v7892_v43  ;;  %v6025_v46 = vmax.f32 %v5981_v0, %v5985_v20  ;;  %v6026_v25 = vmax.f32 %v5982_v44, %v5986_v42  ;;  %v6151_v63 = vrot.slane %v6024_v45, %v9104_v62  ;;  %v8656_v45 = vld [vmem:[#allocation3 + $0x21] ss:$8 sps:$4 sm:$0xff]  }
 0x3fa   :  { %v5581_v30 = vcombine.high %v5579_v60, %v5579_v60  ;;  %v7882_v49 = vrot.slane %v5580_v26, 9  ;;  %v7883_v58 = vrot.slane %v5579_v60, 9  ;;  %v5976_v37 = vmax.f32 %v5572_v41, %v7881_v50  ;;  %v8658_v50 = vld [vmem:[#allocation3 + $0x1a] ss:$8 sps:$4 sm:$0xff]  }
 0x3fb   :  { %v6027_v29 = vmax.f32 %v5983_v9, %v5987_v21  ;;  %v6155_v47 = vrot.slane %v6025_v46, %v9104_v62  ;;  %v6159_v55 = vrot.slane %v6026_v25, %v9104_v62  ;;  %v5657_v44 = vrot.slane %v5394_v22, %v9095_v48  ;;  %v10647_v22 = vld [vmem:[%s10840_s7 + $0x100] sm:$0xff]  }
 0x3fc   :  { %v7884_v39 = vrot.slane %v5581_v30, 9  ;;  %v5977_v33 = vmax.f32 %v5580_v26, %v7882_v49  ;;  %v5978_v5 = vmax.f32 %v5579_v60, %v7883_v58  ;;  %v6020_v17 = vmax.f32 %v5972_v13, %v5976_v37  ;;  %8259 = vmatprep.subr.bf16.mxu1 %v10647_v22 }
 0x3fd   :  { %v6163_v27 = vrot.slane %v6027_v29, %v9104_v62  ;;  %v6211_v0 = vsel %vm4169_vm3, %v6155_v47, %v6151_v63  ;;  %v10613_v51 = vrot.slane %v5650_v12, %v9095_v48  ;;  %v5665_v10 = vcombine.high %v5657_v44, %v5657_v44 }
 0x3fe   :  { %v6212_v2 = vsel %vm4171_vm4, %v6159_v55, %v6211_v0  ;;  %v5979_v40 = vmax.f32 %v5581_v30, %v7884_v39  ;;  %v6021_v4 = vmax.f32 %v5973_v18, %v5977_v33  ;;  %v6022_v9 = vmax.f32 %v5974_v28, %v5978_v5  ;;  %v8653_v18 = vld [vmem:[#allocation3 + $0x11] ss:$8 sps:$4 sm:$0xff]  }
 0x3ff   :  { %v6213_v54 = vsel %vm4173_vm5, %v6163_v27, %v6212_v2  ;;  %v6135_v36 = vrot.slane %v6020_v17, %v9104_v62  ;;  %v5353_v13 = vmul.f32 %v10404_v31, %v10597_v61  ;;  %v5666_v15 = vcombine.high %v10613_v51, %v10613_v51  ;;  %v8652_v61 = vld [vmem:[#allocation3 + $0x1] ss:$8 sps:$4 sm:$0xff]  }
 0x400   :  { %6235 = vst.msk [vmem:[#allocation3 + $0x41] sm:$0xf] %vm6229_vm14, %v6213_v54  ;;  %v6023_v57 = vmax.f32 %v5975_v16, %v5979_v40  ;;  %v6139_v8 = vrot.slane %v6021_v4, %v9104_v62  ;;  %v6143_v56 = vrot.slane %v6022_v9, %v9104_v62  ;;  %v5331_v3 = vadd.f32 %v10511_v14, %v10387_v59  ;;  %v8655_v14 = vld [vmem:[#allocation3 + $0x11] ss:$8 sps:$4 sm:$0xff]  }
 0x401   :  { %v7901_v19 = vrot.slane %v5657_v44, 9  ;;  %v5376_v41 = vadd.f32 %v10422_v11, %v5353_v13  ;;  %v5323_v42 = vadd.f32 %v10359_v35, %v10516_v53  ;;  %v8558_v59 = vpack.i.bf16 %v8651_v32, %v8650_v1  ;;  %v8657_v35 = vld [vmem:[#allocation3 + $0xa] ss:$8 sps:$4 sm:$0xff]  }
 0x402   :  { %v6147_v52 = vrot.slane %v6023_v57, %v9104_v62  ;;  %v6208_v6 = vsel %vm4169_vm3, %v6139_v8, %v6135_v36  ;;  %v5356_v20 = vmul.f32 %v10404_v31, %v5331_v3  ;;  %v7902_v16 = vrot.slane %v5665_v10, 9 }
 0x403   :  { %v6209_v28 = vsel %vm4171_vm4, %v6143_v56, %v6208_v6  ;;  %v5392_v60 = vmax.f32 %v5376_v41, 0.0  ;;  %v8563_v26 = vpack.i.bf16 %v8653_v18, %v8652_v61  ;;  %v7903_v21 = vrot.slane %v10613_v51, 9  ;;  %8559 = vrot.lane.b32.xlu0 %v8558_v59, %s8766_s17 }
 0x404   :  { %v6210_v43 = vsel %vm4173_vm5, %v6147_v52, %v6209_v28  ;;  %v7904_v46 = vrot.slane %v5666_v15, 9  ;;  %v5379_v25 = vadd.f32 %v10422_v11, %v5356_v20  ;;  %v5354_v12 = vmul.f32 %v10404_v31, %v5323_v42 }
 0x405   :  { %6234 = vst.msk [vmem:[#allocation3 + $0x39] sm:$0xf] %vm6229_vm14, %v6210_v43  ;;  %v5616_v53 = vcombine.high %v5392_v60, %v5392_v60  ;;  %v5623_v30 = vrot.slane %v5392_v60, %v9095_v48  ;;  %8564 = vrot.lane.b32.xlu1 %v8563_v26, %s8766_s17  ;;  %v5996_v49 = vmax.f32 %v5657_v44, %v7901_v19 }
 0x406   :  { %v5395_v58 = vmax.f32 %v5379_v25, 0.0  ;;  %v5377_v37 = vadd.f32 %v10422_v11, %v5354_v12  ;;  %v8568_v29 = vpack.i.bf16 %v8656_v45, %v8655_v14  ;;  %v8573_v39 = vpack.i.bf16 %v8658_v50, %v8657_v35 }
 0x407   :  { %v5630_v63 = vrot.slane %v5616_v53, %v9095_v48  ;;  %v5631_v47 = vcombine.high %v5623_v30, %v5623_v30  ;;  %v7893_v55 = vrot.slane %v5623_v30, 9  ;;  %v5997_v33 = vmax.f32 %v5665_v10, %v7902_v16 }
 0x408   :  { %v5667_v31 = vcombine.high %v5395_v58, %v5395_v58  ;;  %v5674_v5 = vrot.slane %v5395_v58, %v9095_v48  ;;  %v5393_v17 = vmax.f32 %v5377_v37, 0.0  ;;  %8569 = vrot.lane.b32.xlu0 %v8568_v29, %s8766_s17  ;;  %v5998_v27 = vmax.f32 %v10613_v51, %v7903_v21 }
 0x409   :  { %v5999_v0 = vmax.f32 %v5666_v15, %v7904_v46  ;;  %v5632_v44 = vcombine.high %v5630_v63, %v5630_v63  ;;  %v7894_v7 = vrot.slane %v5631_v47, 9  ;;  %8574 = vrot.lane.b32.xlu1 %v8573_v39, %s8766_s17  ;;  %v7895_v40 = vrot.slane %v5630_v63, 9 }
 0x40a   :  { %v5681_v11 = vrot.slane %v5667_v31, %v9095_v48  ;;  %v5682_v38 = vcombine.high %v5674_v5, %v5674_v5  ;;  %v7905_v24 = vrot.slane %v5674_v5, 9  ;;  %v5633_v2 = vcombine.high %v5393_v17, %v5393_v17 }
 0x40b   :  { %v7896_v4 = vrot.slane %v5632_v44, 9  ;;  %v5988_v9 = vmax.f32 %v5623_v30, %v7893_v55  ;;  %v5640_v23 = vrot.slane %v5393_v17, %v9095_v48  ;;  %v5989_v51 = vmax.f32 %v5631_v47, %v7894_v7 }
 0x40c   :  { %v5683_v54 = vcombine.high %v5681_v11, %v5681_v11  ;;  %v7906_v36 = vrot.slane %v5682_v38, 9  ;;  %v7907_v57 = vrot.slane %v5681_v11, 9  ;;  %v6000_v8 = vmax.f32 %v5674_v5, %v7905_v24  ;;  %v8662_v31 = vld [vmem:[#allocation3 + $0x31] ss:$8 sps:$4 sm:$0xff]  }
 0x40d   :  { %v5647_v56 = vrot.slane %v5633_v2, %v9095_v48  ;;  %v5648_v32 = vcombine.high %v5640_v23, %v5640_v23  ;;  %v7897_v10 = vrot.slane %v5640_v23, 9  ;;  %v5990_v19 = vmax.f32 %v5630_v63, %v7895_v40 }
 0x40e   :  { %v7908_v13 = vrot.slane %v5683_v54, 9  ;;  %v6001_v18 = vmax.f32 %v5682_v38, %v7906_v36  ;;  %v6002_v52 = vmax.f32 %v5681_v11, %v7907_v57  ;;  %v6032_v6 = vmax.f32 %v5996_v49, %v6000_v8  ;;  %v8667_v38 = vld [vmem:[#allocation3 + $0x3a] ss:$8 sps:$4 sm:$0xff]  }
 0x40f   :  { %v5649_v15 = vcombine.high %v5647_v56, %v5647_v56  ;;  %v7898_v3 = vrot.slane %v5648_v32, 9  ;;  %v7899_v1 = vrot.slane %v5647_v56, 9  ;;  %v5992_v28 = vmax.f32 %v5640_v23, %v7897_v10  ;;  %v8703_v36 = vld [vmem:[#allocation3 + $0x12] ss:$8 sps:$4 sm:$0xff]  }
 0x410   :  { %v6003_v41 = vmax.f32 %v5683_v54, %v7908_v13  ;;  %v6033_v61 = vmax.f32 %v5997_v33, %v6001_v18  ;;  %v6034_v43 = vmax.f32 %v5998_v27, %v6002_v52  ;;  %v6183_v16 = vrot.slane %v6032_v6, %v9104_v62  ;;  %v8660_v33 = vld [vmem:[#allocation3 + $0x38] ss:$8 sps:$4 sm:$0xff]  }
 0x411   :  { %v7900_v20 = vrot.slane %v5649_v15, 9  ;;  %v5993_v42 = vmax.f32 %v5648_v32, %v7898_v3  ;;  %v5994_v59 = vmax.f32 %v5647_v56, %v7899_v1  ;;  %v6028_v14 = vmax.f32 %v5988_v9, %v5992_v28  ;;  %v8702_v54 = vld [vmem:[#allocation3 + $0x2] ss:$8 sps:$4 sm:$0xff]   ;;  %v8694_v57 = vld [vmem:[#allocation3 + $0x10] ss:$8 sps:$4 sm:$0xff]  }
 0x412   :  { %v6035_v45 = vmax.f32 %v5999_v0, %v6003_v41  ;;  %v6187_v60 = vrot.slane %v6033_v61, %v9104_v62  ;;  %v6191_v26 = vrot.slane %v6034_v43, %v9104_v62  ;;  %v5991_v50 = vmax.f32 %v5632_v44, %v7896_v4  ;;  %v8695_v56 = vld [vmem:[#allocation3] ss:$8 sps:$4 sm:$0xff]  }
 0x413   :  { %v5995_v21 = vmax.f32 %v5649_v15, %v7900_v20  ;;  %v6029_v46 = vmax.f32 %v5989_v51, %v5993_v42  ;;  %v6030_v25 = vmax.f32 %v5990_v19, %v5994_v59  ;;  %v6167_v53 = vrot.slane %v6028_v14, %v9104_v62  ;;  %v8704_v19 = vld [vmem:[#allocation3 + $0x10] ss:$8 sps:$4 sm:$0xff]   ;;  %v8705_v41 = vld [vmem:[#allocation3 + $0x20] ss:$8 sps:$4 sm:$0xff]  }
 0x414   :  { %v6195_v12 = vrot.slane %v6035_v45, %v9104_v62  ;;  %v6217_v35 = vsel %vm4169_vm3, %v6187_v60, %v6183_v16  ;;  %v8707_v61 = vld [vmem:[%s10840_s7 + $0x108] sm:$0xff]   ;;  %v8701_v20 = vld [vmem:[#allocation3 + $0x19] ss:$8 sps:$4 sm:$0xff]  }
 0x415   :  { %v6218_v30 = vsel %vm4171_vm4, %v6191_v26, %v6217_v35  ;;  %v6031_v49 = vmax.f32 %v5991_v50, %v5995_v21  ;;  %v6171_v58 = vrot.slane %v6029_v46, %v9104_v62  ;;  %v6175_v37 = vrot.slane %v6030_v25, %v9104_v62  ;;  %v8700_v43 = vld [vmem:[#allocation3 + $0x9] ss:$8 sps:$4 sm:$0xff]   ;;  %v8719_v46 = vld [vmem:[%s10840_s7 + $0x118] sm:$0xff]  }
 0x416   :  { %v6219_v29 = vsel %vm4173_vm5, %v6195_v12, %v6218_v30  ;;  %v8712_v21 = vld [vmem:[%s10840_s7 + $0x110] sm:$0xff]  }
 0x417   :  { %6237 = vst.msk [vmem:[#allocation3 + $0x51] sm:$0xf] %vm6229_vm14, %v6219_v29  ;;  %v6179_v63 = vrot.slane %v6031_v49, %v9104_v62  ;;  %v6214_v47 = vsel %vm4169_vm3, %v6171_v58, %v6167_v53  ;;  %v8708_v53 = vld [vmem:[#allocation3 + $0x32] ss:$8 sps:$4 sm:$0xff]  }
 0x418   :  { %v6215_v55 = vsel %vm4171_vm4, %v6175_v37, %v6214_v47  ;;  %v8713_v49 = vld [vmem:[#allocation3 + $0x12] ss:$8 sps:$4 sm:$0xff]   ;;  %v8714_v47 = vld [vmem:[#allocation3 + $0x22] ss:$8 sps:$4 sm:$0xff]  }
 0x419   :  { %v6216_v39 = vsel %vm4173_vm5, %v6179_v63, %v6215_v55  ;;  %v8710_v29 = vld [vmem:[#allocation3 + $0x30] ss:$8 sps:$4 sm:$0xff]  }
 0x41a   :  { %6236 = vst.msk [vmem:[#allocation3 + $0x49] sm:$0xf] %vm6229_vm14, %v6216_v39 }
 0x41e   :  { %v8666_v27 = vld [vmem:[#allocation3 + $0x51] ss:$8 sps:$4 sm:$0xff]  }
 0x421   :  { %v8661_v5 = vld [vmem:[#allocation3 + $0x48] ss:$8 sps:$4 sm:$0xff]  }
 0x422   :  { %v8663_v17 = vld [vmem:[#allocation3 + $0x41] ss:$8 sps:$4 sm:$0xff]   ;;  %v8578_v0 = vpack.i.bf16 %v8661_v5, %v8660_v33 }
 0x423   :  { %v8665_v44 = vld [vmem:[#allocation3 + $0x41] ss:$8 sps:$4 sm:$0xff]   ;;  %v8583_v7 = vpack.i.bf16 %v8663_v17, %v8662_v31 }
 0x424   :  { %v8668_v11 = vld [vmem:[#allocation3 + $0x4a] ss:$8 sps:$4 sm:$0xff]   ;;  %8579 = vrot.lane.b32.xlu0 %v8578_v0, %s8766_s17  ;;  %v8588_v24 = vpack.i.bf16 %v8666_v27, %v8665_v44 }
 0x425   :  { %8584 = vrot.lane.b32.xlu1 %v8583_v7, %s8766_s17  ;;  %v8593_v2 = vpack.i.bf16 %v8668_v11, %v8667_v38  ;;  %v8709_v30 = vld [vmem:[#allocation3 + $0x42] ss:$8 sps:$4 sm:$0xff]   ;;  %v8716_v38 = vld [vmem:[#allocation3 + $0x50] ss:$8 sps:$4 sm:$0xff]  }
 0x426   :  { %v8711_v63 = vld [vmem:[#allocation3 + $0x40] ss:$8 sps:$4 sm:$0xff]  }
 0x427   :  { %v8715_v11 = vld [vmem:[#allocation3 + $0x40] ss:$8 sps:$4 sm:$0xff]  }
 0x428   :  { %8589 = vrot.lane.b32.xlu0 %v8588_v24, %s8766_s17 }
 0x429   :  { %8594 = vrot.lane.b32.xlu1 %v8593_v2, %s8766_s17 }
 0x475   :  { %v8560_v40 = vpop.permute.xlu0 %8559 }
 0x476   :  { %v8562_v4 = vunpack.i.h.bf16 %v8560_v40  ;;  %v8561_v9 = vunpack.i.l.bf16 %v8560_v40  ;;  %v6507_v40 = vpack.c.bf16 %v8714_v47, %v8713_v49 }
 0x477   :  { %v8565_v23 = vpop.permute.xlu1 %8564 }
 0x478   :  { %v8567_v8 = vunpack.i.h.bf16 %v8565_v23  ;;  %v8566_v51 = vunpack.i.l.bf16 %v8565_v23  ;;  %v6491_v32 = vsel %vm4866_vm10, %v8702_v54, %v8561_v9  ;;  %v6492_v10 = vsel %vm4866_vm10, %v8703_v36, %v8562_v4  ;;  %v8717_v4 = vld [vmem:[#allocation3 + $0x39] ss:$8 sps:$4 sm:$0xff]   ;;  %v8718_v9 = vld [vmem:[#allocation3 + $0x49] ss:$8 sps:$4 sm:$0xff]  }
 0x479   :  { %v6504_v6 = vpack.c.bf16 %v6492_v10, %v6491_v32  ;;  %v8721_v32 = vld [vmem:[#allocation3 + $0x52] ss:$8 sps:$4 sm:$0xff]  }
 0x47a   :  { %v6488_v13 = vsel %vm4866_vm10, %v8694_v57, %v8567_v8  ;;  %v6487_v18 = vsel %vm4866_vm10, %v8695_v56, %v8566_v51  ;;  %v8570_v52 = vpop.permute.xlu0 %8569  ;;  %v8720_v56 = vld [vmem:[#allocation3 + $0x42] ss:$8 sps:$4 sm:$0xff]  }
 0x47b   :  { %v6503_v15 = vpack.c.bf16 %v6488_v13, %v6487_v18  ;;  %v8572_v3 = vunpack.i.h.bf16 %v8570_v52  ;;  %v8571_v1 = vunpack.i.l.bf16 %v8570_v52  ;;  %v8575_v28 = vpop.permute.xlu1 %8574  ;;  %6839 = vmatprep.mubr.bf16.mxu1 %v6504_v6  ;;  %v6512_v10 = vpack.c.bf16 %v8721_v32, %v8720_v56  ;;  %v8722_v13 = vld [vmem:[%s10843_s10] sm:$0xff]   ;;  %v8723_v18 = vld [vmem:[%s10843_s10 + $0x8] sm:$0xff]   ;;  %v8724_v52 = vld [vmem:[%s10843_s10 + $0x10] sm:$0xff]  }
 0x47c   :  { %v8577_v42 = vunpack.i.h.bf16 %v8575_v28  ;;  %v8576_v59 = vunpack.i.l.bf16 %v8575_v28  ;;  %v8725_v6 = vld [vmem:[%s10843_s10 + $0x18] sm:$0xff]   ;;  %v8728_v28 = vld [vmem:[%s10843_s10 + $0x30] sm:$0xff]  }
 0x47d   :  { %6840 = vmatmul.mubr.bf16.vlgmr.msra.gmra.mrb[48].mxu1 %v6503_v15  ;;  %v6499_v14 = vsel %vm4866_vm10, %v8704_v19, %v8571_v1  ;;  %v6500_v45 = vsel %vm4866_vm10, %v8705_v41, %v8572_v3  ;;  %v8726_v15 = vld [vmem:[%s10843_s10 + $0x20] sm:$0xff]   ;;  %v8727_v3 = vld [vmem:[%s10843_s10 + $0x28] sm:$0xff]   ;;  %v8729_v41 = vld [vmem:[%s10843_s10 + $0x38] sm:$0xff]  }
 0x47e   :  { %v6496_v16 = vsel %vm4866_vm10, %v8701_v20, %v8577_v42  ;;  %v6495_v60 = vsel %vm4866_vm10, %v8700_v43, %v8576_v59  ;;  %v6506_v26 = vpack.c.bf16 %v6500_v45, %v6499_v14  ;;  %8260 = vmatpush3.bf16.msra.mxu1 %v10647_v22  ;;  %v8730_v1 = vld [vmem:[%s10845_s12] sm:$0xff]   ;;  %v8731_v19 = vld [vmem:[%s10845_s12 + $0x8] sm:$0xff]  }
 0x47f   :  { %v6505_v50 = vpack.c.bf16 %v6496_v16, %v6495_v60  ;;  %8261 = vmatprep.subr.bf16.mxu1 %v8707_v61 }
 0x480   :  { %6888 = vmatprep.mubr.bf16.mxu0 %v6506_v26 }
 0x481   :  { %6889 = vmatmul.mubr.bf16.vlgmr.msra.gmra.mrb[64].mxu0 %v6505_v50 }
 0x482   :  { %8262 = vmatpush3.bf16.msra.mxu1 %v8707_v61  ;;  %8272 = vmatpush3.bf16.msra.mxu0 %v8722_v13 }
 0x483   :  { %8263 = vmatprep.subr.bf16.mxu1 %v8712_v21  ;;  %8273 = vmatprep.subr.bf16.mxu0 %v8764_v34 }
 0x486   :  { %8264 = vmatpush3.bf16.msra.mxu1 %v8712_v21  ;;  %8274 = vmatpush3.bf16.msra.mxu0 %v8723_v18 }
 0x487   :  { %8265 = vmatprep.subr.bf16.mxu1 %v8719_v46  ;;  %8275 = vmatprep.subr.bf16.mxu0 %v8764_v34 }
 0x48a   :  { %8266 = vmatpush3.bf16.msra.mxu1 %v8719_v46  ;;  %8276 = vmatpush3.bf16.msra.mxu0 %v8724_v52 }
 0x48b   :  { %8291 = vmatprep.subr.bf16.mxu1 %v8764_v34  ;;  %8277 = vmatprep.subr.bf16.mxu0 %v8764_v34 }
 0x48e   :  { %8278 = vmatpush3.bf16.msra.mxu0 %v8725_v6 }
 0x48f   :  { %8279 = vmatprep.subr.bf16.mxu0 %v8764_v34 }
 0x492   :  { %8280 = vmatpush3.bf16.msra.mxu0 %v8726_v15 }
 0x493   :  { %8281 = vmatprep.subr.bf16.mxu0 %v8764_v34 }
 0x496   :  { %v8580_v22 = vpop.permute.xlu0 %8579  ;;  %8282 = vmatpush3.bf16.msra.mxu0 %v8727_v3 }
 0x497   :  { %v8582_v25 = vunpack.i.h.bf16 %v8580_v22  ;;  %v8581_v12 = vunpack.i.l.bf16 %v8580_v22  ;;  %v8585_v35 = vpop.permute.xlu1 %8584  ;;  %8283 = vmatprep.subr.bf16.mxu0 %v8764_v34 }
 0x498   :  { %v8587_v58 = vunpack.i.h.bf16 %v8585_v35  ;;  %v8586_v37 = vunpack.i.l.bf16 %v8585_v35 }
 0x499   :  { %v6493_v55 = vsel %vm4866_vm10, %v8708_v53, %v8581_v12  ;;  %v6494_v39 = vsel %vm4866_vm10, %v8709_v30, %v8582_v25 }
 0x49a   :  { %v8590_v33 = vpop.permute.xlu0 %8589  ;;  %v6509_v31 = vpack.c.bf16 %v6494_v39, %v6493_v55  ;;  %v6489_v5 = vsel %vm4866_vm10, %v8710_v29, %v8586_v37  ;;  %v6490_v17 = vsel %vm4866_vm10, %v8711_v63, %v8587_v58  ;;  %8284 = vmatpush3.bf16.msra.mxu0 %v8728_v28 }
 0x49b   :  { %v8592_v27 = vunpack.i.h.bf16 %v8590_v33  ;;  %v8591_v0 = vunpack.i.l.bf16 %v8590_v33  ;;  %v8595_v44 = vpop.permute.xlu1 %8594  ;;  %v6508_v7 = vpack.c.bf16 %v6490_v17, %v6489_v5  ;;  %8285 = vmatprep.subr.bf16.mxu0 %v8764_v34 }
 0x49c   :  { %v8597_v24 = vunpack.i.h.bf16 %v8595_v44  ;;  %v8596_v2 = vunpack.i.l.bf16 %v8595_v44  ;;  %6847 = vmatprep.mubr.bf16.mxu1 %v6509_v31  ;;  %v7947_v31 = vld [vmem:[%s10841_s8] ss:$0 sm:$0xff] }
 0x49d   :  { %6848 = vmatmul.mubr.bf16.gmra.mrb[52].mxu1 %v6508_v7  ;;  %v6501_v23 = vsel %vm4866_vm10, %v8715_v11, %v8591_v0  ;;  %v6502_v54 = vsel %vm4866_vm10, %v8716_v38, %v8592_v27  ;;  %v7948_v7 = vld [vmem:[%s10842_s9] ss:$0 sm:$0xff] }
 0x49e   :  { %8267 = vmatprep.mubr.msk.bf16.mxu1 %vm4866_vm10, %v6507_v40  ;;  %v6511_v36 = vpack.c.bf16 %v6502_v54, %v6501_v23  ;;  %v6497_v57 = vsel %vm4866_vm10, %v8717_v4, %v8596_v2  ;;  %v6498_v8 = vsel %vm4866_vm10, %v8718_v9, %v8597_v24  ;;  %8286 = vmatpush3.bf16.msra.mxu0 %v8729_v41 }
 0x49f   :  { %v6510_v51 = vpack.c.bf16 %v6498_v8, %v6497_v57 }
 0x4a0   :  { %6896 = vmatprep.mubr.bf16.mxu0 %v6511_v36 }
 0x4a1   :  { %6897 = vmatmul.mubr.bf16.gmra.mrb[68].mxu0 %v6510_v51 }
 0x4a2   :  { %8287 = vmatprep.mubr.msk.bf16.mxu0 %vm8769_vm15, %v8764_v34 }
 0x4a5   :  { %8268 = vmatmul.mubr.msk.bf16.vlgmr.msra.gmra.mrb[56].mxu1 %vm4866_vm10, %v6512_v10 }
 0x4a6   :  { %8299 = vmatprep.mubr.msk.bf16.mxu1 %vm8769_vm15, %v8764_v34  ;;  %8292 = vmatpush3.bf16.msra.mxu1 %v8730_v1 }
 0x4a7   :  { %8293 = vmatprep.subr.bf16.mxu1 %v8764_v34 }
 0x4aa   :  { %8294 = vmatpush3.bf16.msra.mxu1 %v8731_v19 }
 0x4ab   :  { %8295 = vmatprep.subr.bf16.mxu1 %v8764_v34 }
 0x550   :  { %v8108_v61 = vpop.f32.mrb[48].mxu1 }
 0x551   :  { %v8109_v43 = vpop.f32.mrb[49].mxu1 }
 0x552   :  { %v8110_v20 = vadd.f32 %v8109_v43, %v8108_v61  ;;  %v8111_v42 = vpop.f32.mrb[50].mxu1 }
 0x553   :  { %v8112_v59 = vpop.f32.mrb[51].mxu1 }
 0x554   :  { %v8113_v14 = vadd.f32 %v8112_v59, %v8111_v42  ;;  %v8136_v45 = vpop.f32.mrb[64].mxu0 }
 0x555   :  { %v8137_v16 = vpop.f32.mrb[65].mxu0 }
 0x556   :  { %v8138_v60 = vadd.f32 %v8137_v16, %v8136_v45  ;;  %v8139_v26 = vpop.f32.mrb[66].mxu0 }
 0x557   :  { %v8140_v50 = vpop.f32.mrb[67].mxu0 }
 0x558   :  { %v8141_v21 = vadd.f32 %v8140_v50, %v8139_v26  ;;  %v6891_v46 = vadd.f32 %v8138_v60, %v8110_v20 }
 0x55a   :  { %v6894_v22 = vadd.f32 %v8141_v21, %v8113_v14 }
 0x570   :  { %v8114_v25 = vpop.f32.mrb[52].mxu1 }
 0x571   :  { %v8115_v12 = vpop.f32.mrb[53].mxu1 }
 0x572   :  { %v8116_v35 = vadd.f32 %v8115_v12, %v8114_v25  ;;  %v8117_v53 = vpop.f32.mrb[54].mxu1 }
 0x573   :  { %v8118_v30 = vpop.f32.mrb[55].mxu1 }
 0x574   :  { %v8119_v49 = vadd.f32 %v8118_v30, %v8117_v53  ;;  %v8142_v58 = vpop.f32.mrb[68].mxu0 }
 0x575   :  { %v8143_v37 = vpop.f32.mrb[69].mxu0 }
 0x576   :  { %v8144_v29 = vadd.f32 %v8143_v37, %v8142_v58  ;;  %v8145_v63 = vpop.f32.mrb[70].mxu0 }
 0x577   :  { %v8146_v47 = vpop.f32.mrb[71].mxu0 }
 0x578   :  { %v8147_v55 = vadd.f32 %v8146_v47, %v8145_v63  ;;  %v6899_v39 = vadd.f32 %v8144_v29, %v8116_v35  ;;  %v8269_v33 = vpop.f32.mrb[56].mxu1 }
 0x579   :  { %v6939_v5 = vpop.f32.mrb[57].mxu1 }
 0x57a   :  { %v6948_v17 = vadd.f32 %v8269_v33, %v6899_v39  ;;  %v6940_v27 = vadd.f32 %v6939_v5, %v6891_v46  ;;  %v6902_v0 = vadd.f32 %v8147_v55, %v8119_v49  ;;  %v8270_v44 = vpop.f32.mrb[58].mxu1 }
 0x57b   :  { %v6942_v11 = vpop.f32.mrb[59].mxu1 }
 0x57c   :  { %v6963_v38 = vmul.f32 %v7947_v31, %v6948_v17  ;;  %v6961_v24 = vmul.f32 %v7947_v31, %v6940_v27  ;;  %v6951_v2 = vadd.f32 %v8270_v44, %v6902_v0  ;;  %v6943_v40 = vadd.f32 %v6942_v11, %v6894_v22 }
 0x57e   :  { %v6974_v4 = vadd.f32 %v7948_v7, %v6963_v38  ;;  %v6972_v9 = vadd.f32 %v7948_v7, %v6961_v24  ;;  %v6964_v23 = vmul.f32 %v7947_v31, %v6951_v2  ;;  %v6962_v8 = vmul.f32 %v7947_v31, %v6943_v40 }
 0x580   :  { %v6978_v54 = vmax.f32 %v6974_v4, 0.0  ;;  %v6976_v36 = vmax.f32 %v6972_v9, 0.0  ;;  %v6975_v57 = vadd.f32 %v7948_v7, %v6964_v23  ;;  %v6973_v19 = vadd.f32 %v7948_v7, %v6962_v8 }
 0x582   :  { %v7018_v51 = vcombine.high %v6978_v54, %v6978_v54  ;;  %v7025_v56 = vrot.slane %v6978_v54, %v9095_v48  ;;  %v6984_v32 = vcombine.high %v6976_v36, %v6976_v36  ;;  %v6991_v10 = vrot.slane %v6976_v36, %v9095_v48 }
 0x583   :  { %v6979_v13 = vmax.f32 %v6975_v57, 0.0  ;;  %v6977_v46 = vmax.f32 %v6973_v19, 0.0 }
 0x584   :  { %v7032_v18 = vrot.slane %v7018_v51, %v9095_v48  ;;  %v7033_v52 = vcombine.high %v7025_v56, %v7025_v56  ;;  %v7957_v6 = vrot.slane %v7025_v56, 9  ;;  %v6998_v15 = vrot.slane %v6984_v32, %v9095_v48 }
 0x585   :  { %v6999_v3 = vcombine.high %v6991_v10, %v6991_v10  ;;  %v7035_v1 = vcombine.high %v6979_v13, %v6979_v13  ;;  %v7042_v28 = vrot.slane %v6979_v13, %v9095_v48  ;;  %v7949_v53 = vrot.slane %v6991_v10, 9 }
 0x586   :  { %v7034_v41 = vcombine.high %v7032_v18, %v7032_v18  ;;  %v7958_v61 = vrot.slane %v7033_v52, 9  ;;  %v7959_v43 = vrot.slane %v7032_v18, 9  ;;  %v7124_v20 = vmax.f32 %v7025_v56, %v7957_v6 }
 0x587   :  { %v7000_v42 = vcombine.high %v6998_v15, %v6998_v15  ;;  %v7950_v59 = vrot.slane %v6999_v3, 9  ;;  %v7951_v16 = vrot.slane %v6998_v15, 9  ;;  %v7049_v60 = vrot.slane %v7035_v1, %v9095_v48 }
 0x588   :  { %v7960_v14 = vrot.slane %v7034_v41, 9  ;;  %v7126_v45 = vmax.f32 %v7032_v18, %v7959_v43  ;;  %v7125_v26 = vmax.f32 %v7033_v52, %v7958_v61  ;;  %v7050_v21 = vcombine.high %v7042_v28, %v7042_v28 }
 0x589   :  { %v7952_v50 = vrot.slane %v7000_v42, 9  ;;  %v7051_v12 = vcombine.high %v7049_v60, %v7049_v60  ;;  %v7961_v35 = vrot.slane %v7042_v28, 9  ;;  %v7963_v58 = vrot.slane %v7049_v60, 9 }
 0x58a   :  { %v7127_v22 = vmax.f32 %v7034_v41, %v7960_v14  ;;  %v7136_v25 = vmax.f32 %v7124_v20, %v7126_v45  ;;  %v7962_v49 = vrot.slane %v7050_v21, 9  ;;  %v7117_v29 = vmax.f32 %v6999_v3, %v7950_v59 }
 0x58b   :  { %v7119_v30 = vmax.f32 %v7000_v42, %v7952_v50  ;;  %v7118_v63 = vmax.f32 %v6998_v15, %v7951_v16  ;;  %v7964_v47 = vrot.slane %v7051_v12, 9  ;;  %v7128_v39 = vmax.f32 %v7042_v28, %v7961_v35 }
 0x58c   :  { %v7137_v37 = vmax.f32 %v7125_v26, %v7127_v22  ;;  %v7167_v55 = vrot.slane %v7136_v25, %v9104_v62  ;;  %v7129_v33 = vmax.f32 %v7050_v21, %v7962_v49  ;;  %v7130_v31 = vmax.f32 %v7049_v60, %v7963_v58 }
 0x58d   :  { %v7131_v17 = vmax.f32 %v7051_v12, %v7964_v47  ;;  %v7001_v27 = vcombine.high %v6977_v46, %v6977_v46  ;;  %v7008_v0 = vrot.slane %v6977_v46, %v9095_v48  ;;  %v7116_v44 = vmax.f32 %v6991_v10, %v7949_v53  ;;  %v8733_v47 = vld [vmem:[%s10845_s12 + $0x18] sm:$0xff]  }
 0x58e   :  { %v7171_v5 = vrot.slane %v7137_v37, %v9104_v62  ;;  %v7133_v7 = vmax.f32 %v7117_v29, %v7119_v30  ;;  %v7138_v11 = vmax.f32 %v7128_v39, %v7130_v31 }
 0x58f   :  { %v7139_v24 = vmax.f32 %v7129_v33, %v7131_v17  ;;  %v7015_v2 = vrot.slane %v7001_v27, %v9095_v48  ;;  %v7016_v40 = vcombine.high %v7008_v0, %v7008_v0  ;;  %v7132_v4 = vmax.f32 %v7116_v44, %v7118_v63  ;;  %v8732_v63 = vld [vmem:[%s10845_s12 + $0x10] sm:$0xff]  }
 0x590   :  { %v7183_v38 = vsel %vm4169_vm3, %v7171_v5, %v7167_v55  ;;  %v7175_v9 = vrot.slane %v7138_v11, %v9104_v62  ;;  %v7953_v23 = vrot.slane %v7008_v0, 9  ;;  %v7155_v51 = vrot.slane %v7133_v7, %v9104_v62  ;;  %8296 = vmatpush3.bf16.msra.mxu1 %v8732_v63  ;;  %v7965_v55 = vld [vmem:[%s10844_s11] ss:$0 sm:$0xff]  ;;  %v8735_v7 = vld [vmem:[%s10847_s14 + $0x8] sm:$0xff]  }
 0x591   :  { %v7179_v54 = vrot.slane %v7139_v24, %v9104_v62  ;;  %v7017_v36 = vcombine.high %v7015_v2, %v7015_v2  ;;  %v7954_v57 = vrot.slane %v7016_v40, 9  ;;  %v7955_v8 = vrot.slane %v7015_v2, 9  ;;  %8297 = vmatprep.subr.bf16.mxu1 %v8764_v34  ;;  %v7974_v11 = vld [vmem:[%s10846_s13] ss:$0 sm:$0xff] }
 0x592   :  { %v7184_v56 = vsel %vm4171_vm4, %v7175_v9, %v7183_v38  ;;  %v7120_v13 = vmax.f32 %v7008_v0, %v7953_v23  ;;  %v7151_v18 = vrot.slane %v7132_v4, %v9104_v62  ;;  %v8734_v0 = vld [vmem:[%s10847_s14] sm:$0xff]   ;;  %s7485_s14 = sshll.u32 %s8770_s24, 4  ;;  %s7486_s14 = int_to_ptr.vmem [resolvable:$true] %s7485_s14 }
 0x593   :  { %v7185_v32 = vsel %vm4173_vm5, %v7179_v54, %v7184_v56  ;;  %v7956_v10 = vrot.slane %v7017_v36, 9  ;;  %v7122_v48 = vmax.f32 %v7015_v2, %v7955_v8  ;;  %v7121_v15 = vmax.f32 %v7016_v40, %v7954_v57  ;;  %s8740_s13 = scalar_lea.vmem %s7486_s14, 32  ;;  %p8745_p1 = scmp.lt.s32.totalorder %s7486_s14, %s7486_s14 }
 0x594   :  { %v7196_v52 = vsel %vm7188_vm1, %v7185_v32, 0.0  ;;  %v7180_v28 = vsel %vm4169_vm3, %v7155_v51, %v7151_v18  ;;  %8298 = vmatpush3.bf16.msra.mxu1 %v8733_v47  ;;  %p8741_p0 = scmp.ne.s32.totalorder %s7486_s14, %s8740_s13  ;;  %p8746_p2 = scmp.lt.s32.totalorder %s8740_s13, %s8740_s13 }
 0x595   :  { %v7197_v6 = vrot.slane %v7196_v52, 4  ;;  %v7123_v3 = vmax.f32 %v7017_v36, %v7956_v10  ;;  %v7134_v1 = vmax.f32 %v7120_v13, %v7122_v48  ;;  %8303 = vmatprep.subr.bf16.mxu1 %v8764_v34 }
 0x596   :  { %p8747_p3 = por %p8746_p2, %p8745_p1 }
 0x597   :  { %v7135_v19 = vmax.f32 %v7121_v15, %v7123_v3  ;;  %v7159_v41 = vrot.slane %v7134_v1, %v9104_v62  ;;  %v7198_v61 = vadd.f32 %v7197_v6, %v7196_v52 }
 0x598   :  { %p8748_p4 = pnand %p8747_p3, %p8741_p0 }
 0x599   :  { %v7163_v43 = vrot.slane %v7135_v19, %v9104_v62  ;;  %v7181_v20 = vsel %vm4171_vm4, %v7159_v41, %v7180_v28  ;;  %v7199_v42 = vrot.slane %v7198_v61, 2 }
 0x59b   :  { %v7182_v59 = vsel %vm4173_vm5, %v7163_v43, %v7181_v20  ;;  %v7200_v14 = vadd.f32 %v7199_v42, %v7198_v61 }
 0x59c   :  { %v7189_v45 = vsel %vm7188_vm1, %v7182_v59, 0.0 }
 0x59d   :  { %v7190_v16 = vrot.slane %v7189_v45, 4  ;;  %v7201_v60 = vrot.slane %v7200_v14, 1 }
 0x59f   :  { %v7191_v26 = vadd.f32 %v7190_v16, %v7189_v45  ;;  %v7202_v50 = vadd.f32 %v7201_v60, %v7200_v14 }
 0x5a1   :  { %v7192_v21 = vrot.slane %v7191_v26, 2  ;;  %v7204_v46 = vmul.f32 0.25, %v7202_v50 }
 0x5a3   :  { %v7193_v22 = vadd.f32 %v7192_v21, %v7191_v26  ;;  %v7206_v25 = vpack.c.bf16 %v7204_v46, %v7204_v46 }
 0x5a5   :  { %v7194_v12 = vrot.slane %v7193_v22, 1  ;;  %v7233_v53 = vunpack.c.l.b16 %v7206_v25 }
 0x5a7   :  { %v7195_v35 = vadd.f32 %v7194_v12, %v7193_v22  ;;  %v7234_v49 = vrot.slane %v7233_v53, 7 }
 0x5a9   :  { %v7203_v62 = vmul.f32 0.25, %v7195_v35 }
 0x5ab   :  { %v7205_v30 = vpack.c.bf16 %v7203_v62, %v7203_v62 }
 0x5ad   :  { %v7232_v58 = vunpack.c.l.b16 %v7205_v30 }
 0x5af   :  { %v7235_v37 = vsel %vm4169_vm3, %v7234_v49, %v7232_v58 }
 0x5b0   :  { %v7236_v29 = vpack.c.b16 %v7235_v37, %v7235_v37 }
 0x5b2   :  { %8288 = vmatmul.mubr.bf16.vlgmr.msra.gmra.mrb[72].mxu0 %v7236_v29 }
 0x685   :  { %v7320_v39 = vpop.f32.mrb[72].mxu0 }
 0x686   :  { %v7321_v33 = vadd.f32 %v7965_v55, %v7320_v39  ;;  %v8289_v31 = vpop.f32.mrb[73].mxu0 }
 0x687   :  { %v7323_v5 = vpop.f32.mrb[74].mxu0 }
 0x688   :  { %v7326_v17 = vmax.f32 %v7321_v33, 0.0  ;;  %v8290_v27 = vpop.f32.mrb[75].mxu0 }
 0x68a   :  { %v7327_v44 = vpack.c.bf16 %v7326_v17, %v7326_v17 }
 0x68c   :  { %8300 = vmatmul.mubr.msk.bf16.vlgmr.msra.gmra.mrb[60].mxu1 %vm4866_vm10, %v7327_v44 }
 0x68d   :  { %8304 = vmatpush3.bf16.msra.mxu1 %v8734_v0  ;;  %8307 = vmatprep.mubr.msk.bf16.mxu1 %vm8769_vm15, %v8764_v34 }
 0x68e   :  { %8305 = vmatprep.subr.bf16.mxu1 %v8764_v34  ;;  %v7980_v34 = vld [vmem:[%s10848_s15] ss:$0 sm:$0xff] }
 0x691   :  { %8306 = vmatpush3.bf16.msra.mxu1 %v8735_v7 }
 0x75f   :  { %v7404_v38 = vpop.f32.mrb[60].mxu1 }
 0x760   :  { %v7405_v24 = vadd.f32 %v7974_v11, %v7404_v38  ;;  %v8301_v2 = vpop.f32.mrb[61].mxu1 }
 0x761   :  { %v7407_v40 = vpop.f32.mrb[62].mxu1 }
 0x762   :  { %v7410_v4 = vmax.f32 %v7405_v24, 0.0  ;;  %v8302_v9 = vpop.f32.mrb[63].mxu1 }
 0x764   :  { %v7411_v23 = vpack.c.bf16 %v7410_v4, %v7410_v4 }
 0x766   :  { %8308 = vmatmul.mubr.msk.bf16.vlgmr.msra.gmra.mrb[64].mxu1 %vm55_vm0, %v7411_v23 }
 0x839   :  { %v7472_v54 = vpop.f32.mrb[64].mxu1 }
 0x83a   :  { %v7473_v36 = vadd.f32 %v7980_v34, %v7472_v54  ;;  %v8309_v57 = vpop.f32.mrb[65].mxu1 }
 0x83b   :  { %v7475_v8 = vpop.f32.mrb[66].mxu1 }
 0x83c   :  { %7478 = vst [vmem:[#allocation4] sm:$0x3] %v7473_v36  ;;  %v8310_v51 = vpop.f32.mrb[67].mxu1 }
 0x83d   :  { %8751 = shalt.err (!%p8748_p4)
}
 0x83e   :  { %s8752_s15 = scalar_lea.hbm %s10849_s16, 32 }
 0x83f   :  { %p8753_p5 = scmp.ne.s32.totalorder %s10849_s16, %s8752_s15  ;;  %p8756_p6 = scmp.lt.u32.totalorder %s8752_s15, %s10849_s16 }
 0x841   :  { %p8758_p7 = pnand %p8756_p6, %p8753_p5 }
 0x843   :  { %8761 = shalt.err (!%p8758_p7)
}
 0x844   :  { %7488 = dma.vmem_to_hbm [thread:$0]  %s7486_s14, 32, %s10849_s16, [#allocation5]  }
 0x845   :  { %8762 = dma.done.wait [#allocation5], 32  }
 0x846   :  { %8763 = vsyncadd [#allocation5], 4294967264 }
 0x847   :  { %7492 = vsyncpa [#allocation5], 1 }

</bundles_post_ra>
